<compile_context>
chip_gen: v7x
topology: tpu7x:2x2x1
jax: 0.10.0
libtpu: 0.0.40
codegen_flags: <defaults>
</compile_context>

<pallas_src>
import jax
import jax.numpy as jnp
from jax.experimental import pallas as pl
from jax.experimental.pallas import tpu as pltpu


EMBED_DIM = 50
NUM_LAYERS = 4
LANE = 128


def _round_up(n, m):
    return ((n + m - 1) // m) * m


# --------------------- fused 4-layer LSTM + Linear kernel ----------------------
def fused_lstm_lm_kernel(x_ref, wih0_ref, wihr_ref, whh_ref, b_ref,
                         lw_ref, lb_ref, out_ref):
    """
    x_ref    : [T, B, D]      embedded tokens (time-major)
    wih0_ref : [D, 4H]        layer-0 input weights   (gate cols: i, f, o, g)
    wihr_ref : [L-1, H, 4H]   layers 1..L-1 input weights (i, f, o, g)
    whh_ref  : [L, H, 4H]     recurrent weights           (i, f, o, g)
    b_ref    : [L, 1, 4H]     fused biases b_ih + b_hh    (i, f, o, g)
    lw_ref   : [H, Vp]        output Linear weight (vocab zero-padded to 128 lanes)
    lb_ref   : [1, Vp]        output Linear bias   (padded)
    out_ref  : [T, B, Vp]     logits, time-major, padded vocab
    """
    T, B, D = x_ref.shape
    L, H, G = whh_ref.shape          # G == 4H
    H3 = 3 * H

    # Hoisted layer-0 input projection + bias for the whole sequence:
    # one [T*B, D] x [D, 4H] MXU matmul off the serial path.  Time-major, so
    # gx0[t] is a contiguous [B, 4H] block.
    gx0 = (jnp.dot(x_ref[...].reshape(T * B, D), wih0_ref[...],
                   preferred_element_type=jnp.float32)
           + b_ref[0]).reshape(T, B, G)

    w_hh = [whh_ref[l] for l in range(L)]                       # [H, 4H] each
    w_ih = [None] + [wihr_ref[l - 1] for l in range(1, L)]      # [H, 4H] each
    bias = [b_ref[l] for l in range(L)]                          # [1, 4H] each

    h = [jnp.zeros((B, H), jnp.float32) for _ in range(L)]
    c = [jnp.zeros((B, H), jnp.float32) for _ in range(L)]
    top = [None] * T                                             # top-layer h, time order

    # Wavefront schedule: diagonal d runs layer l on timestep t = d - l.
    # Layers are visited top-down so layer l reads layer l-1's output from the
    # previous diagonal (its timestep-t output) before layer l-1 is updated.
    # The <=4 cell updates per diagonal are data-independent, so their matmul
    # and EUP latencies overlap.
    # TODO(synk): for much larger T, switch the diagonal loop to lax.fori_loop
    # with pl.when masking to bound live ranges / compile time.
    for d in range(T + L - 1):
        for l in range(L - 1, -1, -1):
            t = d - l
            if 0 <= t < T:
                if l == 0:
                    gates = gx0[t] + jnp.dot(h[0], w_hh[0],
                                             preferred_element_type=jnp.float32)
                else:
                    gates = (jnp.dot(h[l - 1], w_ih[l],
                                     preferred_element_type=jnp.float32)
                             + jnp.dot(h[l], w_hh[l],
                                       preferred_element_type=jnp.float32)
                             + bias[l])
                # Gate order is (i, f, o, g): one sigmoid pass + one tanh pass.
                sig = jax.nn.sigmoid(gates[:, :H3])
                g_g = jnp.tanh(gates[:, H3:])
                i_g = sig[:, :H]
                f_g = sig[:, H:2 * H]
                o_g = sig[:, 2 * H:H3]
                c[l] = f_g * c[l] + i_g * g_g
                h[l] = o_g * jnp.tanh(c[l])
                if l == L - 1:
                    top[t] = h[l]

    # Output Linear on the whole sequence: time-major stack is contiguous
    # (row order t*B + b), one MXU matmul, single lane-dense store (Vp % 128 == 0).
    h_top = jnp.stack(top, axis=0).reshape(T * B, H)
    logits = (jnp.dot(h_top, lw_ref[...], preferred_element_type=jnp.float32)
              + lb_ref[...])
    out_ref[...] = logits.reshape(out_ref.shape)


# ------------------------------- Parameters ------------------------------------
def init_params(key, words_num, hidden_size, embed_dim=EMBED_DIM,
                num_layers=NUM_LAYERS):
    """Weights in PyTorch-equivalent layout/gate order (i, f, g, o)."""
    params = {}
    k_emb, k_lstm, k_lin = jax.random.split(key, 3)
    params["embedding"] = jax.random.normal(k_emb, (words_num, embed_dim),
                                            jnp.float32)

    lstm = []
    scale = 1.0 / jnp.sqrt(hidden_size)
    ks = jax.random.split(k_lstm, num_layers * 4)
    for layer in range(num_layers):
        d_in = embed_dim if layer == 0 else hidden_size
        k0, k1, k2, k3 = ks[4 * layer: 4 * layer + 4]
        # NOTE: stored as [D_in, 4H] / [H, 4H]; PyTorch's [4H, D] layout must be
        # transposed when importing real checkpoints.
        w_ih = jax.random.uniform(k0, (d_in, 4 * hidden_size), jnp.float32,
                                  -scale, scale)
        w_hh = jax.random.uniform(k1, (hidden_size, 4 * hidden_size), jnp.float32,
                                  -scale, scale)
        b_ih = jax.random.uniform(k2, (4 * hidden_size,), jnp.float32, -scale, scale)
        b_hh = jax.random.uniform(k3, (4 * hidden_size,), jnp.float32, -scale, scale)
        lstm.append({"w_ih": w_ih, "w_hh": w_hh, "b": (b_ih + b_hh)[None, :]})
    params["lstm"] = lstm

    kl0, kl1 = jax.random.split(k_lin)
    lin_scale = 1.0 / jnp.sqrt(hidden_size)
    params["linear_w"] = jax.random.uniform(kl0, (hidden_size, words_num),
                                            jnp.float32, -lin_scale, lin_scale)
    params["linear_b"] = jax.random.uniform(kl1, (1, words_num), jnp.float32,
                                            -lin_scale, lin_scale)
    return params


def pack_params(params, words_num):
    """One-time repack: stack per-layer weights, reorder gate columns
    (i,f,g,o) -> (i,f,o,g), and pad the vocab dim to a multiple of 128."""
    lstm = params["lstm"]
    H = lstm[0]["w_hh"].shape[0]

    def ifgo_to_ifog(w):
        # Reorder gate blocks along the last axis so sigmoid gates are contiguous.
        return jnp.concatenate(
            [w[..., :2 * H], w[..., 3 * H:4 * H], w[..., 2 * H:3 * H]], axis=-1)

    vp = _round_up(words_num, LANE)
    lin_w = jnp.zeros((H, vp), jnp.float32).at[:, :words_num].set(params["linear_w"])
    lin_b = jnp.zeros((1, vp), jnp.float32).at[:, :words_num].set(params["linear_b"])
    return {
        "embedding": params["embedding"],
        "w_ih0": ifgo_to_ifog(lstm[0]["w_ih"]),                           # [50, 4H]
        "w_ih_rest": jnp.stack([ifgo_to_ifog(l["w_ih"]) for l in lstm[1:]], 0),  # [3, H, 4H]
        "w_hh": jnp.stack([ifgo_to_ifog(l["w_hh"]) for l in lstm], 0),    # [4, H, 4H]
        "b": jnp.stack([ifgo_to_ifog(l["b"]) for l in lstm], 0),          # [4, 1, 4H]
        "lin_w": lin_w,                                                   # [H, Vp]
        "lin_b": lin_b,                                                   # [1, Vp]
    }


# ------------------------------- Model wrapper ----------------------------------
def my_model_forward(packed, tokens, words_num):
    """tokens: [B, T] int -> logits [B, T, words_num] f32."""
    tokens = tokens.astype(jnp.int32)
    B, T = tokens.shape
    # TODO(synk): embedding lookup is a data-dependent gather; kept as a single
    # plain-JAX op (producing time-major [T, B, 50] directly) rather than an
    # in-kernel scalar-prefetch DMA gather.
    x = jnp.take(packed["embedding"], tokens.T, axis=0).astype(jnp.float32)  # [T, B, 50]
    vp = packed["lin_w"].shape[1]

    operands = (x, packed["w_ih0"], packed["w_ih_rest"], packed["w_hh"],
                packed["b"], packed["lin_w"], packed["lin_b"])

    # Generation-aware VMEM budget: actual I/O footprint * 2 + headroom,
    # clamped to [16 MiB, 64 MiB] (64 MiB = v7x physical per-TC VMEM).
    out_bytes = T * B * vp * 4
    io_bytes = sum(int(a.size) * a.dtype.itemsize for a in operands) + out_bytes
    vmem_limit = int(min(max(2 * io_bytes + (4 << 20), 16 << 20), 64 << 20))

    out_tmajor = pl.pallas_call(
        fused_lstm_lm_kernel,
        out_shape=jax.ShapeDtypeStruct((T, B, vp), jnp.float32),
        in_specs=[pl.BlockSpec(memory_space=pltpu.MemorySpace.VMEM)] * 7,
        out_specs=pl.BlockSpec(memory_space=pltpu.MemorySpace.VMEM),
        compiler_params=pltpu.CompilerParams(vmem_limit_bytes=vmem_limit),
    )(*operands)

    # Single relayout at the kernel boundary: time-major -> batch-major, and
    # drop the lane padding on the vocab dim.
    # TODO(synk): on v7x a batch-parallel grid could use the second TensorCore,
    # but at B=2 it would serialize the recurrence on 1-TC chips, so omitted.
    return jnp.transpose(out_tmajor, (1, 0, 2))[..., :words_num]


# ----------------------------- Pure-JAX reference --------------------------------
def reference_forward(params, tokens):
    tokens = tokens.astype(jnp.int32)
    x = jnp.take(params["embedding"], tokens, axis=0)          # [B, T, 50]
    x = jnp.transpose(x, (1, 0, 2))                            # [T, B, 50]
    B = x.shape[1]
    for layer_p in params["lstm"]:
        H = layer_p["w_hh"].shape[0]

        def step(carry, x_t):
            h, c = carry
            gates = x_t @ layer_p["w_ih"] + h @ layer_p["w_hh"] + layer_p["b"]
            i = jax.nn.sigmoid(gates[:, 0:H])
            f = jax.nn.sigmoid(gates[:, H:2 * H])
            g = jnp.tanh(gates[:, 2 * H:3 * H])
            o = jax.nn.sigmoid(gates[:, 3 * H:4 * H])
            c = f * c + i * g
            h = o * jnp.tanh(c)
            return (h, c), h

        init = (jnp.zeros((B, H), jnp.float32), jnp.zeros((B, H), jnp.float32))
        _, x = jax.lax.scan(step, init, x)                     # [T, B, H]
    h = jnp.transpose(x, (1, 0, 2))
    return h @ params["linear_w"] + params["linear_b"]


if __name__ == "__main__":
    words_num = 64
    hidden_size = 32
    B, T = 2, 8

    key = jax.random.PRNGKey(0)
    k_params, k_tokens = jax.random.split(key)
    params = init_params(k_params, words_num, hidden_size)
    packed = pack_params(params, words_num)
    tokens = jax.random.randint(k_tokens, (B, T), 0, words_num, dtype=jnp.int32)

    out = jax.block_until_ready(my_model_forward(packed, tokens, words_num))
    assert out.shape == (B, T, words_num), out.shape

    ref = jax.block_until_ready(reference_forward(params, tokens))
    assert jnp.allclose(out, ref, atol=1e-4, rtol=1e-4), "mismatch vs reference"

    print("KERNEL_OK")
</pallas_src>

<mosaic_0001>
module attributes {stable_mosaic.version = 11 : i64} {
  func.func @fused_lstm_lm_kernel(%arg0: memref<8x2x50xf32, #tpu.memory_space<vmem>>, %arg1: memref<50x128xf32, #tpu.memory_space<vmem>>, %arg2: memref<3x32x128xf32, #tpu.memory_space<vmem>>, %arg3: memref<4x32x128xf32, #tpu.memory_space<vmem>>, %arg4: memref<4x1x128xf32, #tpu.memory_space<vmem>>, %arg5: memref<32x128xf32, #tpu.memory_space<vmem>>, %arg6: memref<1x128xf32, #tpu.memory_space<vmem>>, %arg7: memref<8x2x128xf32, #tpu.memory_space<vmem>>) attributes {dimension_semantics = [], scalar_prefetch = 0 : i64, scratch_operands = 0 : i64, tpu.core_type = #tpu.core_type<tc>} {
    %c0 = arith.constant 0 : index
    %c0_0 = arith.constant 0 : index
    %c0_1 = arith.constant 0 : index
    %0 = vector.load %arg0[%c0, %c0_0, %c0_1] : memref<8x2x50xf32, #tpu.memory_space<vmem>>, vector<8x2x50xf32>
    %1 = vector.shape_cast %0 : vector<8x2x50xf32> to vector<16x50xf32>
    %c0_2 = arith.constant 0 : index
    %c0_3 = arith.constant 0 : index
    %2 = vector.load %arg1[%c0_2, %c0_3] : memref<50x128xf32, #tpu.memory_space<vmem>>, vector<50x128xf32>
    %cst = arith.constant dense<0.000000e+00> : vector<16x128xf32>
    %3 = tpu.matmul %1, %2, %cst {dimension_numbers = #tpu.dot_dimension_numbers<[1], [0], [0], [1], [0, 0, 1, 1], [], []>} : vector<16x50xf32>, vector<50x128xf32>, vector<16x128xf32> -> vector<16x128xf32>
    %c0_4 = arith.constant 0 : index
    %c0_5 = arith.constant 0 : index
    %c0_6 = arith.constant 0 : index
    %4 = vector.load %arg4[%c0_4, %c0_5, %c0_6] : memref<4x1x128xf32, #tpu.memory_space<vmem>>, vector<1x1x128xf32>
    %5 = vector.shape_cast %4 : vector<1x1x128xf32> to vector<1x128xf32>
    %6 = vector.broadcast %5 : vector<1x128xf32> to vector<16x128xf32>
    %7 = arith.addf %3, %6 : vector<16x128xf32>
    %8 = vector.shape_cast %7 : vector<16x128xf32> to vector<8x2x128xf32>
    %c0_7 = arith.constant 0 : index
    %c0_8 = arith.constant 0 : index
    %c0_9 = arith.constant 0 : index
    %9 = vector.load %arg3[%c0_7, %c0_8, %c0_9] : memref<4x32x128xf32, #tpu.memory_space<vmem>>, vector<1x32x128xf32>
    %10 = vector.shape_cast %9 : vector<1x32x128xf32> to vector<32x128xf32>
    %c1 = arith.constant 1 : index
    %c0_10 = arith.constant 0 : index
    %c0_11 = arith.constant 0 : index
    %11 = vector.load %arg3[%c1, %c0_10, %c0_11] : memref<4x32x128xf32, #tpu.memory_space<vmem>>, vector<1x32x128xf32>
    %12 = vector.shape_cast %11 : vector<1x32x128xf32> to vector<32x128xf32>
    %c2 = arith.constant 2 : index
    %c0_12 = arith.constant 0 : index
    %c0_13 = arith.constant 0 : index
    %13 = vector.load %arg3[%c2, %c0_12, %c0_13] : memref<4x32x128xf32, #tpu.memory_space<vmem>>, vector<1x32x128xf32>
    %14 = vector.shape_cast %13 : vector<1x32x128xf32> to vector<32x128xf32>
    %c3 = arith.constant 3 : index
    %c0_14 = arith.constant 0 : index
    %c0_15 = arith.constant 0 : index
    %15 = vector.load %arg3[%c3, %c0_14, %c0_15] : memref<4x32x128xf32, #tpu.memory_space<vmem>>, vector<1x32x128xf32>
    %16 = vector.shape_cast %15 : vector<1x32x128xf32> to vector<32x128xf32>
    %c0_16 = arith.constant 0 : index
    %c0_17 = arith.constant 0 : index
    %c0_18 = arith.constant 0 : index
    %17 = vector.load %arg2[%c0_16, %c0_17, %c0_18] : memref<3x32x128xf32, #tpu.memory_space<vmem>>, vector<1x32x128xf32>
    %18 = vector.shape_cast %17 : vector<1x32x128xf32> to vector<32x128xf32>
    %c1_19 = arith.constant 1 : index
    %c0_20 = arith.constant 0 : index
    %c0_21 = arith.constant 0 : index
    %19 = vector.load %arg2[%c1_19, %c0_20, %c0_21] : memref<3x32x128xf32, #tpu.memory_space<vmem>>, vector<1x32x128xf32>
    %20 = vector.shape_cast %19 : vector<1x32x128xf32> to vector<32x128xf32>
    %c2_22 = arith.constant 2 : index
    %c0_23 = arith.constant 0 : index
    %c0_24 = arith.constant 0 : index
    %21 = vector.load %arg2[%c2_22, %c0_23, %c0_24] : memref<3x32x128xf32, #tpu.memory_space<vmem>>, vector<1x32x128xf32>
    %22 = vector.shape_cast %21 : vector<1x32x128xf32> to vector<32x128xf32>
    %c1_25 = arith.constant 1 : index
    %c0_26 = arith.constant 0 : index
    %c0_27 = arith.constant 0 : index
    %23 = vector.load %arg4[%c1_25, %c0_26, %c0_27] : memref<4x1x128xf32, #tpu.memory_space<vmem>>, vector<1x1x128xf32>
    %24 = vector.shape_cast %23 : vector<1x1x128xf32> to vector<1x128xf32>
    %c2_28 = arith.constant 2 : index
    %c0_29 = arith.constant 0 : index
    %c0_30 = arith.constant 0 : index
    %25 = vector.load %arg4[%c2_28, %c0_29, %c0_30] : memref<4x1x128xf32, #tpu.memory_space<vmem>>, vector<1x1x128xf32>
    %26 = vector.shape_cast %25 : vector<1x1x128xf32> to vector<1x128xf32>
    %c3_31 = arith.constant 3 : index
    %c0_32 = arith.constant 0 : index
    %c0_33 = arith.constant 0 : index
    %27 = vector.load %arg4[%c3_31, %c0_32, %c0_33] : memref<4x1x128xf32, #tpu.memory_space<vmem>>, vector<1x1x128xf32>
    %28 = vector.shape_cast %27 : vector<1x1x128xf32> to vector<1x128xf32>
    %cst_34 = arith.constant 0.000000e+00 : f32
    %29 = vector.broadcast %cst_34 : f32 to vector<2x32xf32>
    %cst_35 = arith.constant 0.000000e+00 : f32
    %30 = vector.broadcast %cst_35 : f32 to vector<2x32xf32>
    %cst_36 = arith.constant 0.000000e+00 : f32
    %31 = vector.broadcast %cst_36 : f32 to vector<2x32xf32>
    %cst_37 = arith.constant 0.000000e+00 : f32
    %32 = vector.broadcast %cst_37 : f32 to vector<2x32xf32>
    %cst_38 = arith.constant 0.000000e+00 : f32
    %33 = vector.broadcast %cst_38 : f32 to vector<2x32xf32>
    %cst_39 = arith.constant 0.000000e+00 : f32
    %34 = vector.broadcast %cst_39 : f32 to vector<2x32xf32>
    %cst_40 = arith.constant 0.000000e+00 : f32
    %35 = vector.broadcast %cst_40 : f32 to vector<2x32xf32>
    %cst_41 = arith.constant 0.000000e+00 : f32
    %36 = vector.broadcast %cst_41 : f32 to vector<2x32xf32>
    %37 = vector.extract_strided_slice %8 {offsets = [0, 0, 0], sizes = [1, 2, 128], strides = [1, 1, 1]} : vector<8x2x128xf32> to vector<1x2x128xf32>
    %38 = vector.shape_cast %37 : vector<1x2x128xf32> to vector<2x128xf32>
    %cst_42 = arith.constant dense<0.000000e+00> : vector<2x128xf32>
    %39 = tpu.matmul %29, %10, %cst_42 {dimension_numbers = #tpu.dot_dimension_numbers<[1], [0], [0], [1], [0, 0, 1, 1], [], []>} : vector<2x32xf32>, vector<32x128xf32>, vector<2x128xf32> -> vector<2x128xf32>
    %40 = arith.addf %38, %39 : vector<2x128xf32>
    %41 = vector.extract_strided_slice %40 {offsets = [0, 0], sizes = [2, 96], strides = [1, 1]} : vector<2x128xf32> to vector<2x96xf32>
    %42 = arith.negf %41 : vector<2x96xf32>
    %43 = math.exp %42 : vector<2x96xf32>
    %cst_43 = arith.constant 1.000000e+00 : f32
    %44 = vector.broadcast %cst_43 : f32 to vector<2x96xf32>
    %45 = arith.addf %44, %43 : vector<2x96xf32>
    %46 = arith.divf %44, %45 : vector<2x96xf32>
    %47 = vector.extract_strided_slice %40 {offsets = [0, 96], sizes = [2, 32], strides = [1, 1]} : vector<2x128xf32> to vector<2x32xf32>
    %48 = math.tanh %47 : vector<2x32xf32>
    %49 = vector.extract_strided_slice %46 {offsets = [0, 0], sizes = [2, 32], strides = [1, 1]} : vector<2x96xf32> to vector<2x32xf32>
    %50 = vector.extract_strided_slice %46 {offsets = [0, 32], sizes = [2, 32], strides = [1, 1]} : vector<2x96xf32> to vector<2x32xf32>
    %51 = vector.extract_strided_slice %46 {offsets = [0, 64], sizes = [2, 32], strides = [1, 1]} : vector<2x96xf32> to vector<2x32xf32>
    %52 = arith.mulf %50, %33 : vector<2x32xf32>
    %53 = arith.mulf %49, %48 : vector<2x32xf32>
    %54 = arith.addf %52, %53 : vector<2x32xf32>
    %55 = math.tanh %54 : vector<2x32xf32>
    %56 = arith.mulf %51, %55 : vector<2x32xf32>
    %cst_44 = arith.constant dense<0.000000e+00> : vector<2x128xf32>
    %57 = tpu.matmul %56, %18, %cst_44 {dimension_numbers = #tpu.dot_dimension_numbers<[1], [0], [0], [1], [0, 0, 1, 1], [], []>} : vector<2x32xf32>, vector<32x128xf32>, vector<2x128xf32> -> vector<2x128xf32>
    %cst_45 = arith.constant dense<0.000000e+00> : vector<2x128xf32>
    %58 = tpu.matmul %30, %12, %cst_45 {dimension_numbers = #tpu.dot_dimension_numbers<[1], [0], [0], [1], [0, 0, 1, 1], [], []>} : vector<2x32xf32>, vector<32x128xf32>, vector<2x128xf32> -> vector<2x128xf32>
    %59 = arith.addf %57, %58 : vector<2x128xf32>
    %60 = vector.broadcast %24 : vector<1x128xf32> to vector<2x128xf32>
    %61 = arith.addf %59, %60 : vector<2x128xf32>
    %62 = vector.extract_strided_slice %61 {offsets = [0, 0], sizes = [2, 96], strides = [1, 1]} : vector<2x128xf32> to vector<2x96xf32>
    %63 = arith.negf %62 : vector<2x96xf32>
    %64 = math.exp %63 : vector<2x96xf32>
    %cst_46 = arith.constant 1.000000e+00 : f32
    %65 = vector.broadcast %cst_46 : f32 to vector<2x96xf32>
    %66 = arith.addf %65, %64 : vector<2x96xf32>
    %67 = arith.divf %65, %66 : vector<2x96xf32>
    %68 = vector.extract_strided_slice %61 {offsets = [0, 96], sizes = [2, 32], strides = [1, 1]} : vector<2x128xf32> to vector<2x32xf32>
    %69 = math.tanh %68 : vector<2x32xf32>
    %70 = vector.extract_strided_slice %67 {offsets = [0, 0], sizes = [2, 32], strides = [1, 1]} : vector<2x96xf32> to vector<2x32xf32>
    %71 = vector.extract_strided_slice %67 {offsets = [0, 32], sizes = [2, 32], strides = [1, 1]} : vector<2x96xf32> to vector<2x32xf32>
    %72 = vector.extract_strided_slice %67 {offsets = [0, 64], sizes = [2, 32], strides = [1, 1]} : vector<2x96xf32> to vector<2x32xf32>
    %73 = arith.mulf %71, %34 : vector<2x32xf32>
    %74 = arith.mulf %70, %69 : vector<2x32xf32>
    %75 = arith.addf %73, %74 : vector<2x32xf32>
    %76 = math.tanh %75 : vector<2x32xf32>
    %77 = arith.mulf %72, %76 : vector<2x32xf32>
    %78 = vector.extract_strided_slice %8 {offsets = [1, 0, 0], sizes = [1, 2, 128], strides = [1, 1, 1]} : vector<8x2x128xf32> to vector<1x2x128xf32>
    %79 = vector.shape_cast %78 : vector<1x2x128xf32> to vector<2x128xf32>
    %cst_47 = arith.constant dense<0.000000e+00> : vector<2x128xf32>
    %80 = tpu.matmul %56, %10, %cst_47 {dimension_numbers = #tpu.dot_dimension_numbers<[1], [0], [0], [1], [0, 0, 1, 1], [], []>} : vector<2x32xf32>, vector<32x128xf32>, vector<2x128xf32> -> vector<2x128xf32>
    %81 = arith.addf %79, %80 : vector<2x128xf32>
    %82 = vector.extract_strided_slice %81 {offsets = [0, 0], sizes = [2, 96], strides = [1, 1]} : vector<2x128xf32> to vector<2x96xf32>
    %83 = arith.negf %82 : vector<2x96xf32>
    %84 = math.exp %83 : vector<2x96xf32>
    %cst_48 = arith.constant 1.000000e+00 : f32
    %85 = vector.broadcast %cst_48 : f32 to vector<2x96xf32>
    %86 = arith.addf %85, %84 : vector<2x96xf32>
    %87 = arith.divf %85, %86 : vector<2x96xf32>
    %88 = vector.extract_strided_slice %81 {offsets = [0, 96], sizes = [2, 32], strides = [1, 1]} : vector<2x128xf32> to vector<2x32xf32>
    %89 = math.tanh %88 : vector<2x32xf32>
    %90 = vector.extract_strided_slice %87 {offsets = [0, 0], sizes = [2, 32], strides = [1, 1]} : vector<2x96xf32> to vector<2x32xf32>
    %91 = vector.extract_strided_slice %87 {offsets = [0, 32], sizes = [2, 32], strides = [1, 1]} : vector<2x96xf32> to vector<2x32xf32>
    %92 = vector.extract_strided_slice %87 {offsets = [0, 64], sizes = [2, 32], strides = [1, 1]} : vector<2x96xf32> to vector<2x32xf32>
    %93 = arith.mulf %91, %54 : vector<2x32xf32>
    %94 = arith.mulf %90, %89 : vector<2x32xf32>
    %95 = arith.addf %93, %94 : vector<2x32xf32>
    %96 = math.tanh %95 : vector<2x32xf32>
    %97 = arith.mulf %92, %96 : vector<2x32xf32>
    %cst_49 = arith.constant dense<0.000000e+00> : vector<2x128xf32>
    %98 = tpu.matmul %77, %20, %cst_49 {dimension_numbers = #tpu.dot_dimension_numbers<[1], [0], [0], [1], [0, 0, 1, 1], [], []>} : vector<2x32xf32>, vector<32x128xf32>, vector<2x128xf32> -> vector<2x128xf32>
    %cst_50 = arith.constant dense<0.000000e+00> : vector<2x128xf32>
    %99 = tpu.matmul %31, %14, %cst_50 {dimension_numbers = #tpu.dot_dimension_numbers<[1], [0], [0], [1], [0, 0, 1, 1], [], []>} : vector<2x32xf32>, vector<32x128xf32>, vector<2x128xf32> -> vector<2x128xf32>
    %100 = arith.addf %98, %99 : vector<2x128xf32>
    %101 = vector.broadcast %26 : vector<1x128xf32> to vector<2x128xf32>
    %102 = arith.addf %100, %101 : vector<2x128xf32>
    %103 = vector.extract_strided_slice %102 {offsets = [0, 0], sizes = [2, 96], strides = [1, 1]} : vector<2x128xf32> to vector<2x96xf32>
    %104 = arith.negf %103 : vector<2x96xf32>
    %105 = math.exp %104 : vector<2x96xf32>
    %cst_51 = arith.constant 1.000000e+00 : f32
    %106 = vector.broadcast %cst_51 : f32 to vector<2x96xf32>
    %107 = arith.addf %106, %105 : vector<2x96xf32>
    %108 = arith.divf %106, %107 : vector<2x96xf32>
    %109 = vector.extract_strided_slice %102 {offsets = [0, 96], sizes = [2, 32], strides = [1, 1]} : vector<2x128xf32> to vector<2x32xf32>
    %110 = math.tanh %109 : vector<2x32xf32>
    %111 = vector.extract_strided_slice %108 {offsets = [0, 0], sizes = [2, 32], strides = [1, 1]} : vector<2x96xf32> to vector<2x32xf32>
    %112 = vector.extract_strided_slice %108 {offsets = [0, 32], sizes = [2, 32], strides = [1, 1]} : vector<2x96xf32> to vector<2x32xf32>
    %113 = vector.extract_strided_slice %108 {offsets = [0, 64], sizes = [2, 32], strides = [1, 1]} : vector<2x96xf32> to vector<2x32xf32>
    %114 = arith.mulf %112, %35 : vector<2x32xf32>
    %115 = arith.mulf %111, %110 : vector<2x32xf32>
    %116 = arith.addf %114, %115 : vector<2x32xf32>
    %117 = math.tanh %116 : vector<2x32xf32>
    %118 = arith.mulf %113, %117 : vector<2x32xf32>
    %cst_52 = arith.constant dense<0.000000e+00> : vector<2x128xf32>
    %119 = tpu.matmul %97, %18, %cst_52 {dimension_numbers = #tpu.dot_dimension_numbers<[1], [0], [0], [1], [0, 0, 1, 1], [], []>} : vector<2x32xf32>, vector<32x128xf32>, vector<2x128xf32> -> vector<2x128xf32>
    %cst_53 = arith.constant dense<0.000000e+00> : vector<2x128xf32>
    %120 = tpu.matmul %77, %12, %cst_53 {dimension_numbers = #tpu.dot_dimension_numbers<[1], [0], [0], [1], [0, 0, 1, 1], [], []>} : vector<2x32xf32>, vector<32x128xf32>, vector<2x128xf32> -> vector<2x128xf32>
    %121 = arith.addf %119, %120 : vector<2x128xf32>
    %122 = vector.broadcast %24 : vector<1x128xf32> to vector<2x128xf32>
    %123 = arith.addf %121, %122 : vector<2x128xf32>
    %124 = vector.extract_strided_slice %123 {offsets = [0, 0], sizes = [2, 96], strides = [1, 1]} : vector<2x128xf32> to vector<2x96xf32>
    %125 = arith.negf %124 : vector<2x96xf32>
    %126 = math.exp %125 : vector<2x96xf32>
    %cst_54 = arith.constant 1.000000e+00 : f32
    %127 = vector.broadcast %cst_54 : f32 to vector<2x96xf32>
    %128 = arith.addf %127, %126 : vector<2x96xf32>
    %129 = arith.divf %127, %128 : vector<2x96xf32>
    %130 = vector.extract_strided_slice %123 {offsets = [0, 96], sizes = [2, 32], strides = [1, 1]} : vector<2x128xf32> to vector<2x32xf32>
    %131 = math.tanh %130 : vector<2x32xf32>
    %132 = vector.extract_strided_slice %129 {offsets = [0, 0], sizes = [2, 32], strides = [1, 1]} : vector<2x96xf32> to vector<2x32xf32>
    %133 = vector.extract_strided_slice %129 {offsets = [0, 32], sizes = [2, 32], strides = [1, 1]} : vector<2x96xf32> to vector<2x32xf32>
    %134 = vector.extract_strided_slice %129 {offsets = [0, 64], sizes = [2, 32], strides = [1, 1]} : vector<2x96xf32> to vector<2x32xf32>
    %135 = arith.mulf %133, %75 : vector<2x32xf32>
    %136 = arith.mulf %132, %131 : vector<2x32xf32>
    %137 = arith.addf %135, %136 : vector<2x32xf32>
    %138 = math.tanh %137 : vector<2x32xf32>
    %139 = arith.mulf %134, %138 : vector<2x32xf32>
    %140 = vector.extract_strided_slice %8 {offsets = [2, 0, 0], sizes = [1, 2, 128], strides = [1, 1, 1]} : vector<8x2x128xf32> to vector<1x2x128xf32>
    %141 = vector.shape_cast %140 : vector<1x2x128xf32> to vector<2x128xf32>
    %cst_55 = arith.constant dense<0.000000e+00> : vector<2x128xf32>
    %142 = tpu.matmul %97, %10, %cst_55 {dimension_numbers = #tpu.dot_dimension_numbers<[1], [0], [0], [1], [0, 0, 1, 1], [], []>} : vector<2x32xf32>, vector<32x128xf32>, vector<2x128xf32> -> vector<2x128xf32>
    %143 = arith.addf %141, %142 : vector<2x128xf32>
    %144 = vector.extract_strided_slice %143 {offsets = [0, 0], sizes = [2, 96], strides = [1, 1]} : vector<2x128xf32> to vector<2x96xf32>
    %145 = arith.negf %144 : vector<2x96xf32>
    %146 = math.exp %145 : vector<2x96xf32>
    %cst_56 = arith.constant 1.000000e+00 : f32
    %147 = vector.broadcast %cst_56 : f32 to vector<2x96xf32>
    %148 = arith.addf %147, %146 : vector<2x96xf32>
    %149 = arith.divf %147, %148 : vector<2x96xf32>
    %150 = vector.extract_strided_slice %143 {offsets = [0, 96], sizes = [2, 32], strides = [1, 1]} : vector<2x128xf32> to vector<2x32xf32>
    %151 = math.tanh %150 : vector<2x32xf32>
    %152 = vector.extract_strided_slice %149 {offsets = [0, 0], sizes = [2, 32], strides = [1, 1]} : vector<2x96xf32> to vector<2x32xf32>
    %153 = vector.extract_strided_slice %149 {offsets = [0, 32], sizes = [2, 32], strides = [1, 1]} : vector<2x96xf32> to vector<2x32xf32>
    %154 = vector.extract_strided_slice %149 {offsets = [0, 64], sizes = [2, 32], strides = [1, 1]} : vector<2x96xf32> to vector<2x32xf32>
    %155 = arith.mulf %153, %95 : vector<2x32xf32>
    %156 = arith.mulf %152, %151 : vector<2x32xf32>
    %157 = arith.addf %155, %156 : vector<2x32xf32>
    %158 = math.tanh %157 : vector<2x32xf32>
    %159 = arith.mulf %154, %158 : vector<2x32xf32>
    %cst_57 = arith.constant dense<0.000000e+00> : vector<2x128xf32>
    %160 = tpu.matmul %118, %22, %cst_57 {dimension_numbers = #tpu.dot_dimension_numbers<[1], [0], [0], [1], [0, 0, 1, 1], [], []>} : vector<2x32xf32>, vector<32x128xf32>, vector<2x128xf32> -> vector<2x128xf32>
    %cst_58 = arith.constant dense<0.000000e+00> : vector<2x128xf32>
    %161 = tpu.matmul %32, %16, %cst_58 {dimension_numbers = #tpu.dot_dimension_numbers<[1], [0], [0], [1], [0, 0, 1, 1], [], []>} : vector<2x32xf32>, vector<32x128xf32>, vector<2x128xf32> -> vector<2x128xf32>
    %162 = arith.addf %160, %161 : vector<2x128xf32>
    %163 = vector.broadcast %28 : vector<1x128xf32> to vector<2x128xf32>
    %164 = arith.addf %162, %163 : vector<2x128xf32>
    %165 = vector.extract_strided_slice %164 {offsets = [0, 0], sizes = [2, 96], strides = [1, 1]} : vector<2x128xf32> to vector<2x96xf32>
    %166 = arith.negf %165 : vector<2x96xf32>
    %167 = math.exp %166 : vector<2x96xf32>
    %cst_59 = arith.constant 1.000000e+00 : f32
    %168 = vector.broadcast %cst_59 : f32 to vector<2x96xf32>
    %169 = arith.addf %168, %167 : vector<2x96xf32>
    %170 = arith.divf %168, %169 : vector<2x96xf32>
    %171 = vector.extract_strided_slice %164 {offsets = [0, 96], sizes = [2, 32], strides = [1, 1]} : vector<2x128xf32> to vector<2x32xf32>
    %172 = math.tanh %171 : vector<2x32xf32>
    %173 = vector.extract_strided_slice %170 {offsets = [0, 0], sizes = [2, 32], strides = [1, 1]} : vector<2x96xf32> to vector<2x32xf32>
    %174 = vector.extract_strided_slice %170 {offsets = [0, 32], sizes = [2, 32], strides = [1, 1]} : vector<2x96xf32> to vector<2x32xf32>
    %175 = vector.extract_strided_slice %170 {offsets = [0, 64], sizes = [2, 32], strides = [1, 1]} : vector<2x96xf32> to vector<2x32xf32>
    %176 = arith.mulf %174, %36 : vector<2x32xf32>
    %177 = arith.mulf %173, %172 : vector<2x32xf32>
    %178 = arith.addf %176, %177 : vector<2x32xf32>
    %179 = math.tanh %178 : vector<2x32xf32>
    %180 = arith.mulf %175, %179 : vector<2x32xf32>
    %cst_60 = arith.constant dense<0.000000e+00> : vector<2x128xf32>
    %181 = tpu.matmul %139, %20, %cst_60 {dimension_numbers = #tpu.dot_dimension_numbers<[1], [0], [0], [1], [0, 0, 1, 1], [], []>} : vector<2x32xf32>, vector<32x128xf32>, vector<2x128xf32> -> vector<2x128xf32>
    %cst_61 = arith.constant dense<0.000000e+00> : vector<2x128xf32>
    %182 = tpu.matmul %118, %14, %cst_61 {dimension_numbers = #tpu.dot_dimension_numbers<[1], [0], [0], [1], [0, 0, 1, 1], [], []>} : vector<2x32xf32>, vector<32x128xf32>, vector<2x128xf32> -> vector<2x128xf32>
    %183 = arith.addf %181, %182 : vector<2x128xf32>
    %184 = vector.broadcast %26 : vector<1x128xf32> to vector<2x128xf32>
    %185 = arith.addf %183, %184 : vector<2x128xf32>
    %186 = vector.extract_strided_slice %185 {offsets = [0, 0], sizes = [2, 96], strides = [1, 1]} : vector<2x128xf32> to vector<2x96xf32>
    %187 = arith.negf %186 : vector<2x96xf32>
    %188 = math.exp %187 : vector<2x96xf32>
    %cst_62 = arith.constant 1.000000e+00 : f32
    %189 = vector.broadcast %cst_62 : f32 to vector<2x96xf32>
    %190 = arith.addf %189, %188 : vector<2x96xf32>
    %191 = arith.divf %189, %190 : vector<2x96xf32>
    %192 = vector.extract_strided_slice %185 {offsets = [0, 96], sizes = [2, 32], strides = [1, 1]} : vector<2x128xf32> to vector<2x32xf32>
    %193 = math.tanh %192 : vector<2x32xf32>
    %194 = vector.extract_strided_slice %191 {offsets = [0, 0], sizes = [2, 32], strides = [1, 1]} : vector<2x96xf32> to vector<2x32xf32>
    %195 = vector.extract_strided_slice %191 {offsets = [0, 32], sizes = [2, 32], strides = [1, 1]} : vector<2x96xf32> to vector<2x32xf32>
    %196 = vector.extract_strided_slice %191 {offsets = [0, 64], sizes = [2, 32], strides = [1, 1]} : vector<2x96xf32> to vector<2x32xf32>
    %197 = arith.mulf %195, %116 : vector<2x32xf32>
    %198 = arith.mulf %194, %193 : vector<2x32xf32>
    %199 = arith.addf %197, %198 : vector<2x32xf32>
    %200 = math.tanh %199 : vector<2x32xf32>
    %201 = arith.mulf %196, %200 : vector<2x32xf32>
    %cst_63 = arith.constant dense<0.000000e+00> : vector<2x128xf32>
    %202 = tpu.matmul %159, %18, %cst_63 {dimension_numbers = #tpu.dot_dimension_numbers<[1], [0], [0], [1], [0, 0, 1, 1], [], []>} : vector<2x32xf32>, vector<32x128xf32>, vector<2x128xf32> -> vector<2x128xf32>
    %cst_64 = arith.constant dense<0.000000e+00> : vector<2x128xf32>
    %203 = tpu.matmul %139, %12, %cst_64 {dimension_numbers = #tpu.dot_dimension_numbers<[1], [0], [0], [1], [0, 0, 1, 1], [], []>} : vector<2x32xf32>, vector<32x128xf32>, vector<2x128xf32> -> vector<2x128xf32>
    %204 = arith.addf %202, %203 : vector<2x128xf32>
    %205 = vector.broadcast %24 : vector<1x128xf32> to vector<2x128xf32>
    %206 = arith.addf %204, %205 : vector<2x128xf32>
    %207 = vector.extract_strided_slice %206 {offsets = [0, 0], sizes = [2, 96], strides = [1, 1]} : vector<2x128xf32> to vector<2x96xf32>
    %208 = arith.negf %207 : vector<2x96xf32>
    %209 = math.exp %208 : vector<2x96xf32>
    %cst_65 = arith.constant 1.000000e+00 : f32
    %210 = vector.broadcast %cst_65 : f32 to vector<2x96xf32>
    %211 = arith.addf %210, %209 : vector<2x96xf32>
    %212 = arith.divf %210, %211 : vector<2x96xf32>
    %213 = vector.extract_strided_slice %206 {offsets = [0, 96], sizes = [2, 32], strides = [1, 1]} : vector<2x128xf32> to vector<2x32xf32>
    %214 = math.tanh %213 : vector<2x32xf32>
    %215 = vector.extract_strided_slice %212 {offsets = [0, 0], sizes = [2, 32], strides = [1, 1]} : vector<2x96xf32> to vector<2x32xf32>
    %216 = vector.extract_strided_slice %212 {offsets = [0, 32], sizes = [2, 32], strides = [1, 1]} : vector<2x96xf32> to vector<2x32xf32>
    %217 = vector.extract_strided_slice %212 {offsets = [0, 64], sizes = [2, 32], strides = [1, 1]} : vector<2x96xf32> to vector<2x32xf32>
    %218 = arith.mulf %216, %137 : vector<2x32xf32>
    %219 = arith.mulf %215, %214 : vector<2x32xf32>
    %220 = arith.addf %218, %219 : vector<2x32xf32>
    %221 = math.tanh %220 : vector<2x32xf32>
    %222 = arith.mulf %217, %221 : vector<2x32xf32>
    %223 = vector.extract_strided_slice %8 {offsets = [3, 0, 0], sizes = [1, 2, 128], strides = [1, 1, 1]} : vector<8x2x128xf32> to vector<1x2x128xf32>
    %224 = vector.shape_cast %223 : vector<1x2x128xf32> to vector<2x128xf32>
    %cst_66 = arith.constant dense<0.000000e+00> : vector<2x128xf32>
    %225 = tpu.matmul %159, %10, %cst_66 {dimension_numbers = #tpu.dot_dimension_numbers<[1], [0], [0], [1], [0, 0, 1, 1], [], []>} : vector<2x32xf32>, vector<32x128xf32>, vector<2x128xf32> -> vector<2x128xf32>
    %226 = arith.addf %224, %225 : vector<2x128xf32>
    %227 = vector.extract_strided_slice %226 {offsets = [0, 0], sizes = [2, 96], strides = [1, 1]} : vector<2x128xf32> to vector<2x96xf32>
    %228 = arith.negf %227 : vector<2x96xf32>
    %229 = math.exp %228 : vector<2x96xf32>
    %cst_67 = arith.constant 1.000000e+00 : f32
    %230 = vector.broadcast %cst_67 : f32 to vector<2x96xf32>
    %231 = arith.addf %230, %229 : vector<2x96xf32>
    %232 = arith.divf %230, %231 : vector<2x96xf32>
    %233 = vector.extract_strided_slice %226 {offsets = [0, 96], sizes = [2, 32], strides = [1, 1]} : vector<2x128xf32> to vector<2x32xf32>
    %234 = math.tanh %233 : vector<2x32xf32>
    %235 = vector.extract_strided_slice %232 {offsets = [0, 0], sizes = [2, 32], strides = [1, 1]} : vector<2x96xf32> to vector<2x32xf32>
    %236 = vector.extract_strided_slice %232 {offsets = [0, 32], sizes = [2, 32], strides = [1, 1]} : vector<2x96xf32> to vector<2x32xf32>
    %237 = vector.extract_strided_slice %232 {offsets = [0, 64], sizes = [2, 32], strides = [1, 1]} : vector<2x96xf32> to vector<2x32xf32>
    %238 = arith.mulf %236, %157 : vector<2x32xf32>
    %239 = arith.mulf %235, %234 : vector<2x32xf32>
    %240 = arith.addf %238, %239 : vector<2x32xf32>
    %241 = math.tanh %240 : vector<2x32xf32>
    %242 = arith.mulf %237, %241 : vector<2x32xf32>
    %cst_68 = arith.constant dense<0.000000e+00> : vector<2x128xf32>
    %243 = tpu.matmul %201, %22, %cst_68 {dimension_numbers = #tpu.dot_dimension_numbers<[1], [0], [0], [1], [0, 0, 1, 1], [], []>} : vector<2x32xf32>, vector<32x128xf32>, vector<2x128xf32> -> vector<2x128xf32>
    %cst_69 = arith.constant dense<0.000000e+00> : vector<2x128xf32>
    %244 = tpu.matmul %180, %16, %cst_69 {dimension_numbers = #tpu.dot_dimension_numbers<[1], [0], [0], [1], [0, 0, 1, 1], [], []>} : vector<2x32xf32>, vector<32x128xf32>, vector<2x128xf32> -> vector<2x128xf32>
    %245 = arith.addf %243, %244 : vector<2x128xf32>
    %246 = vector.broadcast %28 : vector<1x128xf32> to vector<2x128xf32>
    %247 = arith.addf %245, %246 : vector<2x128xf32>
    %248 = vector.extract_strided_slice %247 {offsets = [0, 0], sizes = [2, 96], strides = [1, 1]} : vector<2x128xf32> to vector<2x96xf32>
    %249 = arith.negf %248 : vector<2x96xf32>
    %250 = math.exp %249 : vector<2x96xf32>
    %cst_70 = arith.constant 1.000000e+00 : f32
    %251 = vector.broadcast %cst_70 : f32 to vector<2x96xf32>
    %252 = arith.addf %251, %250 : vector<2x96xf32>
    %253 = arith.divf %251, %252 : vector<2x96xf32>
    %254 = vector.extract_strided_slice %247 {offsets = [0, 96], sizes = [2, 32], strides = [1, 1]} : vector<2x128xf32> to vector<2x32xf32>
    %255 = math.tanh %254 : vector<2x32xf32>
    %256 = vector.extract_strided_slice %253 {offsets = [0, 0], sizes = [2, 32], strides = [1, 1]} : vector<2x96xf32> to vector<2x32xf32>
    %257 = vector.extract_strided_slice %253 {offsets = [0, 32], sizes = [2, 32], strides = [1, 1]} : vector<2x96xf32> to vector<2x32xf32>
    %258 = vector.extract_strided_slice %253 {offsets = [0, 64], sizes = [2, 32], strides = [1, 1]} : vector<2x96xf32> to vector<2x32xf32>
    %259 = arith.mulf %257, %178 : vector<2x32xf32>
    %260 = arith.mulf %256, %255 : vector<2x32xf32>
    %261 = arith.addf %259, %260 : vector<2x32xf32>
    %262 = math.tanh %261 : vector<2x32xf32>
    %263 = arith.mulf %258, %262 : vector<2x32xf32>
    %cst_71 = arith.constant dense<0.000000e+00> : vector<2x128xf32>
    %264 = tpu.matmul %222, %20, %cst_71 {dimension_numbers = #tpu.dot_dimension_numbers<[1], [0], [0], [1], [0, 0, 1, 1], [], []>} : vector<2x32xf32>, vector<32x128xf32>, vector<2x128xf32> -> vector<2x128xf32>
    %cst_72 = arith.constant dense<0.000000e+00> : vector<2x128xf32>
    %265 = tpu.matmul %201, %14, %cst_72 {dimension_numbers = #tpu.dot_dimension_numbers<[1], [0], [0], [1], [0, 0, 1, 1], [], []>} : vector<2x32xf32>, vector<32x128xf32>, vector<2x128xf32> -> vector<2x128xf32>
    %266 = arith.addf %264, %265 : vector<2x128xf32>
    %267 = vector.broadcast %26 : vector<1x128xf32> to vector<2x128xf32>
    %268 = arith.addf %266, %267 : vector<2x128xf32>
    %269 = vector.extract_strided_slice %268 {offsets = [0, 0], sizes = [2, 96], strides = [1, 1]} : vector<2x128xf32> to vector<2x96xf32>
    %270 = arith.negf %269 : vector<2x96xf32>
    %271 = math.exp %270 : vector<2x96xf32>
    %cst_73 = arith.constant 1.000000e+00 : f32
    %272 = vector.broadcast %cst_73 : f32 to vector<2x96xf32>
    %273 = arith.addf %272, %271 : vector<2x96xf32>
    %274 = arith.divf %272, %273 : vector<2x96xf32>
    %275 = vector.extract_strided_slice %268 {offsets = [0, 96], sizes = [2, 32], strides = [1, 1]} : vector<2x128xf32> to vector<2x32xf32>
    %276 = math.tanh %275 : vector<2x32xf32>
    %277 = vector.extract_strided_slice %274 {offsets = [0, 0], sizes = [2, 32], strides = [1, 1]} : vector<2x96xf32> to vector<2x32xf32>
    %278 = vector.extract_strided_slice %274 {offsets = [0, 32], sizes = [2, 32], strides = [1, 1]} : vector<2x96xf32> to vector<2x32xf32>
    %279 = vector.extract_strided_slice %274 {offsets = [0, 64], sizes = [2, 32], strides = [1, 1]} : vector<2x96xf32> to vector<2x32xf32>
    %280 = arith.mulf %278, %199 : vector<2x32xf32>
    %281 = arith.mulf %277, %276 : vector<2x32xf32>
    %282 = arith.addf %280, %281 : vector<2x32xf32>
    %283 = math.tanh %282 : vector<2x32xf32>
    %284 = arith.mulf %279, %283 : vector<2x32xf32>
    %cst_74 = arith.constant dense<0.000000e+00> : vector<2x128xf32>
    %285 = tpu.matmul %242, %18, %cst_74 {dimension_numbers = #tpu.dot_dimension_numbers<[1], [0], [0], [1], [0, 0, 1, 1], [], []>} : vector<2x32xf32>, vector<32x128xf32>, vector<2x128xf32> -> vector<2x128xf32>
    %cst_75 = arith.constant dense<0.000000e+00> : vector<2x128xf32>
    %286 = tpu.matmul %222, %12, %cst_75 {dimension_numbers = #tpu.dot_dimension_numbers<[1], [0], [0], [1], [0, 0, 1, 1], [], []>} : vector<2x32xf32>, vector<32x128xf32>, vector<2x128xf32> -> vector<2x128xf32>
    %287 = arith.addf %285, %286 : vector<2x128xf32>
    %288 = vector.broadcast %24 : vector<1x128xf32> to vector<2x128xf32>
    %289 = arith.addf %287, %288 : vector<2x128xf32>
    %290 = vector.extract_strided_slice %289 {offsets = [0, 0], sizes = [2, 96], strides = [1, 1]} : vector<2x128xf32> to vector<2x96xf32>
    %291 = arith.negf %290 : vector<2x96xf32>
    %292 = math.exp %291 : vector<2x96xf32>
    %cst_76 = arith.constant 1.000000e+00 : f32
    %293 = vector.broadcast %cst_76 : f32 to vector<2x96xf32>
    %294 = arith.addf %293, %292 : vector<2x96xf32>
    %295 = arith.divf %293, %294 : vector<2x96xf32>
    %296 = vector.extract_strided_slice %289 {offsets = [0, 96], sizes = [2, 32], strides = [1, 1]} : vector<2x128xf32> to vector<2x32xf32>
    %297 = math.tanh %296 : vector<2x32xf32>
    %298 = vector.extract_strided_slice %295 {offsets = [0, 0], sizes = [2, 32], strides = [1, 1]} : vector<2x96xf32> to vector<2x32xf32>
    %299 = vector.extract_strided_slice %295 {offsets = [0, 32], sizes = [2, 32], strides = [1, 1]} : vector<2x96xf32> to vector<2x32xf32>
    %300 = vector.extract_strided_slice %295 {offsets = [0, 64], sizes = [2, 32], strides = [1, 1]} : vector<2x96xf32> to vector<2x32xf32>
    %301 = arith.mulf %299, %220 : vector<2x32xf32>
    %302 = arith.mulf %298, %297 : vector<2x32xf32>
    %303 = arith.addf %301, %302 : vector<2x32xf32>
    %304 = math.tanh %303 : vector<2x32xf32>
    %305 = arith.mulf %300, %304 : vector<2x32xf32>
    %306 = vector.extract_strided_slice %8 {offsets = [4, 0, 0], sizes = [1, 2, 128], strides = [1, 1, 1]} : vector<8x2x128xf32> to vector<1x2x128xf32>
    %307 = vector.shape_cast %306 : vector<1x2x128xf32> to vector<2x128xf32>
    %cst_77 = arith.constant dense<0.000000e+00> : vector<2x128xf32>
    %308 = tpu.matmul %242, %10, %cst_77 {dimension_numbers = #tpu.dot_dimension_numbers<[1], [0], [0], [1], [0, 0, 1, 1], [], []>} : vector<2x32xf32>, vector<32x128xf32>, vector<2x128xf32> -> vector<2x128xf32>
    %309 = arith.addf %307, %308 : vector<2x128xf32>
    %310 = vector.extract_strided_slice %309 {offsets = [0, 0], sizes = [2, 96], strides = [1, 1]} : vector<2x128xf32> to vector<2x96xf32>
    %311 = arith.negf %310 : vector<2x96xf32>
    %312 = math.exp %311 : vector<2x96xf32>
    %cst_78 = arith.constant 1.000000e+00 : f32
    %313 = vector.broadcast %cst_78 : f32 to vector<2x96xf32>
    %314 = arith.addf %313, %312 : vector<2x96xf32>
    %315 = arith.divf %313, %314 : vector<2x96xf32>
    %316 = vector.extract_strided_slice %309 {offsets = [0, 96], sizes = [2, 32], strides = [1, 1]} : vector<2x128xf32> to vector<2x32xf32>
    %317 = math.tanh %316 : vector<2x32xf32>
    %318 = vector.extract_strided_slice %315 {offsets = [0, 0], sizes = [2, 32], strides = [1, 1]} : vector<2x96xf32> to vector<2x32xf32>
    %319 = vector.extract_strided_slice %315 {offsets = [0, 32], sizes = [2, 32], strides = [1, 1]} : vector<2x96xf32> to vector<2x32xf32>
    %320 = vector.extract_strided_slice %315 {offsets = [0, 64], sizes = [2, 32], strides = [1, 1]} : vector<2x96xf32> to vector<2x32xf32>
    %321 = arith.mulf %319, %240 : vector<2x32xf32>
    %322 = arith.mulf %318, %317 : vector<2x32xf32>
    %323 = arith.addf %321, %322 : vector<2x32xf32>
    %324 = math.tanh %323 : vector<2x32xf32>
    %325 = arith.mulf %320, %324 : vector<2x32xf32>
    %cst_79 = arith.constant dense<0.000000e+00> : vector<2x128xf32>
    %326 = tpu.matmul %284, %22, %cst_79 {dimension_numbers = #tpu.dot_dimension_numbers<[1], [0], [0], [1], [0, 0, 1, 1], [], []>} : vector<2x32xf32>, vector<32x128xf32>, vector<2x128xf32> -> vector<2x128xf32>
    %cst_80 = arith.constant dense<0.000000e+00> : vector<2x128xf32>
    %327 = tpu.matmul %263, %16, %cst_80 {dimension_numbers = #tpu.dot_dimension_numbers<[1], [0], [0], [1], [0, 0, 1, 1], [], []>} : vector<2x32xf32>, vector<32x128xf32>, vector<2x128xf32> -> vector<2x128xf32>
    %328 = arith.addf %326, %327 : vector<2x128xf32>
    %329 = vector.broadcast %28 : vector<1x128xf32> to vector<2x128xf32>
    %330 = arith.addf %328, %329 : vector<2x128xf32>
    %331 = vector.extract_strided_slice %330 {offsets = [0, 0], sizes = [2, 96], strides = [1, 1]} : vector<2x128xf32> to vector<2x96xf32>
    %332 = arith.negf %331 : vector<2x96xf32>
    %333 = math.exp %332 : vector<2x96xf32>
    %cst_81 = arith.constant 1.000000e+00 : f32
    %334 = vector.broadcast %cst_81 : f32 to vector<2x96xf32>
    %335 = arith.addf %334, %333 : vector<2x96xf32>
    %336 = arith.divf %334, %335 : vector<2x96xf32>
    %337 = vector.extract_strided_slice %330 {offsets = [0, 96], sizes = [2, 32], strides = [1, 1]} : vector<2x128xf32> to vector<2x32xf32>
    %338 = math.tanh %337 : vector<2x32xf32>
    %339 = vector.extract_strided_slice %336 {offsets = [0, 0], sizes = [2, 32], strides = [1, 1]} : vector<2x96xf32> to vector<2x32xf32>
    %340 = vector.extract_strided_slice %336 {offsets = [0, 32], sizes = [2, 32], strides = [1, 1]} : vector<2x96xf32> to vector<2x32xf32>
    %341 = vector.extract_strided_slice %336 {offsets = [0, 64], sizes = [2, 32], strides = [1, 1]} : vector<2x96xf32> to vector<2x32xf32>
    %342 = arith.mulf %340, %261 : vector<2x32xf32>
    %343 = arith.mulf %339, %338 : vector<2x32xf32>
    %344 = arith.addf %342, %343 : vector<2x32xf32>
    %345 = math.tanh %344 : vector<2x32xf32>
    %346 = arith.mulf %341, %345 : vector<2x32xf32>
    %cst_82 = arith.constant dense<0.000000e+00> : vector<2x128xf32>
    %347 = tpu.matmul %305, %20, %cst_82 {dimension_numbers = #tpu.dot_dimension_numbers<[1], [0], [0], [1], [0, 0, 1, 1], [], []>} : vector<2x32xf32>, vector<32x128xf32>, vector<2x128xf32> -> vector<2x128xf32>
    %cst_83 = arith.constant dense<0.000000e+00> : vector<2x128xf32>
    %348 = tpu.matmul %284, %14, %cst_83 {dimension_numbers = #tpu.dot_dimension_numbers<[1], [0], [0], [1], [0, 0, 1, 1], [], []>} : vector<2x32xf32>, vector<32x128xf32>, vector<2x128xf32> -> vector<2x128xf32>
    %349 = arith.addf %347, %348 : vector<2x128xf32>
    %350 = vector.broadcast %26 : vector<1x128xf32> to vector<2x128xf32>
    %351 = arith.addf %349, %350 : vector<2x128xf32>
    %352 = vector.extract_strided_slice %351 {offsets = [0, 0], sizes = [2, 96], strides = [1, 1]} : vector<2x128xf32> to vector<2x96xf32>
    %353 = arith.negf %352 : vector<2x96xf32>
    %354 = math.exp %353 : vector<2x96xf32>
    %cst_84 = arith.constant 1.000000e+00 : f32
    %355 = vector.broadcast %cst_84 : f32 to vector<2x96xf32>
    %356 = arith.addf %355, %354 : vector<2x96xf32>
    %357 = arith.divf %355, %356 : vector<2x96xf32>
    %358 = vector.extract_strided_slice %351 {offsets = [0, 96], sizes = [2, 32], strides = [1, 1]} : vector<2x128xf32> to vector<2x32xf32>
    %359 = math.tanh %358 : vector<2x32xf32>
    %360 = vector.extract_strided_slice %357 {offsets = [0, 0], sizes = [2, 32], strides = [1, 1]} : vector<2x96xf32> to vector<2x32xf32>
    %361 = vector.extract_strided_slice %357 {offsets = [0, 32], sizes = [2, 32], strides = [1, 1]} : vector<2x96xf32> to vector<2x32xf32>
    %362 = vector.extract_strided_slice %357 {offsets = [0, 64], sizes = [2, 32], strides = [1, 1]} : vector<2x96xf32> to vector<2x32xf32>
    %363 = arith.mulf %361, %282 : vector<2x32xf32>
    %364 = arith.mulf %360, %359 : vector<2x32xf32>
    %365 = arith.addf %363, %364 : vector<2x32xf32>
    %366 = math.tanh %365 : vector<2x32xf32>
    %367 = arith.mulf %362, %366 : vector<2x32xf32>
    %cst_85 = arith.constant dense<0.000000e+00> : vector<2x128xf32>
    %368 = tpu.matmul %325, %18, %cst_85 {dimension_numbers = #tpu.dot_dimension_numbers<[1], [0], [0], [1], [0, 0, 1, 1], [], []>} : vector<2x32xf32>, vector<32x128xf32>, vector<2x128xf32> -> vector<2x128xf32>
    %cst_86 = arith.constant dense<0.000000e+00> : vector<2x128xf32>
    %369 = tpu.matmul %305, %12, %cst_86 {dimension_numbers = #tpu.dot_dimension_numbers<[1], [0], [0], [1], [0, 0, 1, 1], [], []>} : vector<2x32xf32>, vector<32x128xf32>, vector<2x128xf32> -> vector<2x128xf32>
    %370 = arith.addf %368, %369 : vector<2x128xf32>
    %371 = vector.broadcast %24 : vector<1x128xf32> to vector<2x128xf32>
    %372 = arith.addf %370, %371 : vector<2x128xf32>
    %373 = vector.extract_strided_slice %372 {offsets = [0, 0], sizes = [2, 96], strides = [1, 1]} : vector<2x128xf32> to vector<2x96xf32>
    %374 = arith.negf %373 : vector<2x96xf32>
    %375 = math.exp %374 : vector<2x96xf32>
    %cst_87 = arith.constant 1.000000e+00 : f32
    %376 = vector.broadcast %cst_87 : f32 to vector<2x96xf32>
    %377 = arith.addf %376, %375 : vector<2x96xf32>
    %378 = arith.divf %376, %377 : vector<2x96xf32>
    %379 = vector.extract_strided_slice %372 {offsets = [0, 96], sizes = [2, 32], strides = [1, 1]} : vector<2x128xf32> to vector<2x32xf32>
    %380 = math.tanh %379 : vector<2x32xf32>
    %381 = vector.extract_strided_slice %378 {offsets = [0, 0], sizes = [2, 32], strides = [1, 1]} : vector<2x96xf32> to vector<2x32xf32>
    %382 = vector.extract_strided_slice %378 {offsets = [0, 32], sizes = [2, 32], strides = [1, 1]} : vector<2x96xf32> to vector<2x32xf32>
    %383 = vector.extract_strided_slice %378 {offsets = [0, 64], sizes = [2, 32], strides = [1, 1]} : vector<2x96xf32> to vector<2x32xf32>
    %384 = arith.mulf %382, %303 : vector<2x32xf32>
    %385 = arith.mulf %381, %380 : vector<2x32xf32>
    %386 = arith.addf %384, %385 : vector<2x32xf32>
    %387 = math.tanh %386 : vector<2x32xf32>
    %388 = arith.mulf %383, %387 : vector<2x32xf32>
    %389 = vector.extract_strided_slice %8 {offsets = [5, 0, 0], sizes = [1, 2, 128], strides = [1, 1, 1]} : vector<8x2x128xf32> to vector<1x2x128xf32>
    %390 = vector.shape_cast %389 : vector<1x2x128xf32> to vector<2x128xf32>
    %cst_88 = arith.constant dense<0.000000e+00> : vector<2x128xf32>
    %391 = tpu.matmul %325, %10, %cst_88 {dimension_numbers = #tpu.dot_dimension_numbers<[1], [0], [0], [1], [0, 0, 1, 1], [], []>} : vector<2x32xf32>, vector<32x128xf32>, vector<2x128xf32> -> vector<2x128xf32>
    %392 = arith.addf %390, %391 : vector<2x128xf32>
    %393 = vector.extract_strided_slice %392 {offsets = [0, 0], sizes = [2, 96], strides = [1, 1]} : vector<2x128xf32> to vector<2x96xf32>
    %394 = arith.negf %393 : vector<2x96xf32>
    %395 = math.exp %394 : vector<2x96xf32>
    %cst_89 = arith.constant 1.000000e+00 : f32
    %396 = vector.broadcast %cst_89 : f32 to vector<2x96xf32>
    %397 = arith.addf %396, %395 : vector<2x96xf32>
    %398 = arith.divf %396, %397 : vector<2x96xf32>
    %399 = vector.extract_strided_slice %392 {offsets = [0, 96], sizes = [2, 32], strides = [1, 1]} : vector<2x128xf32> to vector<2x32xf32>
    %400 = math.tanh %399 : vector<2x32xf32>
    %401 = vector.extract_strided_slice %398 {offsets = [0, 0], sizes = [2, 32], strides = [1, 1]} : vector<2x96xf32> to vector<2x32xf32>
    %402 = vector.extract_strided_slice %398 {offsets = [0, 32], sizes = [2, 32], strides = [1, 1]} : vector<2x96xf32> to vector<2x32xf32>
    %403 = vector.extract_strided_slice %398 {offsets = [0, 64], sizes = [2, 32], strides = [1, 1]} : vector<2x96xf32> to vector<2x32xf32>
    %404 = arith.mulf %402, %323 : vector<2x32xf32>
    %405 = arith.mulf %401, %400 : vector<2x32xf32>
    %406 = arith.addf %404, %405 : vector<2x32xf32>
    %407 = math.tanh %406 : vector<2x32xf32>
    %408 = arith.mulf %403, %407 : vector<2x32xf32>
    %cst_90 = arith.constant dense<0.000000e+00> : vector<2x128xf32>
    %409 = tpu.matmul %367, %22, %cst_90 {dimension_numbers = #tpu.dot_dimension_numbers<[1], [0], [0], [1], [0, 0, 1, 1], [], []>} : vector<2x32xf32>, vector<32x128xf32>, vector<2x128xf32> -> vector<2x128xf32>
    %cst_91 = arith.constant dense<0.000000e+00> : vector<2x128xf32>
    %410 = tpu.matmul %346, %16, %cst_91 {dimension_numbers = #tpu.dot_dimension_numbers<[1], [0], [0], [1], [0, 0, 1, 1], [], []>} : vector<2x32xf32>, vector<32x128xf32>, vector<2x128xf32> -> vector<2x128xf32>
    %411 = arith.addf %409, %410 : vector<2x128xf32>
    %412 = vector.broadcast %28 : vector<1x128xf32> to vector<2x128xf32>
    %413 = arith.addf %411, %412 : vector<2x128xf32>
    %414 = vector.extract_strided_slice %413 {offsets = [0, 0], sizes = [2, 96], strides = [1, 1]} : vector<2x128xf32> to vector<2x96xf32>
    %415 = arith.negf %414 : vector<2x96xf32>
    %416 = math.exp %415 : vector<2x96xf32>
    %cst_92 = arith.constant 1.000000e+00 : f32
    %417 = vector.broadcast %cst_92 : f32 to vector<2x96xf32>
    %418 = arith.addf %417, %416 : vector<2x96xf32>
    %419 = arith.divf %417, %418 : vector<2x96xf32>
    %420 = vector.extract_strided_slice %413 {offsets = [0, 96], sizes = [2, 32], strides = [1, 1]} : vector<2x128xf32> to vector<2x32xf32>
    %421 = math.tanh %420 : vector<2x32xf32>
    %422 = vector.extract_strided_slice %419 {offsets = [0, 0], sizes = [2, 32], strides = [1, 1]} : vector<2x96xf32> to vector<2x32xf32>
    %423 = vector.extract_strided_slice %419 {offsets = [0, 32], sizes = [2, 32], strides = [1, 1]} : vector<2x96xf32> to vector<2x32xf32>
    %424 = vector.extract_strided_slice %419 {offsets = [0, 64], sizes = [2, 32], strides = [1, 1]} : vector<2x96xf32> to vector<2x32xf32>
    %425 = arith.mulf %423, %344 : vector<2x32xf32>
    %426 = arith.mulf %422, %421 : vector<2x32xf32>
    %427 = arith.addf %425, %426 : vector<2x32xf32>
    %428 = math.tanh %427 : vector<2x32xf32>
    %429 = arith.mulf %424, %428 : vector<2x32xf32>
    %cst_93 = arith.constant dense<0.000000e+00> : vector<2x128xf32>
    %430 = tpu.matmul %388, %20, %cst_93 {dimension_numbers = #tpu.dot_dimension_numbers<[1], [0], [0], [1], [0, 0, 1, 1], [], []>} : vector<2x32xf32>, vector<32x128xf32>, vector<2x128xf32> -> vector<2x128xf32>
    %cst_94 = arith.constant dense<0.000000e+00> : vector<2x128xf32>
    %431 = tpu.matmul %367, %14, %cst_94 {dimension_numbers = #tpu.dot_dimension_numbers<[1], [0], [0], [1], [0, 0, 1, 1], [], []>} : vector<2x32xf32>, vector<32x128xf32>, vector<2x128xf32> -> vector<2x128xf32>
    %432 = arith.addf %430, %431 : vector<2x128xf32>
    %433 = vector.broadcast %26 : vector<1x128xf32> to vector<2x128xf32>
    %434 = arith.addf %432, %433 : vector<2x128xf32>
    %435 = vector.extract_strided_slice %434 {offsets = [0, 0], sizes = [2, 96], strides = [1, 1]} : vector<2x128xf32> to vector<2x96xf32>
    %436 = arith.negf %435 : vector<2x96xf32>
    %437 = math.exp %436 : vector<2x96xf32>
    %cst_95 = arith.constant 1.000000e+00 : f32
    %438 = vector.broadcast %cst_95 : f32 to vector<2x96xf32>
    %439 = arith.addf %438, %437 : vector<2x96xf32>
    %440 = arith.divf %438, %439 : vector<2x96xf32>
    %441 = vector.extract_strided_slice %434 {offsets = [0, 96], sizes = [2, 32], strides = [1, 1]} : vector<2x128xf32> to vector<2x32xf32>
    %442 = math.tanh %441 : vector<2x32xf32>
    %443 = vector.extract_strided_slice %440 {offsets = [0, 0], sizes = [2, 32], strides = [1, 1]} : vector<2x96xf32> to vector<2x32xf32>
    %444 = vector.extract_strided_slice %440 {offsets = [0, 32], sizes = [2, 32], strides = [1, 1]} : vector<2x96xf32> to vector<2x32xf32>
    %445 = vector.extract_strided_slice %440 {offsets = [0, 64], sizes = [2, 32], strides = [1, 1]} : vector<2x96xf32> to vector<2x32xf32>
    %446 = arith.mulf %444, %365 : vector<2x32xf32>
    %447 = arith.mulf %443, %442 : vector<2x32xf32>
    %448 = arith.addf %446, %447 : vector<2x32xf32>
    %449 = math.tanh %448 : vector<2x32xf32>
    %450 = arith.mulf %445, %449 : vector<2x32xf32>
    %cst_96 = arith.constant dense<0.000000e+00> : vector<2x128xf32>
    %451 = tpu.matmul %408, %18, %cst_96 {dimension_numbers = #tpu.dot_dimension_numbers<[1], [0], [0], [1], [0, 0, 1, 1], [], []>} : vector<2x32xf32>, vector<32x128xf32>, vector<2x128xf32> -> vector<2x128xf32>
    %cst_97 = arith.constant dense<0.000000e+00> : vector<2x128xf32>
    %452 = tpu.matmul %388, %12, %cst_97 {dimension_numbers = #tpu.dot_dimension_numbers<[1], [0], [0], [1], [0, 0, 1, 1], [], []>} : vector<2x32xf32>, vector<32x128xf32>, vector<2x128xf32> -> vector<2x128xf32>
    %453 = arith.addf %451, %452 : vector<2x128xf32>
    %454 = vector.broadcast %24 : vector<1x128xf32> to vector<2x128xf32>
    %455 = arith.addf %453, %454 : vector<2x128xf32>
    %456 = vector.extract_strided_slice %455 {offsets = [0, 0], sizes = [2, 96], strides = [1, 1]} : vector<2x128xf32> to vector<2x96xf32>
    %457 = arith.negf %456 : vector<2x96xf32>
    %458 = math.exp %457 : vector<2x96xf32>
    %cst_98 = arith.constant 1.000000e+00 : f32
    %459 = vector.broadcast %cst_98 : f32 to vector<2x96xf32>
    %460 = arith.addf %459, %458 : vector<2x96xf32>
    %461 = arith.divf %459, %460 : vector<2x96xf32>
    %462 = vector.extract_strided_slice %455 {offsets = [0, 96], sizes = [2, 32], strides = [1, 1]} : vector<2x128xf32> to vector<2x32xf32>
    %463 = math.tanh %462 : vector<2x32xf32>
    %464 = vector.extract_strided_slice %461 {offsets = [0, 0], sizes = [2, 32], strides = [1, 1]} : vector<2x96xf32> to vector<2x32xf32>
    %465 = vector.extract_strided_slice %461 {offsets = [0, 32], sizes = [2, 32], strides = [1, 1]} : vector<2x96xf32> to vector<2x32xf32>
    %466 = vector.extract_strided_slice %461 {offsets = [0, 64], sizes = [2, 32], strides = [1, 1]} : vector<2x96xf32> to vector<2x32xf32>
    %467 = arith.mulf %465, %386 : vector<2x32xf32>
    %468 = arith.mulf %464, %463 : vector<2x32xf32>
    %469 = arith.addf %467, %468 : vector<2x32xf32>
    %470 = math.tanh %469 : vector<2x32xf32>
    %471 = arith.mulf %466, %470 : vector<2x32xf32>
    %472 = vector.extract_strided_slice %8 {offsets = [6, 0, 0], sizes = [1, 2, 128], strides = [1, 1, 1]} : vector<8x2x128xf32> to vector<1x2x128xf32>
    %473 = vector.shape_cast %472 : vector<1x2x128xf32> to vector<2x128xf32>
    %cst_99 = arith.constant dense<0.000000e+00> : vector<2x128xf32>
    %474 = tpu.matmul %408, %10, %cst_99 {dimension_numbers = #tpu.dot_dimension_numbers<[1], [0], [0], [1], [0, 0, 1, 1], [], []>} : vector<2x32xf32>, vector<32x128xf32>, vector<2x128xf32> -> vector<2x128xf32>
    %475 = arith.addf %473, %474 : vector<2x128xf32>
    %476 = vector.extract_strided_slice %475 {offsets = [0, 0], sizes = [2, 96], strides = [1, 1]} : vector<2x128xf32> to vector<2x96xf32>
    %477 = arith.negf %476 : vector<2x96xf32>
    %478 = math.exp %477 : vector<2x96xf32>
    %cst_100 = arith.constant 1.000000e+00 : f32
    %479 = vector.broadcast %cst_100 : f32 to vector<2x96xf32>
    %480 = arith.addf %479, %478 : vector<2x96xf32>
    %481 = arith.divf %479, %480 : vector<2x96xf32>
    %482 = vector.extract_strided_slice %475 {offsets = [0, 96], sizes = [2, 32], strides = [1, 1]} : vector<2x128xf32> to vector<2x32xf32>
    %483 = math.tanh %482 : vector<2x32xf32>
    %484 = vector.extract_strided_slice %481 {offsets = [0, 0], sizes = [2, 32], strides = [1, 1]} : vector<2x96xf32> to vector<2x32xf32>
    %485 = vector.extract_strided_slice %481 {offsets = [0, 32], sizes = [2, 32], strides = [1, 1]} : vector<2x96xf32> to vector<2x32xf32>
    %486 = vector.extract_strided_slice %481 {offsets = [0, 64], sizes = [2, 32], strides = [1, 1]} : vector<2x96xf32> to vector<2x32xf32>
    %487 = arith.mulf %485, %406 : vector<2x32xf32>
    %488 = arith.mulf %484, %483 : vector<2x32xf32>
    %489 = arith.addf %487, %488 : vector<2x32xf32>
    %490 = math.tanh %489 : vector<2x32xf32>
    %491 = arith.mulf %486, %490 : vector<2x32xf32>
    %cst_101 = arith.constant dense<0.000000e+00> : vector<2x128xf32>
    %492 = tpu.matmul %450, %22, %cst_101 {dimension_numbers = #tpu.dot_dimension_numbers<[1], [0], [0], [1], [0, 0, 1, 1], [], []>} : vector<2x32xf32>, vector<32x128xf32>, vector<2x128xf32> -> vector<2x128xf32>
    %cst_102 = arith.constant dense<0.000000e+00> : vector<2x128xf32>
    %493 = tpu.matmul %429, %16, %cst_102 {dimension_numbers = #tpu.dot_dimension_numbers<[1], [0], [0], [1], [0, 0, 1, 1], [], []>} : vector<2x32xf32>, vector<32x128xf32>, vector<2x128xf32> -> vector<2x128xf32>
    %494 = arith.addf %492, %493 : vector<2x128xf32>
    %495 = vector.broadcast %28 : vector<1x128xf32> to vector<2x128xf32>
    %496 = arith.addf %494, %495 : vector<2x128xf32>
    %497 = vector.extract_strided_slice %496 {offsets = [0, 0], sizes = [2, 96], strides = [1, 1]} : vector<2x128xf32> to vector<2x96xf32>
    %498 = arith.negf %497 : vector<2x96xf32>
    %499 = math.exp %498 : vector<2x96xf32>
    %cst_103 = arith.constant 1.000000e+00 : f32
    %500 = vector.broadcast %cst_103 : f32 to vector<2x96xf32>
    %501 = arith.addf %500, %499 : vector<2x96xf32>
    %502 = arith.divf %500, %501 : vector<2x96xf32>
    %503 = vector.extract_strided_slice %496 {offsets = [0, 96], sizes = [2, 32], strides = [1, 1]} : vector<2x128xf32> to vector<2x32xf32>
    %504 = math.tanh %503 : vector<2x32xf32>
    %505 = vector.extract_strided_slice %502 {offsets = [0, 0], sizes = [2, 32], strides = [1, 1]} : vector<2x96xf32> to vector<2x32xf32>
    %506 = vector.extract_strided_slice %502 {offsets = [0, 32], sizes = [2, 32], strides = [1, 1]} : vector<2x96xf32> to vector<2x32xf32>
    %507 = vector.extract_strided_slice %502 {offsets = [0, 64], sizes = [2, 32], strides = [1, 1]} : vector<2x96xf32> to vector<2x32xf32>
    %508 = arith.mulf %506, %427 : vector<2x32xf32>
    %509 = arith.mulf %505, %504 : vector<2x32xf32>
    %510 = arith.addf %508, %509 : vector<2x32xf32>
    %511 = math.tanh %510 : vector<2x32xf32>
    %512 = arith.mulf %507, %511 : vector<2x32xf32>
    %cst_104 = arith.constant dense<0.000000e+00> : vector<2x128xf32>
    %513 = tpu.matmul %471, %20, %cst_104 {dimension_numbers = #tpu.dot_dimension_numbers<[1], [0], [0], [1], [0, 0, 1, 1], [], []>} : vector<2x32xf32>, vector<32x128xf32>, vector<2x128xf32> -> vector<2x128xf32>
    %cst_105 = arith.constant dense<0.000000e+00> : vector<2x128xf32>
    %514 = tpu.matmul %450, %14, %cst_105 {dimension_numbers = #tpu.dot_dimension_numbers<[1], [0], [0], [1], [0, 0, 1, 1], [], []>} : vector<2x32xf32>, vector<32x128xf32>, vector<2x128xf32> -> vector<2x128xf32>
    %515 = arith.addf %513, %514 : vector<2x128xf32>
    %516 = vector.broadcast %26 : vector<1x128xf32> to vector<2x128xf32>
    %517 = arith.addf %515, %516 : vector<2x128xf32>
    %518 = vector.extract_strided_slice %517 {offsets = [0, 0], sizes = [2, 96], strides = [1, 1]} : vector<2x128xf32> to vector<2x96xf32>
    %519 = arith.negf %518 : vector<2x96xf32>
    %520 = math.exp %519 : vector<2x96xf32>
    %cst_106 = arith.constant 1.000000e+00 : f32
    %521 = vector.broadcast %cst_106 : f32 to vector<2x96xf32>
    %522 = arith.addf %521, %520 : vector<2x96xf32>
    %523 = arith.divf %521, %522 : vector<2x96xf32>
    %524 = vector.extract_strided_slice %517 {offsets = [0, 96], sizes = [2, 32], strides = [1, 1]} : vector<2x128xf32> to vector<2x32xf32>
    %525 = math.tanh %524 : vector<2x32xf32>
    %526 = vector.extract_strided_slice %523 {offsets = [0, 0], sizes = [2, 32], strides = [1, 1]} : vector<2x96xf32> to vector<2x32xf32>
    %527 = vector.extract_strided_slice %523 {offsets = [0, 32], sizes = [2, 32], strides = [1, 1]} : vector<2x96xf32> to vector<2x32xf32>
    %528 = vector.extract_strided_slice %523 {offsets = [0, 64], sizes = [2, 32], strides = [1, 1]} : vector<2x96xf32> to vector<2x32xf32>
    %529 = arith.mulf %527, %448 : vector<2x32xf32>
    %530 = arith.mulf %526, %525 : vector<2x32xf32>
    %531 = arith.addf %529, %530 : vector<2x32xf32>
    %532 = math.tanh %531 : vector<2x32xf32>
    %533 = arith.mulf %528, %532 : vector<2x32xf32>
    %cst_107 = arith.constant dense<0.000000e+00> : vector<2x128xf32>
    %534 = tpu.matmul %491, %18, %cst_107 {dimension_numbers = #tpu.dot_dimension_numbers<[1], [0], [0], [1], [0, 0, 1, 1], [], []>} : vector<2x32xf32>, vector<32x128xf32>, vector<2x128xf32> -> vector<2x128xf32>
    %cst_108 = arith.constant dense<0.000000e+00> : vector<2x128xf32>
    %535 = tpu.matmul %471, %12, %cst_108 {dimension_numbers = #tpu.dot_dimension_numbers<[1], [0], [0], [1], [0, 0, 1, 1], [], []>} : vector<2x32xf32>, vector<32x128xf32>, vector<2x128xf32> -> vector<2x128xf32>
    %536 = arith.addf %534, %535 : vector<2x128xf32>
    %537 = vector.broadcast %24 : vector<1x128xf32> to vector<2x128xf32>
    %538 = arith.addf %536, %537 : vector<2x128xf32>
    %539 = vector.extract_strided_slice %538 {offsets = [0, 0], sizes = [2, 96], strides = [1, 1]} : vector<2x128xf32> to vector<2x96xf32>
    %540 = arith.negf %539 : vector<2x96xf32>
    %541 = math.exp %540 : vector<2x96xf32>
    %cst_109 = arith.constant 1.000000e+00 : f32
    %542 = vector.broadcast %cst_109 : f32 to vector<2x96xf32>
    %543 = arith.addf %542, %541 : vector<2x96xf32>
    %544 = arith.divf %542, %543 : vector<2x96xf32>
    %545 = vector.extract_strided_slice %538 {offsets = [0, 96], sizes = [2, 32], strides = [1, 1]} : vector<2x128xf32> to vector<2x32xf32>
    %546 = math.tanh %545 : vector<2x32xf32>
    %547 = vector.extract_strided_slice %544 {offsets = [0, 0], sizes = [2, 32], strides = [1, 1]} : vector<2x96xf32> to vector<2x32xf32>
    %548 = vector.extract_strided_slice %544 {offsets = [0, 32], sizes = [2, 32], strides = [1, 1]} : vector<2x96xf32> to vector<2x32xf32>
    %549 = vector.extract_strided_slice %544 {offsets = [0, 64], sizes = [2, 32], strides = [1, 1]} : vector<2x96xf32> to vector<2x32xf32>
    %550 = arith.mulf %548, %469 : vector<2x32xf32>
    %551 = arith.mulf %547, %546 : vector<2x32xf32>
    %552 = arith.addf %550, %551 : vector<2x32xf32>
    %553 = math.tanh %552 : vector<2x32xf32>
    %554 = arith.mulf %549, %553 : vector<2x32xf32>
    %555 = vector.extract_strided_slice %8 {offsets = [7, 0, 0], sizes = [1, 2, 128], strides = [1, 1, 1]} : vector<8x2x128xf32> to vector<1x2x128xf32>
    %556 = vector.shape_cast %555 : vector<1x2x128xf32> to vector<2x128xf32>
    %cst_110 = arith.constant dense<0.000000e+00> : vector<2x128xf32>
    %557 = tpu.matmul %491, %10, %cst_110 {dimension_numbers = #tpu.dot_dimension_numbers<[1], [0], [0], [1], [0, 0, 1, 1], [], []>} : vector<2x32xf32>, vector<32x128xf32>, vector<2x128xf32> -> vector<2x128xf32>
    %558 = arith.addf %556, %557 : vector<2x128xf32>
    %559 = vector.extract_strided_slice %558 {offsets = [0, 0], sizes = [2, 96], strides = [1, 1]} : vector<2x128xf32> to vector<2x96xf32>
    %560 = arith.negf %559 : vector<2x96xf32>
    %561 = math.exp %560 : vector<2x96xf32>
    %cst_111 = arith.constant 1.000000e+00 : f32
    %562 = vector.broadcast %cst_111 : f32 to vector<2x96xf32>
    %563 = arith.addf %562, %561 : vector<2x96xf32>
    %564 = arith.divf %562, %563 : vector<2x96xf32>
    %565 = vector.extract_strided_slice %558 {offsets = [0, 96], sizes = [2, 32], strides = [1, 1]} : vector<2x128xf32> to vector<2x32xf32>
    %566 = math.tanh %565 : vector<2x32xf32>
    %567 = vector.extract_strided_slice %564 {offsets = [0, 0], sizes = [2, 32], strides = [1, 1]} : vector<2x96xf32> to vector<2x32xf32>
    %568 = vector.extract_strided_slice %564 {offsets = [0, 32], sizes = [2, 32], strides = [1, 1]} : vector<2x96xf32> to vector<2x32xf32>
    %569 = vector.extract_strided_slice %564 {offsets = [0, 64], sizes = [2, 32], strides = [1, 1]} : vector<2x96xf32> to vector<2x32xf32>
    %570 = arith.mulf %568, %489 : vector<2x32xf32>
    %571 = arith.mulf %567, %566 : vector<2x32xf32>
    %572 = arith.addf %570, %571 : vector<2x32xf32>
    %573 = math.tanh %572 : vector<2x32xf32>
    %574 = arith.mulf %569, %573 : vector<2x32xf32>
    %cst_112 = arith.constant dense<0.000000e+00> : vector<2x128xf32>
    %575 = tpu.matmul %533, %22, %cst_112 {dimension_numbers = #tpu.dot_dimension_numbers<[1], [0], [0], [1], [0, 0, 1, 1], [], []>} : vector<2x32xf32>, vector<32x128xf32>, vector<2x128xf32> -> vector<2x128xf32>
    %cst_113 = arith.constant dense<0.000000e+00> : vector<2x128xf32>
    %576 = tpu.matmul %512, %16, %cst_113 {dimension_numbers = #tpu.dot_dimension_numbers<[1], [0], [0], [1], [0, 0, 1, 1], [], []>} : vector<2x32xf32>, vector<32x128xf32>, vector<2x128xf32> -> vector<2x128xf32>
    %577 = arith.addf %575, %576 : vector<2x128xf32>
    %578 = vector.broadcast %28 : vector<1x128xf32> to vector<2x128xf32>
    %579 = arith.addf %577, %578 : vector<2x128xf32>
    %580 = vector.extract_strided_slice %579 {offsets = [0, 0], sizes = [2, 96], strides = [1, 1]} : vector<2x128xf32> to vector<2x96xf32>
    %581 = arith.negf %580 : vector<2x96xf32>
    %582 = math.exp %581 : vector<2x96xf32>
    %cst_114 = arith.constant 1.000000e+00 : f32
    %583 = vector.broadcast %cst_114 : f32 to vector<2x96xf32>
    %584 = arith.addf %583, %582 : vector<2x96xf32>
    %585 = arith.divf %583, %584 : vector<2x96xf32>
    %586 = vector.extract_strided_slice %579 {offsets = [0, 96], sizes = [2, 32], strides = [1, 1]} : vector<2x128xf32> to vector<2x32xf32>
    %587 = math.tanh %586 : vector<2x32xf32>
    %588 = vector.extract_strided_slice %585 {offsets = [0, 0], sizes = [2, 32], strides = [1, 1]} : vector<2x96xf32> to vector<2x32xf32>
    %589 = vector.extract_strided_slice %585 {offsets = [0, 32], sizes = [2, 32], strides = [1, 1]} : vector<2x96xf32> to vector<2x32xf32>
    %590 = vector.extract_strided_slice %585 {offsets = [0, 64], sizes = [2, 32], strides = [1, 1]} : vector<2x96xf32> to vector<2x32xf32>
    %591 = arith.mulf %589, %510 : vector<2x32xf32>
    %592 = arith.mulf %588, %587 : vector<2x32xf32>
    %593 = arith.addf %591, %592 : vector<2x32xf32>
    %594 = math.tanh %593 : vector<2x32xf32>
    %595 = arith.mulf %590, %594 : vector<2x32xf32>
    %cst_115 = arith.constant dense<0.000000e+00> : vector<2x128xf32>
    %596 = tpu.matmul %554, %20, %cst_115 {dimension_numbers = #tpu.dot_dimension_numbers<[1], [0], [0], [1], [0, 0, 1, 1], [], []>} : vector<2x32xf32>, vector<32x128xf32>, vector<2x128xf32> -> vector<2x128xf32>
    %cst_116 = arith.constant dense<0.000000e+00> : vector<2x128xf32>
    %597 = tpu.matmul %533, %14, %cst_116 {dimension_numbers = #tpu.dot_dimension_numbers<[1], [0], [0], [1], [0, 0, 1, 1], [], []>} : vector<2x32xf32>, vector<32x128xf32>, vector<2x128xf32> -> vector<2x128xf32>
    %598 = arith.addf %596, %597 : vector<2x128xf32>
    %599 = vector.broadcast %26 : vector<1x128xf32> to vector<2x128xf32>
    %600 = arith.addf %598, %599 : vector<2x128xf32>
    %601 = vector.extract_strided_slice %600 {offsets = [0, 0], sizes = [2, 96], strides = [1, 1]} : vector<2x128xf32> to vector<2x96xf32>
    %602 = arith.negf %601 : vector<2x96xf32>
    %603 = math.exp %602 : vector<2x96xf32>
    %cst_117 = arith.constant 1.000000e+00 : f32
    %604 = vector.broadcast %cst_117 : f32 to vector<2x96xf32>
    %605 = arith.addf %604, %603 : vector<2x96xf32>
    %606 = arith.divf %604, %605 : vector<2x96xf32>
    %607 = vector.extract_strided_slice %600 {offsets = [0, 96], sizes = [2, 32], strides = [1, 1]} : vector<2x128xf32> to vector<2x32xf32>
    %608 = math.tanh %607 : vector<2x32xf32>
    %609 = vector.extract_strided_slice %606 {offsets = [0, 0], sizes = [2, 32], strides = [1, 1]} : vector<2x96xf32> to vector<2x32xf32>
    %610 = vector.extract_strided_slice %606 {offsets = [0, 32], sizes = [2, 32], strides = [1, 1]} : vector<2x96xf32> to vector<2x32xf32>
    %611 = vector.extract_strided_slice %606 {offsets = [0, 64], sizes = [2, 32], strides = [1, 1]} : vector<2x96xf32> to vector<2x32xf32>
    %612 = arith.mulf %610, %531 : vector<2x32xf32>
    %613 = arith.mulf %609, %608 : vector<2x32xf32>
    %614 = arith.addf %612, %613 : vector<2x32xf32>
    %615 = math.tanh %614 : vector<2x32xf32>
    %616 = arith.mulf %611, %615 : vector<2x32xf32>
    %cst_118 = arith.constant dense<0.000000e+00> : vector<2x128xf32>
    %617 = tpu.matmul %574, %18, %cst_118 {dimension_numbers = #tpu.dot_dimension_numbers<[1], [0], [0], [1], [0, 0, 1, 1], [], []>} : vector<2x32xf32>, vector<32x128xf32>, vector<2x128xf32> -> vector<2x128xf32>
    %cst_119 = arith.constant dense<0.000000e+00> : vector<2x128xf32>
    %618 = tpu.matmul %554, %12, %cst_119 {dimension_numbers = #tpu.dot_dimension_numbers<[1], [0], [0], [1], [0, 0, 1, 1], [], []>} : vector<2x32xf32>, vector<32x128xf32>, vector<2x128xf32> -> vector<2x128xf32>
    %619 = arith.addf %617, %618 : vector<2x128xf32>
    %620 = vector.broadcast %24 : vector<1x128xf32> to vector<2x128xf32>
    %621 = arith.addf %619, %620 : vector<2x128xf32>
    %622 = vector.extract_strided_slice %621 {offsets = [0, 0], sizes = [2, 96], strides = [1, 1]} : vector<2x128xf32> to vector<2x96xf32>
    %623 = arith.negf %622 : vector<2x96xf32>
    %624 = math.exp %623 : vector<2x96xf32>
    %cst_120 = arith.constant 1.000000e+00 : f32
    %625 = vector.broadcast %cst_120 : f32 to vector<2x96xf32>
    %626 = arith.addf %625, %624 : vector<2x96xf32>
    %627 = arith.divf %625, %626 : vector<2x96xf32>
    %628 = vector.extract_strided_slice %621 {offsets = [0, 96], sizes = [2, 32], strides = [1, 1]} : vector<2x128xf32> to vector<2x32xf32>
    %629 = math.tanh %628 : vector<2x32xf32>
    %630 = vector.extract_strided_slice %627 {offsets = [0, 0], sizes = [2, 32], strides = [1, 1]} : vector<2x96xf32> to vector<2x32xf32>
    %631 = vector.extract_strided_slice %627 {offsets = [0, 32], sizes = [2, 32], strides = [1, 1]} : vector<2x96xf32> to vector<2x32xf32>
    %632 = vector.extract_strided_slice %627 {offsets = [0, 64], sizes = [2, 32], strides = [1, 1]} : vector<2x96xf32> to vector<2x32xf32>
    %633 = arith.mulf %631, %552 : vector<2x32xf32>
    %634 = arith.mulf %630, %629 : vector<2x32xf32>
    %635 = arith.addf %633, %634 : vector<2x32xf32>
    %636 = math.tanh %635 : vector<2x32xf32>
    %637 = arith.mulf %632, %636 : vector<2x32xf32>
    %cst_121 = arith.constant dense<0.000000e+00> : vector<2x128xf32>
    %638 = tpu.matmul %616, %22, %cst_121 {dimension_numbers = #tpu.dot_dimension_numbers<[1], [0], [0], [1], [0, 0, 1, 1], [], []>} : vector<2x32xf32>, vector<32x128xf32>, vector<2x128xf32> -> vector<2x128xf32>
    %cst_122 = arith.constant dense<0.000000e+00> : vector<2x128xf32>
    %639 = tpu.matmul %595, %16, %cst_122 {dimension_numbers = #tpu.dot_dimension_numbers<[1], [0], [0], [1], [0, 0, 1, 1], [], []>} : vector<2x32xf32>, vector<32x128xf32>, vector<2x128xf32> -> vector<2x128xf32>
    %640 = arith.addf %638, %639 : vector<2x128xf32>
    %641 = vector.broadcast %28 : vector<1x128xf32> to vector<2x128xf32>
    %642 = arith.addf %640, %641 : vector<2x128xf32>
    %643 = vector.extract_strided_slice %642 {offsets = [0, 0], sizes = [2, 96], strides = [1, 1]} : vector<2x128xf32> to vector<2x96xf32>
    %644 = arith.negf %643 : vector<2x96xf32>
    %645 = math.exp %644 : vector<2x96xf32>
    %cst_123 = arith.constant 1.000000e+00 : f32
    %646 = vector.broadcast %cst_123 : f32 to vector<2x96xf32>
    %647 = arith.addf %646, %645 : vector<2x96xf32>
    %648 = arith.divf %646, %647 : vector<2x96xf32>
    %649 = vector.extract_strided_slice %642 {offsets = [0, 96], sizes = [2, 32], strides = [1, 1]} : vector<2x128xf32> to vector<2x32xf32>
    %650 = math.tanh %649 : vector<2x32xf32>
    %651 = vector.extract_strided_slice %648 {offsets = [0, 0], sizes = [2, 32], strides = [1, 1]} : vector<2x96xf32> to vector<2x32xf32>
    %652 = vector.extract_strided_slice %648 {offsets = [0, 32], sizes = [2, 32], strides = [1, 1]} : vector<2x96xf32> to vector<2x32xf32>
    %653 = vector.extract_strided_slice %648 {offsets = [0, 64], sizes = [2, 32], strides = [1, 1]} : vector<2x96xf32> to vector<2x32xf32>
    %654 = arith.mulf %652, %593 : vector<2x32xf32>
    %655 = arith.mulf %651, %650 : vector<2x32xf32>
    %656 = arith.addf %654, %655 : vector<2x32xf32>
    %657 = math.tanh %656 : vector<2x32xf32>
    %658 = arith.mulf %653, %657 : vector<2x32xf32>
    %cst_124 = arith.constant dense<0.000000e+00> : vector<2x128xf32>
    %659 = tpu.matmul %637, %20, %cst_124 {dimension_numbers = #tpu.dot_dimension_numbers<[1], [0], [0], [1], [0, 0, 1, 1], [], []>} : vector<2x32xf32>, vector<32x128xf32>, vector<2x128xf32> -> vector<2x128xf32>
    %cst_125 = arith.constant dense<0.000000e+00> : vector<2x128xf32>
    %660 = tpu.matmul %616, %14, %cst_125 {dimension_numbers = #tpu.dot_dimension_numbers<[1], [0], [0], [1], [0, 0, 1, 1], [], []>} : vector<2x32xf32>, vector<32x128xf32>, vector<2x128xf32> -> vector<2x128xf32>
    %661 = arith.addf %659, %660 : vector<2x128xf32>
    %662 = vector.broadcast %26 : vector<1x128xf32> to vector<2x128xf32>
    %663 = arith.addf %661, %662 : vector<2x128xf32>
    %664 = vector.extract_strided_slice %663 {offsets = [0, 0], sizes = [2, 96], strides = [1, 1]} : vector<2x128xf32> to vector<2x96xf32>
    %665 = arith.negf %664 : vector<2x96xf32>
    %666 = math.exp %665 : vector<2x96xf32>
    %cst_126 = arith.constant 1.000000e+00 : f32
    %667 = vector.broadcast %cst_126 : f32 to vector<2x96xf32>
    %668 = arith.addf %667, %666 : vector<2x96xf32>
    %669 = arith.divf %667, %668 : vector<2x96xf32>
    %670 = vector.extract_strided_slice %663 {offsets = [0, 96], sizes = [2, 32], strides = [1, 1]} : vector<2x128xf32> to vector<2x32xf32>
    %671 = math.tanh %670 : vector<2x32xf32>
    %672 = vector.extract_strided_slice %669 {offsets = [0, 0], sizes = [2, 32], strides = [1, 1]} : vector<2x96xf32> to vector<2x32xf32>
    %673 = vector.extract_strided_slice %669 {offsets = [0, 32], sizes = [2, 32], strides = [1, 1]} : vector<2x96xf32> to vector<2x32xf32>
    %674 = vector.extract_strided_slice %669 {offsets = [0, 64], sizes = [2, 32], strides = [1, 1]} : vector<2x96xf32> to vector<2x32xf32>
    %675 = arith.mulf %673, %614 : vector<2x32xf32>
    %676 = arith.mulf %672, %671 : vector<2x32xf32>
    %677 = arith.addf %675, %676 : vector<2x32xf32>
    %678 = math.tanh %677 : vector<2x32xf32>
    %679 = arith.mulf %674, %678 : vector<2x32xf32>
    %cst_127 = arith.constant dense<0.000000e+00> : vector<2x128xf32>
    %680 = tpu.matmul %679, %22, %cst_127 {dimension_numbers = #tpu.dot_dimension_numbers<[1], [0], [0], [1], [0, 0, 1, 1], [], []>} : vector<2x32xf32>, vector<32x128xf32>, vector<2x128xf32> -> vector<2x128xf32>
    %cst_128 = arith.constant dense<0.000000e+00> : vector<2x128xf32>
    %681 = tpu.matmul %658, %16, %cst_128 {dimension_numbers = #tpu.dot_dimension_numbers<[1], [0], [0], [1], [0, 0, 1, 1], [], []>} : vector<2x32xf32>, vector<32x128xf32>, vector<2x128xf32> -> vector<2x128xf32>
    %682 = arith.addf %680, %681 : vector<2x128xf32>
    %683 = vector.broadcast %28 : vector<1x128xf32> to vector<2x128xf32>
    %684 = arith.addf %682, %683 : vector<2x128xf32>
    %685 = vector.extract_strided_slice %684 {offsets = [0, 0], sizes = [2, 96], strides = [1, 1]} : vector<2x128xf32> to vector<2x96xf32>
    %686 = arith.negf %685 : vector<2x96xf32>
    %687 = math.exp %686 : vector<2x96xf32>
    %cst_129 = arith.constant 1.000000e+00 : f32
    %688 = vector.broadcast %cst_129 : f32 to vector<2x96xf32>
    %689 = arith.addf %688, %687 : vector<2x96xf32>
    %690 = arith.divf %688, %689 : vector<2x96xf32>
    %691 = vector.extract_strided_slice %684 {offsets = [0, 96], sizes = [2, 32], strides = [1, 1]} : vector<2x128xf32> to vector<2x32xf32>
    %692 = math.tanh %691 : vector<2x32xf32>
    %693 = vector.extract_strided_slice %690 {offsets = [0, 0], sizes = [2, 32], strides = [1, 1]} : vector<2x96xf32> to vector<2x32xf32>
    %694 = vector.extract_strided_slice %690 {offsets = [0, 32], sizes = [2, 32], strides = [1, 1]} : vector<2x96xf32> to vector<2x32xf32>
    %695 = vector.extract_strided_slice %690 {offsets = [0, 64], sizes = [2, 32], strides = [1, 1]} : vector<2x96xf32> to vector<2x32xf32>
    %696 = arith.mulf %694, %656 : vector<2x32xf32>
    %697 = arith.mulf %693, %692 : vector<2x32xf32>
    %698 = arith.addf %696, %697 : vector<2x32xf32>
    %699 = math.tanh %698 : vector<2x32xf32>
    %700 = arith.mulf %695, %699 : vector<2x32xf32>
    %701 = vector.shape_cast %180 : vector<2x32xf32> to vector<1x2x32xf32>
    %702 = vector.shape_cast %263 : vector<2x32xf32> to vector<1x2x32xf32>
    %703 = vector.shape_cast %346 : vector<2x32xf32> to vector<1x2x32xf32>
    %704 = vector.shape_cast %429 : vector<2x32xf32> to vector<1x2x32xf32>
    %705 = vector.shape_cast %512 : vector<2x32xf32> to vector<1x2x32xf32>
    %706 = vector.shape_cast %595 : vector<2x32xf32> to vector<1x2x32xf32>
    %707 = vector.shape_cast %658 : vector<2x32xf32> to vector<1x2x32xf32>
    %708 = vector.shape_cast %700 : vector<2x32xf32> to vector<1x2x32xf32>
    %709 = tpu.concatenate %701, %702, %703, %704, %705, %706, %707, %708 in 0 : vector<1x2x32xf32>, vector<1x2x32xf32>, vector<1x2x32xf32>, vector<1x2x32xf32>, vector<1x2x32xf32>, vector<1x2x32xf32>, vector<1x2x32xf32>, vector<1x2x32xf32> -> vector<8x2x32xf32>
    %710 = vector.shape_cast %709 : vector<8x2x32xf32> to vector<16x32xf32>
    %c0_130 = arith.constant 0 : index
    %c0_131 = arith.constant 0 : index
    %711 = vector.load %arg5[%c0_130, %c0_131] : memref<32x128xf32, #tpu.memory_space<vmem>>, vector<32x128xf32>
    %cst_132 = arith.constant dense<0.000000e+00> : vector<16x128xf32>
    %712 = tpu.matmul %710, %711, %cst_132 {dimension_numbers = #tpu.dot_dimension_numbers<[1], [0], [0], [1], [0, 0, 1, 1], [], []>} : vector<16x32xf32>, vector<32x128xf32>, vector<16x128xf32> -> vector<16x128xf32>
    %c0_133 = arith.constant 0 : index
    %c0_134 = arith.constant 0 : index
    %713 = vector.load %arg6[%c0_133, %c0_134] : memref<1x128xf32, #tpu.memory_space<vmem>>, vector<1x128xf32>
    %714 = vector.broadcast %713 : vector<1x128xf32> to vector<16x128xf32>
    %715 = arith.addf %712, %714 : vector<16x128xf32>
    %716 = vector.shape_cast %715 : vector<16x128xf32> to vector<8x2x128xf32>
    %c0_135 = arith.constant 0 : index
    %c0_136 = arith.constant 0 : index
    %c0_137 = arith.constant 0 : index
    %717 = vector.load %arg7[%c0_135, %c0_136, %c0_137] : memref<8x2x128xf32, #tpu.memory_space<vmem>>, vector<8x2x128xf32>
    tpu.vector_store %arg7[%c0_135, %c0_136, %c0_137], %716 {strides = array<i32>} : memref<8x2x128xf32, #tpu.memory_space<vmem>>, vector<8x2x128xf32>,
    return
  }
}

</mosaic_0001>

<bundles_post_ra>
// kernel: tpu_custom_call.1
= control target key start
LH: loop header
LB: loop body
LE: loop exit
PB: predicated region body
PF: predicated region fallthrough
CT: control target
= control target key end

     0   :  { %12 = vsyncpa [#allocation3], 0  ;;  %s8240_s0 = inlined_call_operand.hbm [shape: f32[8,2,50], index: 0, kind: input, shape index: {}]   ;;  %s8241_s1 = inlined_call_operand.hbm [shape: f32[50,128], index: 1, kind: input, shape index: {}]   ;;  %s8242_s2 = inlined_call_operand.hbm [shape: f32[3,32,128], index: 2, kind: input, shape index: {}]   ;;  %s8243_s3 = inlined_call_operand.hbm [shape: f32[4,32,128], index: 3, kind: input, shape index: {}]   ;;  %s8244_s4 = inlined_call_operand.vmem [shape: f32[4,1,128], index: 4, kind: input, shape index: {}]   ;;  %s8245_s5 = inlined_call_operand.hbm [shape: f32[32,128], index: 5, kind: input, shape index: {}]   ;;  %s8246_s6 = inlined_call_operand.vmem [shape: f32[1,128], index: 6, kind: input, shape index: {}]   ;;  %s8247_s7 = inlined_call_operand.hbm [shape: f32[8,2,128], index: 7, kind: output, shape index: {}]  }
   0x1   :  { %13 = vsyncpa [#allocation6], 0 }
   0x2   :  { %14 = vsyncpa [#allocation9], 0 }
   0x3   :  { %15 = vsyncpa [#allocation4], 0  ;;  %s7289_s24 = smov [#allocation5]   ;;  %s7149_s28 = scalar_lea.hbm %s8241_s1, 896 }
   0x4   :  { %s33_s25 = sshll.u32 %s7289_s24, 4  ;;  %p7150_p0 = scmp.ne.s32.totalorder %s8241_s1, %s7149_s28  ;;  %s34_s25 = int_to_ptr.vmem [resolvable:$true] %s33_s25 }
   0x5   :  { %p7153_p1 = scmp.lt.u32.totalorder %s7149_s28, %s8241_s1 }
   0x7   :  { %p7155_p2 = pnand %p7153_p1, %p7150_p0 }
   0x9   :  { %7158 = shalt.err (!%p7155_p2)
}
   0xa   :  { %s7159_s10 = scalar_lea.vmem %s34_s25, 896  ;;  %p7164_p4 = scmp.lt.s32.totalorder %s34_s25, %s34_s25 }
   0xb   :  { %p7160_p3 = scmp.ne.s32.totalorder %s34_s25, %s7159_s10  ;;  %p7165_p5 = scmp.lt.s32.totalorder %s7159_s10, %s7159_s10 }
   0xd   :  { %p7166_p6 = por %p7165_p5, %p7164_p4 }
   0xf   :  { %p7167_p7 = pnand %p7166_p6, %p7160_p3 }
  0x11   :  { %7170 = shalt.err (!%p7167_p7)
}
  0x12   :  { %s7290_s11 = smov 128   ;;  %s7291_s12 = smov 8  }
  0x13   :  { %39 = dma.hbm_to_vmem [thread:$0]  %s8241_s1, 896, %s34_s25, [#allocation6], %s7290_s11, %s7290_s11, %s7291_s12  }
  0x14   :  { %s7292_s15 = smov [#allocation8]   ;;  %s7293_s17 = smov [#allocation2]  }
  0x15   :  { %s57_s16 = sshll.u32 %s7292_s15, 4  ;;  %s21_s18 = sshll.u32 %s7293_s17, 4  ;;  %s58_s16 = int_to_ptr.vmem [resolvable:$true] %s57_s16  ;;  %s22_s18 = int_to_ptr.vmem [resolvable:$true] %s21_s18 }
  0x16   :  { %s7171_s21 = scalar_lea.hbm %s8243_s3, 2048 }
  0x17   :  { %p7172_p8 = scmp.ne.s32.totalorder %s8243_s3, %s7171_s21  ;;  %p7175_p9 = scmp.lt.u32.totalorder %s7171_s21, %s8243_s3 }
  0x19   :  { %p7177_p10 = pnand %p7175_p9, %p7172_p8 }
  0x1b   :  { %7180 = shalt.err (!%p7177_p10)
}
  0x1c   :  { %s7181_s1 = scalar_lea.vmem %s58_s16, 2048  ;;  %p7186_p12 = scmp.lt.s32.totalorder %s58_s16, %s58_s16 }
  0x1d   :  { %p7182_p11 = scmp.ne.s32.totalorder %s58_s16, %s7181_s1  ;;  %p7187_p13 = scmp.lt.s32.totalorder %s7181_s1, %s7181_s1 }
  0x1f   :  { %p7188_p0 = por %p7187_p13, %p7186_p12 }
  0x21   :  { %p7189_p1 = pnand %p7188_p0, %p7182_p11 }
  0x23   :  { %7192 = shalt.err (!%p7189_p1)
}
  0x24   :  { %63 = dma.hbm_to_vmem [thread:$0]  %s8243_s3, 2048, %s58_s16, [#allocation9], %s7290_s11, %s7290_s11, %s7291_s12  }
  0x25   :  { %s7193_s30 = scalar_lea.hbm %s8240_s0, 256 }
  0x26   :  { %p7194_p2 = scmp.ne.s32.totalorder %s8240_s0, %s7193_s30  ;;  %p7197_p3 = scmp.lt.u32.totalorder %s7193_s30, %s8240_s0 }
  0x28   :  { %p7199_p4 = pnand %p7197_p3, %p7194_p2 }
  0x2a   :  { %7202 = shalt.err (!%p7199_p4)
}
  0x2b   :  { %s7203_s14 = scalar_lea.vmem %s22_s18, 256  ;;  %p7208_p6 = scmp.lt.s32.totalorder %s22_s18, %s22_s18 }
  0x2c   :  { %p7204_p5 = scmp.ne.s32.totalorder %s22_s18, %s7203_s14  ;;  %p7209_p7 = scmp.lt.s32.totalorder %s7203_s14, %s7203_s14 }
  0x2e   :  { %p7210_p8 = por %p7209_p7, %p7208_p6 }
  0x30   :  { %p7211_p9 = pnand %p7210_p8, %p7204_p5 }
  0x32   :  { %7214 = shalt.err (!%p7211_p9)
}
  0x33   :  { %s7294_s3 = smov 32   ;;  %s7295_s15 = smov 2  }
  0x34   :  { %27 = dma.hbm_to_vmem [thread:$0]  %s8240_s0, 256, %s22_s18, [#allocation3], %s7294_s3, %s7294_s3, %s7295_s15  }
  0x35   :  { %s7296_s19 = smov [#allocation7]   ;;  %s7297_s21 = smov [#allocation10]  }
  0x36   :  { %s45_s20 = sshll.u32 %s7296_s19, 4  ;;  %s71_s22 = sshll.u32 %s7297_s21, 4  ;;  %s46_s20 = int_to_ptr.vmem [resolvable:$true] %s45_s20  ;;  %s72_s22 = int_to_ptr.vmem [resolvable:$true] %s71_s22 }
  0x37   :  { %s7215_s26 = scalar_lea.hbm %s8242_s2, 1536 }
  0x38   :  { %p7216_p10 = scmp.ne.s32.totalorder %s8242_s2, %s7215_s26  ;;  %p7219_p11 = scmp.lt.u32.totalorder %s7215_s26, %s8242_s2 }
  0x3a   :  { %p7221_p12 = pnand %p7219_p11, %p7216_p10 }
  0x3c   :  { %7224 = shalt.err (!%p7221_p12)
}
  0x3d   :  { %s7225_s0 = scalar_lea.vmem %s46_s20, 1536  ;;  %p7230_p0 = scmp.lt.s32.totalorder %s46_s20, %s46_s20 }
  0x3e   :  { %p7226_p13 = scmp.ne.s32.totalorder %s46_s20, %s7225_s0  ;;  %p7231_p1 = scmp.lt.s32.totalorder %s7225_s0, %s7225_s0 }
  0x40   :  { %p7232_p2 = por %p7231_p1, %p7230_p0 }
  0x42   :  { %p7233_p3 = pnand %p7232_p2, %p7226_p13 }
  0x44   :  { %7236 = shalt.err (!%p7233_p3)
}
  0x45   :  { %51 = dma.hbm_to_vmem [thread:$0]  %s8242_s2, 1536, %s46_s20, [#allocation6], %s7290_s11, %s7290_s11, %s7291_s12  }
  0x46   :  { %s7237_s9 = scalar_lea.hbm %s8245_s5, 512 }
  0x47   :  { %p7238_p4 = scmp.ne.s32.totalorder %s8245_s5, %s7237_s9  ;;  %p7241_p5 = scmp.lt.u32.totalorder %s7237_s9, %s8245_s5 }
  0x49   :  { %p7243_p6 = pnand %p7241_p5, %p7238_p4 }
  0x4b   :  { %7246 = shalt.err (!%p7243_p6)
}
  0x4c   :  { %s7247_s17 = scalar_lea.vmem %s72_s22, 512  ;;  %p7252_p8 = scmp.lt.s32.totalorder %s72_s22, %s72_s22 }
  0x4d   :  { %p7248_p7 = scmp.ne.s32.totalorder %s72_s22, %s7247_s17  ;;  %p7253_p9 = scmp.lt.s32.totalorder %s7247_s17, %s7247_s17 }
  0x4f   :  { %p7254_p10 = por %p7253_p9, %p7252_p8 }
  0x51   :  { %p7255_p11 = pnand %p7254_p10, %p7248_p7 }
  0x53   :  { %7258 = shalt.err (!%p7255_p11)
}
  0x54   :  { %77 = dma.hbm_to_vmem [thread:$0]  %s8245_s5, 512, %s72_s22, [#allocation9], %s7290_s11, %s7290_s11, %s7291_s12  }
  0x55   :  { %7281 = dma.done.wait [#allocation3], 256  }
  0x56   :  { %7282 = vsyncadd [#allocation3], 4294967040 }
  0x57   :  { %7283 = dma.done.wait [#allocation6], 2432  }
  0x58   :  { %7284 = vsyncadd [#allocation6], 4294964864 }
  0x59   :  { %7285 = dma.done.wait [#allocation9], 2560  }
  0x5a   :  { %7286 = vsyncadd [#allocation9], 4294964736  ;;  %v7298_v0 = vmov 0.0|0.0   ;;  %v7299_v1 = vmov 1983009808   ;;  %v130_v3 = vlaneseq  ;;  %vm7300_vm0 = vmmov 0  }
  0x5b   :  { %6531 = vmatprep.subr.bf16.mxu1 %v7298_v0  ;;  %v128_v2 = vunpack.c.l.s4 %v7299_v1  ;;  %v7301_v4 = vmov 0.0   ;;  %v103_v7 = vld [vmem:[#allocation5] sm:$0xff]  ;;  %v104_v8 = vld [vmem:[#allocation5 + $0x8] sm:$0xff]  ;;  %v105_v9 = vld [vmem:[#allocation5 + $0x10] sm:$0xff]  ;;  %vm159_vm1 = vcmask 408576   ;;  %vm164_vm2 = vcmask 1041408  }
  0x5c   :  { %5900 = vmatprep.mubr.msk.f32.mxu1 %vm7300_vm0, %v7301_v4  ;;  %v131_v6 = vshrl.u32 %v130_v3, 7  ;;  %v6519_v10 = vpack.c.bf16 %v104_v8, %v103_v7  ;;  %v106_v11 = vld [vmem:[#allocation5 + $0x18] sm:$0xff]  ;;  %v107_v12 = vld [vmem:[#allocation5 + $0x20] sm:$0xff]  ;;  %v108_v14 = vld [vmem:[#allocation5 + $0x28] sm:$0xff]  ;;  %s7302_s12 = smov 64   ;;  %vm326_vm3 = vcmask 261120  }
  0x5d   :  { %v129_v5 = vunpack.c.0.s8 %v128_v2  ;;  %v6523_v13 = vpack.c.bf16 %v106_v11, %v105_v9  ;;  %v287_v15 = vld [vmem:[#allocation8] sm:$0xff]  ;;  %v288_v16 = vld [vmem:[#allocation8 + $0x8] sm:$0xff]  ;;  %v95_v19 = vld [vmem:[#allocation2] sm:$0x3]  ;;  %v6527_v26 = vpack.c.bf16 %v108_v14, %v107_v12  ;;  %s7303_s30 = smov [#allocation11]  }
  0x5e   :  { %6520 = vmatprep.subr.bf16.mxu0 %v6519_v10  ;;  %v7424_v18 = vpack.c.bf16 %v288_v16, %v287_v15  ;;  %v96_v20 = vld [vmem:[#allocation2 + $0x2] sm:$0x3]  ;;  %v97_v21 = vld [vmem:[#allocation2 + $0x4] sm:$0x3]  ;;  %v98_v22 = vld [vmem:[#allocation2 + $0x6] sm:$0x3] }
  0x5f   :  { %v7422_v17 = vsub.s32 %v129_v5, %v131_v6  ;;  %6522 = vmatpush3.bf16.msra.mxu0 %v6519_v10  ;;  %v125_v23 = vcombine.low %v95_v19, %v96_v20  ;;  %v99_v24 = vld [vmem:[#allocation2 + $0x8] sm:$0x3]  ;;  %v100_v25 = vld [vmem:[#allocation2 + $0xa] sm:$0x3]  ;;  %v126_v27 = vcombine.low %v97_v21, %v98_v22  ;;  %v101_v28 = vld [vmem:[#allocation2 + $0xc] sm:$0x3] }
  0x60   :  { %6524 = vmatprep.subr.bf16.mxu0 %v6523_v13  ;;  %6533 = vmatpush3.bf16.msra.mxu1 %v7424_v18  ;;  %v102_v29 = vld [vmem:[#allocation2 + $0xe] sm:$0x3]  ;;  %v142_v30 = vcombine.low %v99_v24, %v100_v25  ;;  %v289_v31 = vld [vmem:[#allocation8 + $0x10] sm:$0xff]  ;;  %v290_v34 = vld [vmem:[#allocation8 + $0x18] sm:$0xff]  ;;  %s5465_s8 = sshll.u32 %s7303_s30, 4  ;;  %s5466_s8 = int_to_ptr.vmem [resolvable:$true] %s5465_s8 }
  0x61   :  { %v133_v32 = vrot.slane %v125_v23, %v7422_v17  ;;  %v143_v33 = vcombine.low %v101_v28, %v102_v29  ;;  %6534 = vmatprep.subr.bf16.mxu1 %v7298_v0  ;;  %v140_v35 = vrot.slane %v126_v27, %v7422_v17  ;;  %v7430_v36 = vpack.c.bf16 %v290_v34, %v289_v31  ;;  %v109_v40 = vld [vmem:[#allocation5 + $0x30] sm:$0x3]  ;;  %v292_v61 = vld [vmem:[#allocation8 + $0x20] sm:$0xff]  ;;  %v293_v62 = vld [vmem:[#allocation8 + $0x28] sm:$0xff]  ;;  %p7264_p13 = scmp.lt.s32.totalorder %s5466_s8, %s5466_s8 }
  0x62   :  { %v150_v38 = vrot.slane %v142_v30, %v7422_v17  ;;  %v5479_v44 = vld [vmem:[%s8244_s4] ss:$0 sm:$0xff]  ;;  %v294_v63 = vld [vmem:[#allocation8 + $0x30] sm:$0xff]  ;;  %v7461_v1 = vpack.c.bf16 %v293_v62, %v292_v61  ;;  %v306_v3 = vld [vmem:[#allocation7] sm:$0xff] }
  0x63   :  { %6526 = vmatpush3.bf16.msra.mxu0 %v6523_v13  ;;  %v141_v37 = vcombine.low %v133_v32, %v140_v35  ;;  %v157_v39 = vrot.slane %v143_v33, %v7422_v17  ;;  %v295_v2 = vld [vmem:[#allocation8 + $0x38] sm:$0xff]  ;;  %v307_v5 = vld [vmem:[#allocation7 + $0x8] sm:$0xff]  ;;  %v308_v7 = vld [vmem:[#allocation7 + $0x10] sm:$0xff] }
  0x64   :  { %6528 = vmatprep.subr.bf16.mxu0 %v6527_v26  ;;  %6536 = vmatpush3.bf16.msra.mxu1 %v7430_v36  ;;  %v7463_v6 = vpack.c.bf16 %v307_v5, %v306_v3  ;;  %v309_v8 = vld [vmem:[#allocation7 + $0x18] sm:$0xff]  ;;  %v7466_v9 = vpack.c.bf16 %v295_v2, %v294_v63 }
  0x65   :  { %6537 = vmatprep.subr.bf16.mxu1 %v7298_v0  ;;  %5889 = vmatprep.mubr.msk.f32.mxu0 %vm159_vm1, %v141_v37  ;;  %v158_v41 = vcombine.low %v150_v38, %v157_v39  ;;  %v7470_v10 = vpack.c.bf16 %v309_v8, %v308_v7  ;;  %v7498_v21 = vld [vmem:[%s8244_s4 + $0x1] ss:$0 sm:$0xff] }
  0x66   :  { %v314_v61 = vld [vmem:[#allocation7 + $0x38] sm:$0xff] }
  0x67   :  { %6530 = vmatpush3.bf16.msra.mxu0 %v6527_v26  ;;  %5901 = vmatmul.mubr.f32.vlgmr.msra.gmra.mrb[0].mxu1 %v7301_v4 }
  0x68   :  { %5887 = vmatprep.subr.msk.mxu0 %vm164_vm2, %v109_v40  ;;  %5911 = vmatprep.mubr.msk.f32.mxu1 %vm7300_vm0, %v7301_v4 }
  0x69   :  { %6539 = vmatpush3.bf16.msra.mxu1 %v7461_v1 }
  0x6a   :  { %6540 = vmatprep.subr.bf16.mxu1 %v7298_v0 }
  0x6b   :  { %5888 = vmatpush3.msk.msra.mxu0 %vm164_vm2, %v109_v40 }
  0x6c   :  { %5890 = vmatmul.mubr.msk.f32.vlgmr.msra.gmra.mrb[0].mxu0 %vm159_vm1, %v158_v41  ;;  %6543 = vmatprep.subr.bf16.mxu0 %v7298_v0 }
  0x6d   :  { %5922 = vmatprep.mubr.msk.f32.mxu0 %vm7300_vm0, %v7301_v4  ;;  %6545 = vmatpush3.bf16.msra.mxu0 %v7463_v6 }
  0x6e   :  { %6546 = vmatprep.subr.bf16.mxu0 %v7298_v0  ;;  %6542 = vmatpush3.bf16.msra.mxu1 %v7466_v9 }
  0x6f   :  { %6549 = vmatprep.subr.bf16.mxu1 %v7298_v0 }
  0x71   :  { %6548 = vmatpush3.bf16.msra.mxu0 %v7470_v10  ;;  %5912 = vmatmul.mubr.f32.vlgmr.msra.gmra.mrb[2].mxu1 %v7301_v4 }
  0x72   :  { %6555 = vmatprep.subr.bf16.mxu0 %v7298_v0  ;;  %6551 = vmatpush3.bf16.msra.mxu1 %v7424_v18 }
  0x73   :  { %5933 = vmatprep.mubr.msk.f32.mxu1 %vm7300_vm0, %v7301_v4  ;;  %6552 = vmatprep.subr.bf16.mxu1 %v7298_v0 }
  0x76   :  { %6554 = vmatpush3.bf16.msra.mxu1 %v7430_v36 }
  0x77   :  { %6561 = vmatprep.subr.bf16.mxu1 %v7298_v0 }
 0x13a   :  { %v396_v42 = vpop.f32.mrb[0].mxu1 }
 0x13b   :  { %v5902_v43 = vpop.f32.mrb[1].mxu1 }
 0x13f   :  { %v5891_v45 = vpop.f32.mrb[0].mxu0 }
 0x140   :  { %v7447_v46 = vadd.f32 %v5891_v45, %v5479_v44  ;;  %v234_v47 = vpop.f32.mrb[1].mxu0 }
 0x141   :  { %v7449_v48 = vadd.f32 %v5479_v44, %v234_v47 }
 0x143   :  { %v7453_v49 = vrot.slane %v7449_v48, %v7422_v17 }
 0x144   :  { %v491_v15 = vpop.f32.mrb[2].mxu1 }
 0x145   :  { %v400_v50 = vadd.f32 %v396_v42, %v7453_v49  ;;  %v5913_v16 = vpop.f32.mrb[3].mxu1  ;;  %v260_v20 = vcombine.high %v7453_v49, %v7453_v49 }
 0x147   :  { %6890 = vtanh.f32 %v400_v50  ;;  %v5486_v52 = vmul.f32 -1.442695, %v400_v50 }
 0x149   :  { %6892 = vpow2.f32 %v5486_v52  ;;  %v297_v52 = vld [vmem:[#allocation8 + $0x40] sm:$0xff] }
 0x151   :  { %v6891_v51 = vpop.eup %6890 }
 0x152   :  { %410 = vrot.lane.b32.xlu0 %v6891_v51, %s7294_s3 }
 0x153   :  { %v6893_v53 = vpop.eup %6892 }
 0x154   :  { %v404_v54 = vadd.f32 1.0, %v6893_v53  ;;  %v298_v53 = vld [vmem:[#allocation8 + $0x48] sm:$0xff] }
 0x156   :  { %6894 = vrcp.f32 %v404_v54  ;;  %v299_v54 = vld [vmem:[#allocation8 + $0x50] sm:$0xff] }
 0x160   :  { %v6895_v55 = vpop.eup %6894 }
 0x161   :  { %v408_v58 = vmul.f32 0.0, %v6895_v55 }
 0x1c4   :  { %v411_v56 = vpop.permute.xlu0 %410 }
 0x1c5   :  { %v413_v57 = vmul.f32 %v6895_v55, %v411_v56  ;;  %v300_v56 = vld [vmem:[#allocation8 + $0x58] sm:$0xff] }
 0x1c6   :  { %v7517_v62 = vpack.c.bf16 %v300_v56, %v299_v54 }
 0x1c7   :  { %415 = vrot.lane.b32.xlu0 %v413_v57, %s7294_s3  ;;  %v311_v57 = vld [vmem:[#allocation7 + $0x20] sm:$0xff] }
 0x239   :  { %v416_v59 = vpop.permute.xlu0 %415 }
 0x23a   :  { %v7458_v60 = vadd.f32 %v416_v59, %v408_v58  ;;  %v312_v58 = vld [vmem:[#allocation7 + $0x28] sm:$0xff] }
 0x23b   :  { %v7514_v59 = vpack.c.bf16 %v312_v58, %v311_v57 }
 0x23c   :  { %6896 = vtanh.f32 %v7458_v60 }
 0x246   :  { %v6897_v11 = vpop.eup %6896 }
 0x247   :  { %421 = vrot.lane.b32.xlu1 %v6897_v11, %s7294_s3 }
 0x2b9   :  { %v422_v12 = vpop.permute.xlu1 %421 }
 0x2ba   :  { %v424_v13 = vmul.f32 %v6895_v55, %v422_v12  ;;  %v7512_v55 = vpack.c.bf16 %v298_v53, %v297_v52 }
 0x2bc   :  { %v502_v14 = vrot.slane %v424_v13, %v7422_v17 }
 0x2be   :  { %503 = vrot.lane.b32.xlu1 %v502_v14, %s7302_s12 }
 0x330   :  { %v504_v19 = vpop.permute.xlu1 %503 }
 0x331   :  { %5923 = vmatmul.mubr.msk.f32.vlgmr.msra.gmra.mrb[2].mxu0 %vm326_vm3, %v504_v19  ;;  %5934 = vmatmul.mubr.msk.f32.vlgmr.msra.gmra.mrb[4].mxu1 %vm326_vm3, %v504_v19  ;;  %v7563_v19 = vld [vmem:[%s8244_s4 + $0x2] ss:$0 sm:$0xff] }
 0x332   :  { %5944 = vmatprep.mubr.msk.f32.mxu0 %vm7300_vm0, %v7301_v4  ;;  %5955 = vmatprep.mubr.msk.f32.mxu1 %vm7300_vm0, %v7301_v4 }
 0x333   :  { %6557 = vmatpush3.bf16.msra.mxu0 %v7512_v55  ;;  %6563 = vmatpush3.bf16.msra.mxu1 %v7514_v59 }
 0x334   :  { %6558 = vmatprep.subr.bf16.mxu0 %v7298_v0  ;;  %6564 = vmatprep.subr.bf16.mxu1 %v7298_v0 }
 0x337   :  { %6560 = vmatpush3.bf16.msra.mxu0 %v7517_v62 }
 0x338   :  { %6567 = vmatprep.subr.bf16.mxu0 %v7298_v0 }
 0x33a   :  { %5945 = vmatmul.mubr.f32.vlgmr.msra.gmra.mrb[4].mxu0 %v7301_v4 }
 0x33b   :  { %6569 = vmatpush3.bf16.msra.mxu0 %v7461_v1  ;;  %5966 = vmatprep.mubr.msk.f32.mxu0 %vm7300_vm0, %v7301_v4 }
 0x33c   :  { %6570 = vmatprep.subr.bf16.mxu0 %v7298_v0 }
 0x33f   :  { %6572 = vmatpush3.bf16.msra.mxu0 %v7466_v9 }
 0x340   :  { %6579 = vmatprep.subr.bf16.mxu0 %v7298_v0 }
 0x404   :  { %v573_v22 = vpop.f32.mrb[2].mxu0  ;;  %v674_v23 = vpop.f32.mrb[4].mxu1 }
 0x405   :  { %v574_v24 = vadd.f32 %v573_v22, %v491_v15  ;;  %v678_v25 = vadd.f32 %v674_v23, %v260_v20  ;;  %v5924_v26 = vpop.f32.mrb[3].mxu0  ;;  %v5935_v27 = vpop.f32.mrb[5].mxu1 }
 0x406   :  { %v245_v26 = vcombine.high %v7449_v48, %v7449_v48 }
 0x407   :  { %v583_v28 = vadd.f32 %v7498_v21, %v574_v24  ;;  %6898 = vtanh.f32 %v678_v25  ;;  %v5491_v31 = vmul.f32 -1.442695, %v678_v25 }
 0x409   :  { %6900 = vtanh.f32 %v583_v28  ;;  %v5489_v32 = vmul.f32 -1.442695, %v583_v28  ;;  %v7569_v28 = vrot.slane %v245_v26, %v7422_v17 }
 0x40a   :  { %6902 = vpow2.f32 %v5491_v31 }
 0x40b   :  { %6904 = vpow2.f32 %v5489_v32 }
 0x40d   :  { %v769_v13 = vpop.f32.mrb[4].mxu0 }
 0x40e   :  { %v5946_v14 = vpop.f32.mrb[5].mxu0 }
 0x411   :  { %v6899_v29 = vpop.eup %6898 }
 0x412   :  { %688 = vrot.lane.b32.xlu1 %v6899_v29, %s7294_s3 }
 0x413   :  { %v6901_v30 = vpop.eup %6900 }
 0x414   :  { %593 = vrot.lane.b32.xlu0 %v6901_v30, %s7294_s3  ;;  %v6903_v33 = vpop.eup %6902 }
 0x415   :  { %v6905_v34 = vpop.eup %6904  ;;  %v682_v35 = vadd.f32 1.0, %v6903_v33 }
 0x416   :  { %v587_v37 = vadd.f32 1.0, %v6905_v34 }
 0x417   :  { %6906 = vrcp.f32 %v682_v35 }
 0x418   :  { %6908 = vrcp.f32 %v587_v37 }
 0x421   :  { %v6907_v38 = vpop.eup %6906 }
 0x422   :  { %v6909_v41 = vpop.eup %6908  ;;  %v686_v44 = vmul.f32 %v6907_v38, %v7458_v60  ;;  %v313_v60 = vld [vmem:[#allocation7 + $0x30] sm:$0xff] }
 0x423   :  { %v591_v49 = vmul.f32 0.0, %v6909_v41  ;;  %v7521_v63 = vpack.c.bf16 %v314_v61, %v313_v60 }
 0x425   :  { %6566 = vmatpush3.bf16.msra.mxu1 %v7521_v63 }
 0x426   :  { %6573 = vmatprep.subr.bf16.mxu1 %v7298_v0 }
 0x484   :  { %v689_v39 = vpop.permute.xlu1 %688 }
 0x485   :  { %v691_v40 = vmul.f32 %v6907_v38, %v689_v39 }
 0x486   :  { %v594_v42 = vpop.permute.xlu0 %593 }
 0x487   :  { %693 = vrot.lane.b32.xlu1 %v691_v40, %s7294_s3  ;;  %v596_v43 = vmul.f32 %v6909_v41, %v594_v42 }
 0x489   :  { %598 = vrot.lane.b32.xlu0 %v596_v43, %s7294_s3 }
 0x4f9   :  { %v694_v45 = vpop.permute.xlu1 %693 }
 0x4fa   :  { %v7506_v47 = vadd.f32 %v694_v45, %v686_v44 }
 0x4fb   :  { %v599_v50 = vpop.permute.xlu0 %598 }
 0x4fc   :  { %6910 = vtanh.f32 %v7506_v47  ;;  %v7509_v51 = vadd.f32 %v599_v50, %v591_v49 }
 0x4fe   :  { %6912 = vtanh.f32 %v7509_v51 }
 0x506   :  { %v6911_v2 = vpop.eup %6910 }
 0x507   :  { %699 = vrot.lane.b32.xlu1 %v6911_v2, %s7294_s3 }
 0x508   :  { %v6913_v3 = vpop.eup %6912 }
 0x509   :  { %604 = vrot.lane.b32.xlu0 %v6913_v3, %s7294_s3 }
 0x579   :  { %v700_v5 = vpop.permute.xlu1 %699 }
 0x57a   :  { %v702_v7 = vmul.f32 %v6907_v38, %v700_v5 }
 0x57b   :  { %v605_v8 = vpop.permute.xlu0 %604 }
 0x57c   :  { %v956_v11 = vrot.slane %v702_v7, %v7422_v17  ;;  %v607_v12 = vmul.f32 %v6909_v41, %v605_v8 }
 0x57e   :  { %774 = vrot.lane.b32.xlu0 %v607_v12, %s7302_s12  ;;  %957 = vrot.lane.b32.xlu1 %v956_v11, %s7302_s12 }
 0x5f0   :  { %v775_v15 = vpop.permute.xlu0 %774  ;;  %v958_v16 = vpop.permute.xlu1 %957 }
 0x5f1   :  { %5956 = vmatmul.mubr.msk.f32.vlgmr.msra.gmra.mrb[6].mxu1 %vm326_vm3, %v775_v15  ;;  %5967 = vmatmul.mubr.msk.f32.vlgmr.msra.gmra.mrb[6].mxu0 %vm326_vm3, %v775_v15 }
 0x5f2   :  { %6575 = vmatpush3.bf16.msra.mxu1 %v7463_v6  ;;  %6581 = vmatpush3.bf16.msra.mxu0 %v7424_v18 }
 0x5f3   :  { %6576 = vmatprep.subr.bf16.mxu1 %v7298_v0  ;;  %6582 = vmatprep.subr.bf16.mxu0 %v7298_v0 }
 0x5f4   :  { %5977 = vmatprep.mubr.msk.f32.mxu1 %vm7300_vm0, %v7301_v4  ;;  %5988 = vmatprep.mubr.msk.f32.mxu0 %vm7300_vm0, %v7301_v4 }
 0x5f6   :  { %6578 = vmatpush3.bf16.msra.mxu1 %v7470_v10  ;;  %6584 = vmatpush3.bf16.msra.mxu0 %v7430_v36 }
 0x5f7   :  { %6585 = vmatprep.subr.bf16.mxu1 %v7298_v0  ;;  %6591 = vmatprep.subr.bf16.mxu0 %v7298_v0 }
 0x5f9   :  { %5978 = vmatmul.mubr.msk.f32.vlgmr.msra.gmra.mrb[8].mxu1 %vm326_vm3, %v958_v16  ;;  %5989 = vmatmul.mubr.msk.f32.vlgmr.msra.gmra.mrb[8].mxu0 %vm326_vm3, %v958_v16  ;;  %v302_v16 = vld [vmem:[#allocation8 + $0x60] sm:$0xff] }
 0x5fa   :  { %5999 = vmatprep.mubr.msk.f32.mxu1 %vm7300_vm0, %v7301_v4  ;;  %6010 = vmatprep.mubr.msk.f32.mxu0 %vm7300_vm0, %v7301_v4 }
 0x6c4   :  { %v844_v20 = vpop.f32.mrb[6].mxu1  ;;  %v945_v22 = vpop.f32.mrb[6].mxu0 }
 0x6c5   :  { %v845_v23 = vadd.f32 %v844_v20, %v769_v13  ;;  %v5957_v24 = vpop.f32.mrb[7].mxu1  ;;  %v5968_v25 = vpop.f32.mrb[7].mxu0  ;;  %v303_v20 = vld [vmem:[#allocation8 + $0x68] sm:$0xff] }
 0x6c6   :  { %v305_v24 = vld [vmem:[#allocation8 + $0x78] sm:$0xff]  ;;  %v316_v25 = vld [vmem:[#allocation7 + $0x40] sm:$0xff] }
 0x6c7   :  { %v854_v27 = vadd.f32 %v7563_v19, %v845_v23  ;;  %v7590_v23 = vpack.c.bf16 %v303_v20, %v302_v16 }
 0x6c9   :  { %6914 = vtanh.f32 %v854_v27  ;;  %v5494_v39 = vmul.f32 -1.442695, %v854_v27  ;;  %6587 = vmatpush3.bf16.msra.mxu1 %v7590_v23 }
 0x6ca   :  { %6588 = vmatprep.subr.bf16.mxu1 %v7298_v0 }
 0x6cc   :  { %v1027_v29 = vpop.f32.mrb[8].mxu1  ;;  %v1122_v30 = vpop.f32.mrb[8].mxu0 }
 0x6cd   :  { %v1028_v31 = vadd.f32 %v1027_v29, %v945_v22  ;;  %v1126_v32 = vadd.f32 %v1122_v30, %v7569_v28  ;;  %v5979_v33 = vpop.f32.mrb[9].mxu1  ;;  %v5990_v34 = vpop.f32.mrb[9].mxu0  ;;  %v304_v22 = vld [vmem:[#allocation8 + $0x70] sm:$0xff] }
 0x6ce   :  { %v318_v29 = vld [vmem:[#allocation7 + $0x50] sm:$0xff]  ;;  %v7596_v30 = vpack.c.bf16 %v305_v24, %v304_v22 }
 0x6cf   :  { %v1031_v35 = vadd.f32 %v7498_v21, %v1028_v31  ;;  %6916 = vtanh.f32 %v1126_v32  ;;  %v5499_v40 = vmul.f32 -1.442695, %v1126_v32 }
 0x6d0   :  { %6590 = vmatpush3.bf16.msra.mxu1 %v7596_v30 }
 0x6d1   :  { %6918 = vtanh.f32 %v1031_v35  ;;  %v5497_v41 = vmul.f32 -1.442695, %v1031_v35  ;;  %6597 = vmatprep.subr.bf16.mxu1 %v7298_v0 }
 0x6d2   :  { %6920 = vpow2.f32 %v5494_v39 }
 0x6d3   :  { %v6915_v37 = vpop.eup %6914  ;;  %6922 = vpow2.f32 %v5499_v40  ;;  %6000 = vmatmul.mubr.f32.vlgmr.msra.gmra.mrb[10].mxu1 %v7301_v4 }
 0x6d4   :  { %864 = vrot.lane.b32.xlu0 %v6915_v37, %s7294_s3  ;;  %6924 = vpow2.f32 %v5497_v41  ;;  %6599 = vmatpush3.bf16.msra.mxu1 %v7512_v55 }
 0x6d5   :  { %6600 = vmatprep.subr.bf16.mxu1 %v7298_v0  ;;  %6021 = vmatprep.mubr.msk.f32.mxu1 %vm7300_vm0, %v7301_v4 }
 0x6d8   :  { %6602 = vmatpush3.bf16.msra.mxu1 %v7517_v62 }
 0x6d9   :  { %v6917_v48 = vpop.eup %6916  ;;  %6609 = vmatprep.subr.bf16.mxu1 %v7298_v0 }
 0x6da   :  { %1136 = vrot.lane.b32.xlu0 %v6917_v48, %s7294_s3 }
 0x6db   :  { %v6919_v38 = vpop.eup %6918 }
 0x6dc   :  { %1041 = vrot.lane.b32.xlu1 %v6919_v38, %s7294_s3  ;;  %v6921_v42 = vpop.eup %6920 }
 0x6dd   :  { %v858_v43 = vadd.f32 1.0, %v6921_v42  ;;  %v6923_v44 = vpop.eup %6922 }
 0x6de   :  { %v6925_v45 = vpop.eup %6924  ;;  %v1130_v49 = vadd.f32 1.0, %v6923_v44 }
 0x6df   :  { %6926 = vrcp.f32 %v858_v43  ;;  %v1035_v50 = vadd.f32 1.0, %v6925_v45 }
 0x6e0   :  { %6928 = vrcp.f32 %v1130_v49  ;;  %v7665_v49 = vld [vmem:[%s8244_s4 + $0x3] ss:$0 sm:$0xff] }
 0x6e1   :  { %6930 = vrcp.f32 %v1035_v50 }
 0x6e9   :  { %v6927_v52 = vpop.eup %6926 }
 0x6ea   :  { %v6929_v56 = vpop.eup %6928  ;;  %v862_v3 = vmul.f32 0.0, %v6927_v52 }
 0x6eb   :  { %v6931_v60 = vpop.eup %6930  ;;  %v1134_v8 = vmul.f32 %v6929_v56, %v7506_v47  ;;  %v317_v47 = vld [vmem:[#allocation7 + $0x48] sm:$0xff] }
 0x6ec   :  { %v1039_v13 = vmul.f32 %v6931_v60, %v7509_v51  ;;  %v7592_v27 = vpack.c.bf16 %v317_v47, %v316_v25  ;;  %v319_v51 = vld [vmem:[#allocation7 + $0x58] sm:$0xff] }
 0x6ed   :  { %v7600_v31 = vpack.c.bf16 %v319_v51, %v318_v29 }
 0x6ee   :  { %6593 = vmatpush3.bf16.msra.mxu0 %v7592_v27 }
 0x6ef   :  { %6594 = vmatprep.subr.bf16.mxu0 %v7298_v0 }
 0x6f2   :  { %6596 = vmatpush3.bf16.msra.mxu0 %v7600_v31 }
 0x6f3   :  { %6603 = vmatprep.subr.bf16.mxu0 %v7298_v0 }
 0x746   :  { %v865_v53 = vpop.permute.xlu0 %864 }
 0x747   :  { %v867_v54 = vmul.f32 %v6927_v52, %v865_v53 }
 0x749   :  { %869 = vrot.lane.b32.xlu1 %v867_v54, %s7294_s3 }
 0x74c   :  { %v1137_v57 = vpop.permute.xlu0 %1136 }
 0x74d   :  { %v1139_v58 = vmul.f32 %v6929_v56, %v1137_v57 }
 0x74e   :  { %v1042_v61 = vpop.permute.xlu1 %1041 }
 0x74f   :  { %1141 = vrot.lane.b32.xlu1 %v1139_v58, %s7294_s3  ;;  %v1044_v2 = vmul.f32 %v6931_v60, %v1042_v61 }
 0x751   :  { %1046 = vrot.lane.b32.xlu0 %v1044_v2, %s7294_s3 }
 0x7a6   :  { %v1217_v41 = vpop.f32.mrb[10].mxu1 }
 0x7a7   :  { %v6001_v42 = vpop.f32.mrb[11].mxu1 }
 0x7bb   :  { %v870_v5 = vpop.permute.xlu1 %869 }
 0x7bc   :  { %v7579_v7 = vadd.f32 %v870_v5, %v862_v3 }
 0x7be   :  { %6932 = vtanh.f32 %v7579_v7 }
 0x7c1   :  { %v1142_v11 = vpop.permute.xlu1 %1141 }
 0x7c2   :  { %v7583_v12 = vadd.f32 %v1142_v11, %v1134_v8  ;;  %v261_v11 = vcombine.high %v7569_v28, %v7569_v28 }
 0x7c3   :  { %v1047_v14 = vpop.permute.xlu0 %1046 }
 0x7c4   :  { %6934 = vtanh.f32 %v7583_v12  ;;  %v7587_v15 = vadd.f32 %v1047_v14, %v1039_v13 }
 0x7c6   :  { %6936 = vtanh.f32 %v7587_v15 }
 0x7c8   :  { %v6933_v26 = vpop.eup %6932 }
 0x7c9   :  { %875 = vrot.lane.b32.xlu0 %v6933_v26, %s7294_s3 }
 0x7ce   :  { %v6935_v32 = vpop.eup %6934 }
 0x7cf   :  { %1147 = vrot.lane.b32.xlu0 %v6935_v32, %s7294_s3 }
 0x7d0   :  { %v6937_v33 = vpop.eup %6936 }
 0x7d1   :  { %1052 = vrot.lane.b32.xlu1 %v6937_v33, %s7294_s3 }
 0x83b   :  { %v876_v34 = vpop.permute.xlu0 %875 }
 0x83c   :  { %v878_v35 = vmul.f32 %v6927_v52, %v876_v34 }
 0x83e   :  { %1222 = vrot.lane.b32.xlu1 %v878_v35, %s7302_s12 }
 0x841   :  { %v1148_v37 = vpop.permute.xlu0 %1147 }
 0x842   :  { %v1150_v48 = vmul.f32 %v6929_v56, %v1148_v37 }
 0x843   :  { %v1053_v38 = vpop.permute.xlu1 %1052 }
 0x844   :  { %v1574_v39 = vrot.slane %v1150_v48, %v7422_v17  ;;  %v1055_v40 = vmul.f32 %v6931_v60, %v1053_v38 }
 0x846   :  { %1398 = vrot.lane.b32.xlu0 %v1055_v40, %s7302_s12  ;;  %1575 = vrot.lane.b32.xlu1 %v1574_v39, %s7302_s12 }
 0x8b0   :  { %v1223_v43 = vpop.permute.xlu1 %1222 }
 0x8b1   :  { %6011 = vmatmul.mubr.msk.f32.vlgmr.msra.gmra.mrb[10].mxu0 %vm326_vm3, %v1223_v43  ;;  %6022 = vmatmul.mubr.msk.f32.vlgmr.msra.gmra.mrb[12].mxu1 %vm326_vm3, %v1223_v43 }
 0x8b2   :  { %6605 = vmatpush3.bf16.msra.mxu0 %v7514_v59  ;;  %6611 = vmatpush3.bf16.msra.mxu1 %v7461_v1 }
 0x8b3   :  { %6606 = vmatprep.subr.bf16.mxu0 %v7298_v0  ;;  %6612 = vmatprep.subr.bf16.mxu1 %v7298_v0 }
 0x8b4   :  { %6032 = vmatprep.mubr.msk.f32.mxu0 %vm7300_vm0, %v7301_v4  ;;  %6043 = vmatprep.mubr.msk.f32.mxu1 %vm7300_vm0, %v7301_v4 }
 0x8b6   :  { %6608 = vmatpush3.bf16.msra.mxu0 %v7521_v63  ;;  %6614 = vmatpush3.bf16.msra.mxu1 %v7466_v9 }
 0x8b7   :  { %6615 = vmatprep.subr.bf16.mxu0 %v7298_v0  ;;  %6621 = vmatprep.subr.bf16.mxu1 %v7298_v0 }
 0x8b8   :  { %v1399_v44 = vpop.permute.xlu0 %1398  ;;  %v1576_v45 = vpop.permute.xlu1 %1575 }
 0x8b9   :  { %6033 = vmatmul.mubr.msk.f32.vlgmr.msra.gmra.mrb[12].mxu0 %vm326_vm3, %v1399_v44  ;;  %6044 = vmatmul.mubr.msk.f32.vlgmr.msra.gmra.mrb[14].mxu1 %vm326_vm3, %v1399_v44 }
 0x8ba   :  { %6617 = vmatpush3.bf16.msra.mxu0 %v7463_v6  ;;  %6623 = vmatpush3.bf16.msra.mxu1 %v7424_v18 }
 0x8bb   :  { %6618 = vmatprep.subr.bf16.mxu0 %v7298_v0  ;;  %6624 = vmatprep.subr.bf16.mxu1 %v7298_v0 }
 0x8bc   :  { %6054 = vmatprep.mubr.msk.f32.mxu0 %vm7300_vm0, %v7301_v4  ;;  %6065 = vmatprep.mubr.msk.f32.mxu1 %vm7300_vm0, %v7301_v4 }
 0x8be   :  { %6620 = vmatpush3.bf16.msra.mxu0 %v7470_v10  ;;  %6626 = vmatpush3.bf16.msra.mxu1 %v7430_v36 }
 0x8bf   :  { %6627 = vmatprep.subr.bf16.mxu0 %v7298_v0  ;;  %6633 = vmatprep.subr.bf16.mxu1 %v7298_v0 }
 0x8c1   :  { %6055 = vmatmul.mubr.msk.f32.vlgmr.msra.gmra.mrb[14].mxu0 %vm326_vm3, %v1576_v45  ;;  %6066 = vmatmul.mubr.msk.f32.vlgmr.msra.gmra.mrb[16].mxu1 %vm326_vm3, %v1576_v45 }
 0x8c2   :  { %6629 = vmatpush3.bf16.msra.mxu0 %v7590_v23  ;;  %6076 = vmatprep.mubr.msk.f32.mxu0 %vm7300_vm0, %v7301_v4 }
 0x8c3   :  { %6630 = vmatprep.subr.bf16.mxu0 %v7298_v0  ;;  %6635 = vmatpush3.bf16.msra.mxu1 %v7592_v27 }
 0x8c4   :  { %6636 = vmatprep.subr.bf16.mxu1 %v7298_v0  ;;  %6087 = vmatprep.mubr.msk.f32.mxu1 %vm7300_vm0, %v7301_v4 }
 0x8c6   :  { %6632 = vmatpush3.bf16.msra.mxu0 %v7596_v30 }
 0x8c7   :  { %6639 = vmatprep.subr.bf16.mxu0 %v7298_v0  ;;  %6638 = vmatpush3.bf16.msra.mxu1 %v7600_v31 }
 0x8c8   :  { %6645 = vmatprep.subr.bf16.mxu1 %v7298_v0 }
 0x984   :  { %v1292_v50 = vpop.f32.mrb[10].mxu0  ;;  %v1393_v52 = vpop.f32.mrb[12].mxu1 }
 0x985   :  { %v1293_v53 = vadd.f32 %v1292_v50, %v1217_v41  ;;  %v6012_v54 = vpop.f32.mrb[11].mxu0  ;;  %v6023_v56 = vpop.f32.mrb[13].mxu1 }
 0x987   :  { %v1302_v57 = vadd.f32 %v7665_v49, %v1293_v53 }
 0x989   :  { %6938 = vtanh.f32 %v1302_v57  ;;  %v5502_v28 = vmul.f32 -1.442695, %v1302_v57 }
 0x98c   :  { %v1468_v58 = vpop.f32.mrb[12].mxu0  ;;  %v1563_v60 = vpop.f32.mrb[14].mxu1 }
 0x98d   :  { %v1469_v61 = vadd.f32 %v1468_v58, %v1393_v52  ;;  %v6034_v2 = vpop.f32.mrb[13].mxu0  ;;  %v6045_v3 = vpop.f32.mrb[15].mxu1 }
 0x98f   :  { %v1472_v5 = vadd.f32 %v7563_v19, %v1469_v61 }
 0x991   :  { %6940 = vtanh.f32 %v1472_v5  ;;  %v5505_v51 = vmul.f32 -1.442695, %v1472_v5 }
 0x993   :  { %v6939_v8 = vpop.eup %6938 }
 0x994   :  { %v1645_v13 = vpop.f32.mrb[14].mxu0  ;;  %v1740_v14 = vpop.f32.mrb[16].mxu1  ;;  %1312 = vrot.lane.b32.xlu0 %v6939_v8, %s7294_s3 }
 0x995   :  { %v1646_v16 = vadd.f32 %v1645_v13, %v1563_v60  ;;  %v1744_v20 = vadd.f32 %v1740_v14, %v261_v11  ;;  %v6056_v22 = vpop.f32.mrb[15].mxu0  ;;  %v6067_v24 = vpop.f32.mrb[17].mxu1 }
 0x997   :  { %v1649_v25 = vadd.f32 %v7498_v21, %v1646_v16  ;;  %6942 = vtanh.f32 %v1744_v20  ;;  %v5510_v33 = vmul.f32 -1.442695, %v1744_v20 }
 0x999   :  { %6944 = vtanh.f32 %v1649_v25  ;;  %v5508_v34 = vmul.f32 -1.442695, %v1649_v25 }
 0x99a   :  { %6946 = vpow2.f32 %v5502_v28 }
 0x99b   :  { %v6941_v47 = vpop.eup %6940  ;;  %6948 = vpow2.f32 %v5505_v51 }
 0x99c   :  { %1482 = vrot.lane.b32.xlu1 %v6941_v47, %s7294_s3  ;;  %6950 = vpow2.f32 %v5510_v33 }
 0x99d   :  { %6952 = vpow2.f32 %v5508_v34 }
 0x9a1   :  { %v6943_v26 = vpop.eup %6942 }
 0x9a2   :  { %1754 = vrot.lane.b32.xlu1 %v6943_v26, %s7294_s3 }
 0x9a3   :  { %v6945_v29 = vpop.eup %6944 }
 0x9a4   :  { %1659 = vrot.lane.b32.xlu0 %v6945_v29, %s7294_s3  ;;  %v6947_v32 = vpop.eup %6946 }
 0x9a5   :  { %v1306_v35 = vadd.f32 1.0, %v6947_v32  ;;  %v6949_v37 = vpop.eup %6948 }
 0x9a6   :  { %v1476_v48 = vadd.f32 1.0, %v6949_v37  ;;  %v6951_v38 = vpop.eup %6950 }
 0x9a7   :  { %6954 = vrcp.f32 %v1306_v35  ;;  %v6953_v39 = vpop.eup %6952  ;;  %v1748_v41 = vadd.f32 1.0, %v6951_v38 }
 0x9a8   :  { %6956 = vrcp.f32 %v1476_v48  ;;  %v1653_v44 = vadd.f32 1.0, %v6953_v39 }
 0x9a9   :  { %6958 = vrcp.f32 %v1748_v41 }
 0x9aa   :  { %6960 = vrcp.f32 %v1653_v44 }
 0x9b1   :  { %v6955_v40 = vpop.eup %6954 }
 0x9b2   :  { %v6957_v45 = vpop.eup %6956  ;;  %v1310_v61 = vmul.f32 0.0, %v6955_v40 }
 0x9b3   :  { %v6959_v53 = vpop.eup %6958  ;;  %v1480_v5 = vmul.f32 %v6957_v45, %v7579_v7 }
 0x9b4   :  { %v6961_v57 = vpop.eup %6960  ;;  %v1752_v14 = vmul.f32 %v6959_v53, %v7583_v12 }
 0x9b5   :  { %v1657_v22 = vmul.f32 %v6961_v57, %v7587_v15 }
 0xa06   :  { %v1313_v42 = vpop.permute.xlu0 %1312 }
 0xa07   :  { %v1315_v43 = vmul.f32 %v6955_v40, %v1313_v42 }
 0xa09   :  { %1317 = vrot.lane.b32.xlu0 %v1315_v43, %s7294_s3 }
 0xa0e   :  { %v1483_v50 = vpop.permute.xlu1 %1482 }
 0xa0f   :  { %v1485_v52 = vmul.f32 %v6957_v45, %v1483_v50 }
 0xa11   :  { %1487 = vrot.lane.b32.xlu1 %v1485_v52, %s7294_s3 }
 0xa14   :  { %v1755_v54 = vpop.permute.xlu1 %1754 }
 0xa15   :  { %v1757_v56 = vmul.f32 %v6959_v53, %v1755_v54 }
 0xa16   :  { %v1660_v58 = vpop.permute.xlu0 %1659 }
 0xa17   :  { %1759 = vrot.lane.b32.xlu1 %v1757_v56, %s7294_s3  ;;  %v1662_v60 = vmul.f32 %v6961_v57, %v1660_v58 }
 0xa19   :  { %1664 = vrot.lane.b32.xlu0 %v1662_v60, %s7294_s3 }
 0xa7b   :  { %v1318_v2 = vpop.permute.xlu0 %1317 }
 0xa7c   :  { %v7680_v3 = vadd.f32 %v1318_v2, %v1310_v61  ;;  %v7760_v2 = vrot.slane %v7447_v46, %v7422_v17 }
 0xa7e   :  { %6962 = vtanh.f32 %v7680_v3 }
 0xa83   :  { %v1488_v8 = vpop.permute.xlu1 %1487 }
 0xa84   :  { %v7684_v11 = vadd.f32 %v1488_v8, %v1480_v5 }
 0xa86   :  { %6964 = vtanh.f32 %v7684_v11 }
 0xa88   :  { %v6963_v13 = vpop.eup %6962 }
 0xa89   :  { %v1760_v16 = vpop.permute.xlu1 %1759  ;;  %1323 = vrot.lane.b32.xlu0 %v6963_v13, %s7294_s3 }
 0xa8a   :  { %v7689_v20 = vadd.f32 %v1760_v16, %v1752_v14 }
 0xa8b   :  { %v1665_v24 = vpop.permute.xlu0 %1664 }
 0xa8c   :  { %6966 = vtanh.f32 %v7689_v20  ;;  %v7693_v25 = vadd.f32 %v1665_v24, %v1657_v22 }
 0xa8e   :  { %6968 = vtanh.f32 %v7693_v25 }
 0xa90   :  { %v6965_v7 = vpop.eup %6964 }
 0xa91   :  { %1493 = vrot.lane.b32.xlu1 %v6965_v7, %s7294_s3 }
 0xa96   :  { %v6967_v47 = vpop.eup %6966 }
 0xa97   :  { %1765 = vrot.lane.b32.xlu1 %v6967_v47, %s7294_s3 }
 0xa98   :  { %v6969_v12 = vpop.eup %6968 }
 0xa99   :  { %1670 = vrot.lane.b32.xlu0 %v6969_v12, %s7294_s3 }
 0xafb   :  { %v1324_v26 = vpop.permute.xlu0 %1323 }
 0xafc   :  { %v7699_v29 = vmul.f32 %v6955_v40, %v1324_v26 }
 0xafe   :  { %1770 = vrot.lane.b32.xlu0 %v7699_v29, %s7302_s12 }
 0xb03   :  { %v1494_v15 = vpop.permute.xlu1 %1493 }
 0xb04   :  { %v1496_v28 = vmul.f32 %v6957_v45, %v1494_v15 }
 0xb06   :  { %1845 = vrot.lane.b32.xlu1 %v1496_v28, %s7302_s12 }
 0xb09   :  { %v1766_v51 = vpop.permute.xlu1 %1765 }
 0xb0a   :  { %v1768_v32 = vmul.f32 %v6959_v53, %v1766_v51 }
 0xb0b   :  { %v1671_v33 = vpop.permute.xlu0 %1670 }
 0xb0c   :  { %v2191_v34 = vrot.slane %v1768_v32, %v7422_v17  ;;  %v1673_v35 = vmul.f32 %v6961_v57, %v1671_v33 }
 0xb0e   :  { %2015 = vrot.lane.b32.xlu0 %v1673_v35, %s7302_s12  ;;  %2192 = vrot.lane.b32.xlu1 %v2191_v34, %s7302_s12 }
 0xb70   :  { %v1771_v37 = vpop.permute.xlu0 %1770 }
 0xb71   :  { %6077 = vmatmul.mubr.msk.f32.vlgmr.msra.gmra.mrb[16].mxu0 %vm326_vm3, %v1771_v37 }
 0xb72   :  { %6641 = vmatpush3.bf16.msra.mxu0 %v7512_v55  ;;  %6098 = vmatprep.mubr.msk.f32.mxu0 %vm7300_vm0, %v7301_v4 }
 0xb73   :  { %6642 = vmatprep.subr.bf16.mxu0 %v7298_v0 }
 0xb76   :  { %6644 = vmatpush3.bf16.msra.mxu0 %v7517_v62 }
 0xb77   :  { %6651 = vmatprep.subr.bf16.mxu0 %v7298_v0 }
 0xb78   :  { %v1846_v48 = vpop.permute.xlu1 %1845 }
 0xb79   :  { %6088 = vmatmul.mubr.msk.f32.vlgmr.msra.gmra.mrb[18].mxu1 %vm326_vm3, %v1846_v48  ;;  %6099 = vmatmul.mubr.msk.f32.vlgmr.msra.gmra.mrb[18].mxu0 %vm326_vm3, %v1846_v48 }
 0xb7a   :  { %6647 = vmatpush3.bf16.msra.mxu1 %v7514_v59  ;;  %6653 = vmatpush3.bf16.msra.mxu0 %v7461_v1 }
 0xb7b   :  { %6648 = vmatprep.subr.bf16.mxu1 %v7298_v0  ;;  %6654 = vmatprep.subr.bf16.mxu0 %v7298_v0 }
 0xb7c   :  { %6109 = vmatprep.mubr.msk.f32.mxu1 %vm7300_vm0, %v7301_v4  ;;  %6120 = vmatprep.mubr.msk.f32.mxu0 %vm7300_vm0, %v7301_v4 }
 0xb7e   :  { %6650 = vmatpush3.bf16.msra.mxu1 %v7521_v63  ;;  %6656 = vmatpush3.bf16.msra.mxu0 %v7466_v9 }
 0xb7f   :  { %6657 = vmatprep.subr.bf16.mxu1 %v7298_v0  ;;  %6663 = vmatprep.subr.bf16.mxu0 %v7298_v0 }
 0xb80   :  { %v2016_v38 = vpop.permute.xlu0 %2015  ;;  %v2193_v39 = vpop.permute.xlu1 %2192 }
 0xb81   :  { %6110 = vmatmul.mubr.msk.f32.vlgmr.msra.gmra.mrb[20].mxu1 %vm326_vm3, %v2016_v38  ;;  %6121 = vmatmul.mubr.msk.f32.vlgmr.msra.gmra.mrb[20].mxu0 %vm326_vm3, %v2016_v38 }
 0xb82   :  { %6659 = vmatpush3.bf16.msra.mxu1 %v7463_v6  ;;  %6665 = vmatpush3.bf16.msra.mxu0 %v7424_v18 }
 0xb83   :  { %6660 = vmatprep.subr.bf16.mxu1 %v7298_v0  ;;  %6666 = vmatprep.subr.bf16.mxu0 %v7298_v0 }
 0xb84   :  { %6131 = vmatprep.mubr.msk.f32.mxu1 %vm7300_vm0, %v7301_v4  ;;  %6142 = vmatprep.mubr.msk.f32.mxu0 %vm7300_vm0, %v7301_v4 }
 0xb86   :  { %6662 = vmatpush3.bf16.msra.mxu1 %v7470_v10  ;;  %6668 = vmatpush3.bf16.msra.mxu0 %v7430_v36 }
 0xb87   :  { %6669 = vmatprep.subr.bf16.mxu1 %v7298_v0  ;;  %6675 = vmatprep.subr.bf16.mxu0 %v7298_v0 }
 0xb89   :  { %6132 = vmatmul.mubr.msk.f32.vlgmr.msra.gmra.mrb[22].mxu1 %vm326_vm3, %v2193_v39  ;;  %6143 = vmatmul.mubr.msk.f32.vlgmr.msra.gmra.mrb[22].mxu0 %vm326_vm3, %v2193_v39 }
 0xb8a   :  { %6671 = vmatpush3.bf16.msra.mxu1 %v7590_v23  ;;  %6153 = vmatprep.mubr.msk.f32.mxu1 %vm7300_vm0, %v7301_v4 }
 0xb8b   :  { %6672 = vmatprep.subr.bf16.mxu1 %v7298_v0  ;;  %6677 = vmatpush3.bf16.msra.mxu0 %v7592_v27 }
 0xb8c   :  { %6678 = vmatprep.subr.bf16.mxu0 %v7298_v0  ;;  %6164 = vmatprep.mubr.msk.f32.mxu0 %vm7300_vm0, %v7301_v4 }
 0xb8e   :  { %6674 = vmatpush3.bf16.msra.mxu1 %v7596_v30 }
 0xb8f   :  { %6681 = vmatprep.subr.bf16.mxu1 %v7298_v0  ;;  %6680 = vmatpush3.bf16.msra.mxu0 %v7600_v31 }
 0xb90   :  { %6687 = vmatprep.subr.bf16.mxu0 %v7298_v0 }
 0xc44   :  { %v1840_v40 = vpop.f32.mrb[16].mxu0 }
 0xc45   :  { %v6078_v41 = vpop.f32.mrb[17].mxu0 }
 0xc4c   :  { %v1915_v42 = vpop.f32.mrb[18].mxu1  ;;  %v2010_v43 = vpop.f32.mrb[18].mxu0 }
 0xc4d   :  { %v1916_v44 = vadd.f32 %v1915_v42, %v1840_v40  ;;  %v6089_v45 = vpop.f32.mrb[19].mxu1  ;;  %v6100_v50 = vpop.f32.mrb[19].mxu0 }
 0xc4f   :  { %v1919_v52 = vadd.f32 %v7665_v49, %v1916_v44 }
 0xc51   :  { %6970 = vtanh.f32 %v1919_v52  ;;  %v5513_v26 = vmul.f32 -1.442695, %v1919_v52 }
 0xc54   :  { %v2085_v53 = vpop.f32.mrb[20].mxu1  ;;  %v2180_v54 = vpop.f32.mrb[20].mxu0 }
 0xc55   :  { %v2086_v56 = vadd.f32 %v2085_v53, %v2010_v43  ;;  %v6111_v57 = vpop.f32.mrb[21].mxu1  ;;  %v6122_v58 = vpop.f32.mrb[21].mxu0 }
 0xc57   :  { %v2089_v60 = vadd.f32 %v7563_v19, %v2086_v56 }
 0xc59   :  { %6972 = vtanh.f32 %v2089_v60  ;;  %v5516_v15 = vmul.f32 -1.442695, %v2089_v60 }
 0xc5b   :  { %v6971_v61 = vpop.eup %6970 }
 0xc5c   :  { %v2262_v5 = vpop.f32.mrb[22].mxu1  ;;  %1929 = vrot.lane.b32.xlu0 %v6971_v61, %s7294_s3  ;;  %v2357_v8 = vpop.f32.mrb[22].mxu0 }
 0xc5d   :  { %v2263_v13 = vadd.f32 %v2262_v5, %v2180_v54  ;;  %v6133_v14 = vpop.f32.mrb[23].mxu1  ;;  %v2361_v16 = vadd.f32 %v2357_v8, %v7760_v2  ;;  %v6144_v22 = vpop.f32.mrb[23].mxu0 }
 0xc5f   :  { %v2266_v24 = vadd.f32 %v7498_v21, %v2263_v13  ;;  %6974 = vtanh.f32 %v2361_v16  ;;  %v5521_v51 = vmul.f32 -1.442695, %v2361_v16 }
 0xc61   :  { %6976 = vtanh.f32 %v2266_v24  ;;  %v5519_v32 = vmul.f32 -1.442695, %v2266_v24 }
 0xc62   :  { %6978 = vpow2.f32 %v5513_v26 }
 0xc63   :  { %v6973_v7 = vpop.eup %6972  ;;  %6980 = vpow2.f32 %v5516_v15 }
 0xc64   :  { %2099 = vrot.lane.b32.xlu1 %v6973_v7, %s7294_s3  ;;  %6982 = vpow2.f32 %v5521_v51 }
 0xc65   :  { %6984 = vpow2.f32 %v5519_v32 }
 0xc69   :  { %v6975_v47 = vpop.eup %6974 }
 0xc6a   :  { %2371 = vrot.lane.b32.xlu1 %v6975_v47, %s7294_s3 }
 0xc6b   :  { %v6977_v12 = vpop.eup %6976 }
 0xc6c   :  { %2276 = vrot.lane.b32.xlu0 %v6977_v12, %s7294_s3  ;;  %v6979_v28 = vpop.eup %6978 }
 0xc6d   :  { %v1923_v33 = vadd.f32 1.0, %v6979_v28  ;;  %v6981_v21 = vpop.eup %6980 }
 0xc6e   :  { %v2093_v34 = vadd.f32 1.0, %v6981_v21  ;;  %v6983_v35 = vpop.eup %6982 }
 0xc6f   :  { %6986 = vrcp.f32 %v1923_v33  ;;  %v6985_v37 = vpop.eup %6984  ;;  %v2365_v38 = vadd.f32 1.0, %v6983_v35 }
 0xc70   :  { %6988 = vrcp.f32 %v2093_v34  ;;  %v2270_v41 = vadd.f32 1.0, %v6985_v37 }
 0xc71   :  { %6990 = vrcp.f32 %v2365_v38 }
 0xc72   :  { %6992 = vrcp.f32 %v2270_v41 }
 0xc79   :  { %v6987_v48 = vpop.eup %6986 }
 0xc7a   :  { %v6989_v42 = vpop.eup %6988  ;;  %v1927_v57 = vmul.f32 %v6987_v48, %v7680_v3 }
 0xc7b   :  { %v6991_v45 = vpop.eup %6990  ;;  %v2097_v61 = vmul.f32 %v6989_v42, %v7684_v11 }
 0xc7c   :  { %v6993_v53 = vpop.eup %6992  ;;  %v2369_v14 = vmul.f32 %v6991_v45, %v7689_v20 }
 0xc7d   :  { %v2274_v3 = vmul.f32 %v6993_v53, %v7693_v25 }
 0xcce   :  { %v1930_v39 = vpop.permute.xlu0 %1929 }
 0xccf   :  { %v1932_v40 = vmul.f32 %v6987_v48, %v1930_v39 }
 0xcd1   :  { %1934 = vrot.lane.b32.xlu0 %v1932_v40, %s7294_s3 }
 0xcd6   :  { %v2100_v43 = vpop.permute.xlu1 %2099 }
 0xcd7   :  { %v2102_v44 = vmul.f32 %v6989_v42, %v2100_v43 }
 0xcd9   :  { %2104 = vrot.lane.b32.xlu1 %v2102_v44, %s7294_s3 }
 0xcdc   :  { %v2372_v50 = vpop.permute.xlu1 %2371 }
 0xcdd   :  { %v2374_v52 = vmul.f32 %v6991_v45, %v2372_v50 }
 0xcde   :  { %v2277_v54 = vpop.permute.xlu0 %2276 }
 0xcdf   :  { %v2279_v56 = vmul.f32 %v6993_v53, %v2277_v54  ;;  %2376 = vrot.lane.b32.xlu1 %v2374_v52, %s7294_s3 }
 0xce1   :  { %2281 = vrot.lane.b32.xlu0 %v2279_v56, %s7294_s3 }
 0xd43   :  { %v1935_v58 = vpop.permute.xlu0 %1934 }
 0xd44   :  { %v7773_v60 = vadd.f32 %v1935_v58, %v1927_v57 }
 0xd46   :  { %6994 = vtanh.f32 %v7773_v60 }
 0xd4b   :  { %v2105_v5 = vpop.permute.xlu1 %2104 }
 0xd4c   :  { %v7777_v8 = vadd.f32 %v2105_v5, %v2097_v61  ;;  %v277_v61 = vcombine.high %v7760_v2, %v7760_v2 }
 0xd4e   :  { %6996 = vtanh.f32 %v7777_v8 }
 0xd50   :  { %v6995_v13 = vpop.eup %6994 }
 0xd51   :  { %1940 = vrot.lane.b32.xlu0 %v6995_v13, %s7294_s3  ;;  %v2377_v16 = vpop.permute.xlu1 %2376 }
 0xd52   :  { %v7782_v22 = vadd.f32 %v2377_v16, %v2369_v14 }
 0xd53   :  { %v2282_v24 = vpop.permute.xlu0 %2281 }
 0xd54   :  { %6998 = vtanh.f32 %v7782_v22  ;;  %v7786_v7 = vadd.f32 %v2282_v24, %v2274_v3 }
 0xd56   :  { %7000 = vtanh.f32 %v7786_v7 }
 0xd58   :  { %v6997_v11 = vpop.eup %6996 }
 0xd59   :  { %2110 = vrot.lane.b32.xlu1 %v6997_v11, %s7294_s3  ;;  %v7857_v11 = vld [vmem:[%s8244_s4 + $0x1] ss:$0 sm:$0xff] }
 0xd5e   :  { %v6999_v47 = vpop.eup %6998 }
 0xd5f   :  { %2382 = vrot.lane.b32.xlu1 %v6999_v47, %s7294_s3 }
 0xd60   :  { %v7001_v20 = vpop.eup %7000 }
 0xd61   :  { %2287 = vrot.lane.b32.xlu0 %v7001_v20, %s7294_s3 }
 0xdc3   :  { %v1941_v12 = vpop.permute.xlu0 %1940 }
 0xdc4   :  { %v7792_v26 = vmul.f32 %v6987_v48, %v1941_v12 }
 0xdc6   :  { %2387 = vrot.lane.b32.xlu0 %v7792_v26, %s7302_s12 }
 0xdcb   :  { %v2111_v25 = vpop.permute.xlu1 %2110 }
 0xdcc   :  { %v2113_v15 = vmul.f32 %v6989_v42, %v2111_v25 }
 0xdce   :  { %2462 = vrot.lane.b32.xlu1 %v2113_v15, %s7302_s12 }
 0xdd1   :  { %v2383_v28 = vpop.permute.xlu1 %2382 }
 0xdd2   :  { %v2385_v51 = vmul.f32 %v6991_v45, %v2383_v28 }
 0xdd3   :  { %v2288_v32 = vpop.permute.xlu0 %2287 }
 0xdd4   :  { %v2808_v33 = vrot.slane %v2385_v51, %v7422_v17  ;;  %v2290_v21 = vmul.f32 %v6993_v53, %v2288_v32 }
 0xdd6   :  { %2632 = vrot.lane.b32.xlu0 %v2290_v21, %s7302_s12  ;;  %2809 = vrot.lane.b32.xlu1 %v2808_v33, %s7302_s12 }
 0xe38   :  { %v2388_v34 = vpop.permute.xlu0 %2387 }
 0xe39   :  { %6154 = vmatmul.mubr.msk.f32.vlgmr.msra.gmra.mrb[24].mxu1 %vm326_vm3, %v2388_v34 }
 0xe3a   :  { %6683 = vmatpush3.bf16.msra.mxu1 %v7512_v55  ;;  %6175 = vmatprep.mubr.msk.f32.mxu1 %vm7300_vm0, %v7301_v4 }
 0xe3b   :  { %6684 = vmatprep.subr.bf16.mxu1 %v7298_v0 }
 0xe3e   :  { %6686 = vmatpush3.bf16.msra.mxu1 %v7517_v62 }
 0xe3f   :  { %6693 = vmatprep.subr.bf16.mxu1 %v7298_v0 }
 0xe40   :  { %v2463_v35 = vpop.permute.xlu1 %2462 }
 0xe41   :  { %6165 = vmatmul.mubr.msk.f32.vlgmr.msra.gmra.mrb[24].mxu0 %vm326_vm3, %v2463_v35  ;;  %6176 = vmatmul.mubr.msk.f32.vlgmr.msra.gmra.mrb[26].mxu1 %vm326_vm3, %v2463_v35 }
 0xe42   :  { %6689 = vmatpush3.bf16.msra.mxu0 %v7514_v59  ;;  %6695 = vmatpush3.bf16.msra.mxu1 %v7461_v1 }
 0xe43   :  { %6690 = vmatprep.subr.bf16.mxu0 %v7298_v0  ;;  %6696 = vmatprep.subr.bf16.mxu1 %v7298_v0 }
 0xe44   :  { %6186 = vmatprep.mubr.msk.f32.mxu0 %vm7300_vm0, %v7301_v4  ;;  %6197 = vmatprep.mubr.msk.f32.mxu1 %vm7300_vm0, %v7301_v4 }
 0xe46   :  { %6692 = vmatpush3.bf16.msra.mxu0 %v7521_v63  ;;  %6698 = vmatpush3.bf16.msra.mxu1 %v7466_v9 }
 0xe47   :  { %6699 = vmatprep.subr.bf16.mxu0 %v7298_v0  ;;  %6705 = vmatprep.subr.bf16.mxu1 %v7298_v0 }
 0xe48   :  { %v2633_v37 = vpop.permute.xlu0 %2632  ;;  %v2810_v48 = vpop.permute.xlu1 %2809 }
 0xe49   :  { %6187 = vmatmul.mubr.msk.f32.vlgmr.msra.gmra.mrb[26].mxu0 %vm326_vm3, %v2633_v37  ;;  %6198 = vmatmul.mubr.msk.f32.vlgmr.msra.gmra.mrb[28].mxu1 %vm326_vm3, %v2633_v37 }
 0xe4a   :  { %6701 = vmatpush3.bf16.msra.mxu0 %v7463_v6  ;;  %6707 = vmatpush3.bf16.msra.mxu1 %v7424_v18 }
 0xe4b   :  { %6702 = vmatprep.subr.bf16.mxu0 %v7298_v0  ;;  %6708 = vmatprep.subr.bf16.mxu1 %v7298_v0 }
 0xe4c   :  { %6208 = vmatprep.mubr.msk.f32.mxu0 %vm7300_vm0, %v7301_v4  ;;  %6219 = vmatprep.mubr.msk.f32.mxu1 %vm7300_vm0, %v7301_v4 }
 0xe4e   :  { %6704 = vmatpush3.bf16.msra.mxu0 %v7470_v10  ;;  %6710 = vmatpush3.bf16.msra.mxu1 %v7430_v36 }
 0xe4f   :  { %6711 = vmatprep.subr.bf16.mxu0 %v7298_v0  ;;  %6717 = vmatprep.subr.bf16.mxu1 %v7298_v0 }
 0xe51   :  { %6209 = vmatmul.mubr.msk.f32.vlgmr.msra.gmra.mrb[28].mxu0 %vm326_vm3, %v2810_v48  ;;  %6220 = vmatmul.mubr.msk.f32.vlgmr.msra.gmra.mrb[30].mxu1 %vm326_vm3, %v2810_v48 }
 0xe52   :  { %6713 = vmatpush3.bf16.msra.mxu0 %v7590_v23  ;;  %6230 = vmatprep.mubr.msk.f32.mxu0 %vm7300_vm0, %v7301_v4 }
 0xe53   :  { %6714 = vmatprep.subr.bf16.mxu0 %v7298_v0  ;;  %6719 = vmatpush3.bf16.msra.mxu1 %v7592_v27 }
 0xe54   :  { %6720 = vmatprep.subr.bf16.mxu1 %v7298_v0  ;;  %6241 = vmatprep.mubr.msk.f32.mxu1 %vm7300_vm0, %v7301_v4 }
 0xe56   :  { %6716 = vmatpush3.bf16.msra.mxu0 %v7596_v30 }
 0xe57   :  { %6723 = vmatprep.subr.bf16.mxu0 %v7298_v0  ;;  %6722 = vmatpush3.bf16.msra.mxu1 %v7600_v31 }
 0xe58   :  { %6729 = vmatprep.subr.bf16.mxu1 %v7298_v0 }
 0xf0c   :  { %v2457_v38 = vpop.f32.mrb[24].mxu1 }
 0xf0d   :  { %v6155_v39 = vpop.f32.mrb[25].mxu1 }
 0xf14   :  { %v2532_v40 = vpop.f32.mrb[24].mxu0  ;;  %v2627_v41 = vpop.f32.mrb[26].mxu1 }
 0xf15   :  { %v2533_v42 = vadd.f32 %v2532_v40, %v2457_v38  ;;  %v6166_v43 = vpop.f32.mrb[25].mxu0  ;;  %v6177_v44 = vpop.f32.mrb[27].mxu1 }
 0xf17   :  { %v2536_v45 = vadd.f32 %v7665_v49, %v2533_v42 }
 0xf19   :  { %7002 = vtanh.f32 %v2536_v45  ;;  %v5524_v12 = vmul.f32 -1.442695, %v2536_v45 }
 0xf1c   :  { %v2702_v50 = vpop.f32.mrb[26].mxu0  ;;  %v2797_v52 = vpop.f32.mrb[28].mxu1 }
 0xf1d   :  { %v2703_v53 = vadd.f32 %v2702_v50, %v2627_v41  ;;  %v6188_v54 = vpop.f32.mrb[27].mxu0  ;;  %v6199_v56 = vpop.f32.mrb[29].mxu1 }
 0xf1f   :  { %v2706_v57 = vadd.f32 %v7563_v19, %v2703_v53 }
 0xf21   :  { %7004 = vtanh.f32 %v2706_v57  ;;  %v5527_v25 = vmul.f32 -1.442695, %v2706_v57 }
 0xf23   :  { %v7003_v58 = vpop.eup %7002 }
 0xf24   :  { %v2879_v5 = vpop.f32.mrb[28].mxu0  ;;  %v2974_v13 = vpop.f32.mrb[30].mxu1  ;;  %2546 = vrot.lane.b32.xlu0 %v7003_v58, %s7294_s3 }
 0xf25   :  { %v2880_v14 = vadd.f32 %v2879_v5, %v2797_v52  ;;  %v2978_v16 = vadd.f32 %v2974_v13, %v277_v61  ;;  %v6210_v3 = vpop.f32.mrb[29].mxu0  ;;  %v6221_v24 = vpop.f32.mrb[31].mxu1 }
 0xf27   :  { %v2883_v19 = vadd.f32 %v7857_v11, %v2880_v14  ;;  %7006 = vtanh.f32 %v2978_v16  ;;  %v5532_v28 = vmul.f32 -1.442695, %v2978_v16 }
 0xf29   :  { %7008 = vtanh.f32 %v2883_v19  ;;  %v5530_v51 = vmul.f32 -1.442695, %v2883_v19 }
 0xf2a   :  { %7010 = vpow2.f32 %v5524_v12 }
 0xf2b   :  { %v7005_v47 = vpop.eup %7004  ;;  %7012 = vpow2.f32 %v5527_v25 }
 0xf2c   :  { %2716 = vrot.lane.b32.xlu1 %v7005_v47, %s7294_s3  ;;  %7014 = vpow2.f32 %v5532_v28 }
 0xf2d   :  { %7016 = vpow2.f32 %v5530_v51 }
 0xf31   :  { %v7007_v2 = vpop.eup %7006 }
 0xf32   :  { %2988 = vrot.lane.b32.xlu1 %v7007_v2, %s7294_s3 }
 0xf33   :  { %v7009_v20 = vpop.eup %7008 }
 0xf34   :  { %2893 = vrot.lane.b32.xlu0 %v7009_v20, %s7294_s3  ;;  %v7011_v15 = vpop.eup %7010 }
 0xf35   :  { %v2540_v32 = vadd.f32 1.0, %v7011_v15  ;;  %v7013_v33 = vpop.eup %7012 }
 0xf36   :  { %v2710_v21 = vadd.f32 1.0, %v7013_v33  ;;  %v7015_v34 = vpop.eup %7014 }
 0xf37   :  { %7018 = vrcp.f32 %v2540_v32  ;;  %v7017_v35 = vpop.eup %7016  ;;  %v2982_v48 = vadd.f32 1.0, %v7015_v34 }
 0xf38   :  { %7020 = vrcp.f32 %v2710_v21  ;;  %v2887_v40 = vadd.f32 1.0, %v7017_v35 }
 0xf39   :  { %7022 = vrcp.f32 %v2982_v48 }
 0xf3a   :  { %7024 = vrcp.f32 %v2887_v40 }
 0xf41   :  { %v7019_v37 = vpop.eup %7018 }
 0xf42   :  { %v7021_v41 = vpop.eup %7020  ;;  %v2544_v56 = vmul.f32 %v7019_v37, %v7773_v60 }
 0xf43   :  { %v7023_v44 = vpop.eup %7022  ;;  %v2714_v61 = vmul.f32 %v7021_v41, %v7777_v8 }
 0xf44   :  { %v7025_v52 = vpop.eup %7024  ;;  %v2986_v16 = vmul.f32 %v7023_v44, %v7782_v22 }
 0xf45   :  { %v2891_v60 = vmul.f32 %v7025_v52, %v7786_v7 }
 0xf96   :  { %v2547_v38 = vpop.permute.xlu0 %2546 }
 0xf97   :  { %v2549_v39 = vmul.f32 %v7019_v37, %v2547_v38 }
 0xf99   :  { %2551 = vrot.lane.b32.xlu0 %v2549_v39, %s7294_s3 }
 0xf9e   :  { %v2717_v42 = vpop.permute.xlu1 %2716 }
 0xf9f   :  { %v2719_v43 = vmul.f32 %v7021_v41, %v2717_v42 }
 0xfa1   :  { %2721 = vrot.lane.b32.xlu1 %v2719_v43, %s7294_s3 }
 0xfa4   :  { %v2989_v45 = vpop.permute.xlu1 %2988 }
 0xfa5   :  { %v2991_v50 = vmul.f32 %v7023_v44, %v2989_v45 }
 0xfa6   :  { %v2894_v53 = vpop.permute.xlu0 %2893 }
 0xfa7   :  { %v2896_v54 = vmul.f32 %v7025_v52, %v2894_v53  ;;  %2993 = vrot.lane.b32.xlu1 %v2991_v50, %s7294_s3 }
 0xfa9   :  { %2898 = vrot.lane.b32.xlu0 %v2896_v54, %s7294_s3 }
0x100b   :  { %v2552_v57 = vpop.permute.xlu0 %2551 }
0x100c   :  { %v7868_v58 = vadd.f32 %v2552_v57, %v2544_v56  ;;  %v262_v56 = vcombine.high %v7447_v46, %v7447_v46  ;;  %v7950_v57 = vld [vmem:[%s8244_s4 + $0x2] ss:$0 sm:$0xff] }
0x100e   :  { %7026 = vtanh.f32 %v7868_v58 }
0x1013   :  { %v2722_v5 = vpop.permute.xlu1 %2721 }
0x1014   :  { %v7872_v13 = vadd.f32 %v2722_v5, %v2714_v61 }
0x1016   :  { %7028 = vtanh.f32 %v7872_v13 }
0x1018   :  { %v7027_v14 = vpop.eup %7026 }
0x1019   :  { %v2994_v3 = vpop.permute.xlu1 %2993  ;;  %2557 = vrot.lane.b32.xlu0 %v7027_v14, %s7294_s3 }
0x101a   :  { %v7877_v24 = vadd.f32 %v2994_v3, %v2986_v16 }
0x101b   :  { %v2899_v19 = vpop.permute.xlu0 %2898 }
0x101c   :  { %7030 = vtanh.f32 %v7877_v24  ;;  %v7881_v47 = vadd.f32 %v2899_v19, %v2891_v60 }
0x101e   :  { %7032 = vtanh.f32 %v7881_v47 }
0x1020   :  { %v7029_v8 = vpop.eup %7028 }
0x1021   :  { %2727 = vrot.lane.b32.xlu1 %v7029_v8, %s7294_s3 }
0x1026   :  { %v7031_v2 = vpop.eup %7030 }
0x1027   :  { %2999 = vrot.lane.b32.xlu1 %v7031_v2, %s7294_s3 }
0x1028   :  { %v7033_v22 = vpop.eup %7032 }
0x1029   :  { %2904 = vrot.lane.b32.xlu0 %v7033_v22, %s7294_s3 }
0x108b   :  { %v2558_v20 = vpop.permute.xlu0 %2557 }
0x108c   :  { %v7887_v12 = vmul.f32 %v7019_v37, %v2558_v20 }
0x108e   :  { %3004 = vrot.lane.b32.xlu0 %v7887_v12, %s7302_s12 }
0x1093   :  { %v2728_v7 = vpop.permute.xlu1 %2727 }
0x1094   :  { %v2730_v25 = vmul.f32 %v7021_v41, %v2728_v7 }
0x1096   :  { %3079 = vrot.lane.b32.xlu1 %v2730_v25, %s7302_s12 }
0x1099   :  { %v3000_v15 = vpop.permute.xlu1 %2999 }
0x109a   :  { %v3002_v28 = vmul.f32 %v7023_v44, %v3000_v15 }
0x109b   :  { %v2905_v51 = vpop.permute.xlu0 %2904 }
0x109c   :  { %v3425_v32 = vrot.slane %v3002_v28, %v7422_v17  ;;  %v2907_v33 = vmul.f32 %v7025_v52, %v2905_v51 }
0x109e   :  { %3249 = vrot.lane.b32.xlu0 %v2907_v33, %s7302_s12  ;;  %3426 = vrot.lane.b32.xlu1 %v3425_v32, %s7302_s12 }
0x1100   :  { %v3005_v21 = vpop.permute.xlu0 %3004 }
0x1101   :  { %6231 = vmatmul.mubr.msk.f32.vlgmr.msra.gmra.mrb[30].mxu0 %vm326_vm3, %v3005_v21 }
0x1102   :  { %6725 = vmatpush3.bf16.msra.mxu0 %v7512_v55  ;;  %6252 = vmatprep.mubr.msk.f32.mxu0 %vm7300_vm0, %v7301_v4 }
0x1103   :  { %6726 = vmatprep.subr.bf16.mxu0 %v7298_v0 }
0x1106   :  { %6728 = vmatpush3.bf16.msra.mxu0 %v7517_v62 }
0x1107   :  { %6735 = vmatprep.subr.bf16.mxu0 %v7298_v0 }
0x1108   :  { %v3080_v34 = vpop.permute.xlu1 %3079 }
0x1109   :  { %6242 = vmatmul.mubr.msk.f32.vlgmr.msra.gmra.mrb[32].mxu1 %vm326_vm3, %v3080_v34  ;;  %6253 = vmatmul.mubr.msk.f32.vlgmr.msra.gmra.mrb[32].mxu0 %vm326_vm3, %v3080_v34 }
0x110a   :  { %6731 = vmatpush3.bf16.msra.mxu1 %v7514_v59  ;;  %6737 = vmatpush3.bf16.msra.mxu0 %v7461_v1 }
0x110b   :  { %6732 = vmatprep.subr.bf16.mxu1 %v7298_v0  ;;  %6738 = vmatprep.subr.bf16.mxu0 %v7298_v0 }
0x110c   :  { %6263 = vmatprep.mubr.msk.f32.mxu1 %vm7300_vm0, %v7301_v4  ;;  %6274 = vmatprep.mubr.msk.f32.mxu0 %vm7300_vm0, %v7301_v4 }
0x110e   :  { %6734 = vmatpush3.bf16.msra.mxu1 %v7521_v63  ;;  %6740 = vmatpush3.bf16.msra.mxu0 %v7466_v9 }
0x110f   :  { %6741 = vmatprep.subr.bf16.mxu1 %v7298_v0  ;;  %6747 = vmatprep.subr.bf16.mxu0 %v7298_v0 }
0x1110   :  { %v3250_v35 = vpop.permute.xlu0 %3249  ;;  %v3427_v37 = vpop.permute.xlu1 %3426 }
0x1111   :  { %6264 = vmatmul.mubr.msk.f32.vlgmr.msra.gmra.mrb[34].mxu1 %vm326_vm3, %v3250_v35  ;;  %6275 = vmatmul.mubr.msk.f32.vlgmr.msra.gmra.mrb[34].mxu0 %vm326_vm3, %v3250_v35 }
0x1112   :  { %6743 = vmatpush3.bf16.msra.mxu1 %v7463_v6  ;;  %6749 = vmatpush3.bf16.msra.mxu0 %v7424_v18 }
0x1113   :  { %6744 = vmatprep.subr.bf16.mxu1 %v7298_v0  ;;  %6750 = vmatprep.subr.bf16.mxu0 %v7298_v0 }
0x1114   :  { %6285 = vmatprep.mubr.msk.f32.mxu1 %vm7300_vm0, %v7301_v4  ;;  %6296 = vmatprep.mubr.msk.f32.mxu0 %vm7300_vm0, %v7301_v4 }
0x1116   :  { %6746 = vmatpush3.bf16.msra.mxu1 %v7470_v10  ;;  %6752 = vmatpush3.bf16.msra.mxu0 %v7430_v36 }
0x1117   :  { %6753 = vmatprep.subr.bf16.mxu1 %v7298_v0  ;;  %6759 = vmatprep.subr.bf16.mxu0 %v7298_v0 }
0x1119   :  { %6286 = vmatmul.mubr.msk.f32.vlgmr.msra.gmra.mrb[36].mxu1 %vm326_vm3, %v3427_v37  ;;  %6297 = vmatmul.mubr.msk.f32.vlgmr.msra.gmra.mrb[36].mxu0 %vm326_vm3, %v3427_v37 }
0x111a   :  { %6755 = vmatpush3.bf16.msra.mxu1 %v7590_v23  ;;  %6307 = vmatprep.mubr.msk.f32.mxu1 %vm7300_vm0, %v7301_v4 }
0x111b   :  { %6756 = vmatprep.subr.bf16.mxu1 %v7298_v0  ;;  %6761 = vmatpush3.bf16.msra.mxu0 %v7592_v27 }
0x111c   :  { %6762 = vmatprep.subr.bf16.mxu0 %v7298_v0  ;;  %6318 = vmatprep.mubr.msk.f32.mxu0 %vm7300_vm0, %v7301_v4 }
0x111e   :  { %6758 = vmatpush3.bf16.msra.mxu1 %v7596_v30 }
0x111f   :  { %6765 = vmatprep.subr.bf16.mxu1 %v7298_v0  ;;  %6764 = vmatpush3.bf16.msra.mxu0 %v7600_v31 }
0x1120   :  { %6771 = vmatprep.subr.bf16.mxu0 %v7298_v0 }
0x11d4   :  { %v3074_v48 = vpop.f32.mrb[30].mxu0 }
0x11d5   :  { %v6232_v38 = vpop.f32.mrb[31].mxu0 }
0x11dc   :  { %v3149_v39 = vpop.f32.mrb[32].mxu1  ;;  %v3244_v40 = vpop.f32.mrb[32].mxu0 }
0x11dd   :  { %v3150_v41 = vadd.f32 %v3149_v39, %v3074_v48  ;;  %v6243_v42 = vpop.f32.mrb[33].mxu1  ;;  %v6254_v43 = vpop.f32.mrb[33].mxu0 }
0x11df   :  { %v3153_v44 = vadd.f32 %v7665_v49, %v3150_v41  ;;  %v7954_v49 = vrot.slane %v262_v56, %v7422_v17 }
0x11e1   :  { %7034 = vtanh.f32 %v3153_v44  ;;  %v5535_v7 = vmul.f32 -1.442695, %v3153_v44 }
0x11e4   :  { %v3319_v45 = vpop.f32.mrb[34].mxu1  ;;  %v3414_v50 = vpop.f32.mrb[34].mxu0 }
0x11e5   :  { %v3320_v52 = vadd.f32 %v3319_v45, %v3244_v40  ;;  %v6265_v53 = vpop.f32.mrb[35].mxu1  ;;  %v6276_v54 = vpop.f32.mrb[35].mxu0 }
0x11e7   :  { %v3323_v61 = vadd.f32 %v7950_v57, %v3320_v52 }
0x11e9   :  { %7036 = vtanh.f32 %v3323_v61  ;;  %v5538_v25 = vmul.f32 -1.442695, %v3323_v61 }
0x11eb   :  { %v7035_v5 = vpop.eup %7034 }
0x11ec   :  { %v3496_v14 = vpop.f32.mrb[36].mxu1  ;;  %3163 = vrot.lane.b32.xlu0 %v7035_v5, %s7294_s3  ;;  %v3591_v16 = vpop.f32.mrb[36].mxu0 }
0x11ed   :  { %v3497_v3 = vadd.f32 %v3496_v14, %v3414_v50  ;;  %v6287_v60 = vpop.f32.mrb[37].mxu1  ;;  %v3595_v46 = vadd.f32 %v3591_v16, %v7954_v49  ;;  %v6298_v19 = vpop.f32.mrb[37].mxu0 }
0x11ef   :  { %v3500_v8 = vadd.f32 %v7857_v11, %v3497_v3  ;;  %7038 = vtanh.f32 %v3595_v46  ;;  %v5543_v28 = vmul.f32 -1.442695, %v3595_v46 }
0x11f1   :  { %7040 = vtanh.f32 %v3500_v8  ;;  %v5541_v51 = vmul.f32 -1.442695, %v3500_v8 }
0x11f2   :  { %7042 = vpow2.f32 %v5535_v7 }
0x11f3   :  { %v7037_v2 = vpop.eup %7036  ;;  %7044 = vpow2.f32 %v5538_v25 }
0x11f4   :  { %3333 = vrot.lane.b32.xlu1 %v7037_v2, %s7294_s3  ;;  %7046 = vpow2.f32 %v5543_v28 }
0x11f5   :  { %7048 = vpow2.f32 %v5541_v51 }
0x11f9   :  { %v7039_v22 = vpop.eup %7038 }
0x11fa   :  { %3605 = vrot.lane.b32.xlu1 %v7039_v22, %s7294_s3 }
0x11fb   :  { %v7041_v20 = vpop.eup %7040 }
0x11fc   :  { %3510 = vrot.lane.b32.xlu0 %v7041_v20, %s7294_s3  ;;  %v7043_v15 = vpop.eup %7042 }
0x11fd   :  { %v3157_v32 = vadd.f32 1.0, %v7043_v15  ;;  %v7045_v33 = vpop.eup %7044 }
0x11fe   :  { %v3327_v21 = vadd.f32 1.0, %v7045_v33  ;;  %v7047_v34 = vpop.eup %7046 }
0x11ff   :  { %7050 = vrcp.f32 %v3157_v32  ;;  %v7049_v35 = vpop.eup %7048  ;;  %v3599_v48 = vadd.f32 1.0, %v7047_v34 }
0x1200   :  { %7052 = vrcp.f32 %v3327_v21  ;;  %v3504_v40 = vadd.f32 1.0, %v7049_v35 }
0x1201   :  { %7054 = vrcp.f32 %v3599_v48 }
0x1202   :  { %7056 = vrcp.f32 %v3504_v40 }
0x1209   :  { %v7051_v37 = vpop.eup %7050 }
0x120a   :  { %v7053_v41 = vpop.eup %7052  ;;  %v3161_v56 = vmul.f32 %v7051_v37, %v7868_v58 }
0x120b   :  { %v7055_v44 = vpop.eup %7054  ;;  %v3331_v14 = vmul.f32 %v7053_v41, %v7872_v13 }
0x120c   :  { %v7057_v52 = vpop.eup %7056  ;;  %v3603_v46 = vmul.f32 %v7055_v44, %v7877_v24 }
0x120d   :  { %v3508_v58 = vmul.f32 %v7057_v52, %v7881_v47  ;;  %v5291_v47 = vcombine.low %v7699_v29, %v7792_v26 }
0x120f   :  { %v7991_v28 = vrot.slane %v5291_v47, %v7422_v17 }
0x125e   :  { %v3164_v38 = vpop.permute.xlu0 %3163 }
0x125f   :  { %v3166_v39 = vmul.f32 %v7051_v37, %v3164_v38 }
0x1261   :  { %3168 = vrot.lane.b32.xlu0 %v3166_v39, %s7294_s3 }
0x1266   :  { %v3334_v42 = vpop.permute.xlu1 %3333 }
0x1267   :  { %v3336_v43 = vmul.f32 %v7053_v41, %v3334_v42 }
0x1269   :  { %3338 = vrot.lane.b32.xlu1 %v3336_v43, %s7294_s3 }
0x126c   :  { %v3606_v45 = vpop.permute.xlu1 %3605 }
0x126d   :  { %v3608_v50 = vmul.f32 %v7055_v44, %v3606_v45  ;;  %v8054_v45 = vld [vmem:[%s8244_s4 + $0x3] ss:$0 sm:$0xff] }
0x126e   :  { %v3511_v53 = vpop.permute.xlu0 %3510 }
0x126f   :  { %v3513_v54 = vmul.f32 %v7057_v52, %v3511_v53  ;;  %3610 = vrot.lane.b32.xlu1 %v3608_v50, %s7294_s3 }
0x1271   :  { %3515 = vrot.lane.b32.xlu0 %v3513_v54, %s7294_s3 }
0x12d3   :  { %v3169_v61 = vpop.permute.xlu0 %3168 }
0x12d4   :  { %v7967_v5 = vadd.f32 %v3169_v61, %v3161_v56 }
0x12d6   :  { %7058 = vtanh.f32 %v7967_v5 }
0x12db   :  { %v3339_v16 = vpop.permute.xlu1 %3338 }
0x12dc   :  { %v7971_v3 = vadd.f32 %v3339_v16, %v3331_v14 }
0x12de   :  { %7060 = vtanh.f32 %v7971_v3 }
0x12e0   :  { %v7059_v60 = vpop.eup %7058 }
0x12e1   :  { %3174 = vrot.lane.b32.xlu0 %v7059_v60, %s7294_s3  ;;  %v3611_v19 = vpop.permute.xlu1 %3610  ;;  %v278_v60 = vcombine.high %v7954_v49, %v7954_v49 }
0x12e2   :  { %v7976_v8 = vadd.f32 %v3611_v19, %v3603_v46 }
0x12e3   :  { %v3516_v2 = vpop.permute.xlu0 %3515 }
0x12e4   :  { %7062 = vtanh.f32 %v7976_v8  ;;  %v7980_v22 = vadd.f32 %v3516_v2, %v3508_v58 }
0x12e6   :  { %7064 = vtanh.f32 %v7980_v22 }
0x12e8   :  { %v7061_v13 = vpop.eup %7060 }
0x12e9   :  { %3344 = vrot.lane.b32.xlu1 %v7061_v13, %s7294_s3 }
0x12ee   :  { %v7063_v20 = vpop.eup %7062 }
0x12ef   :  { %3616 = vrot.lane.b32.xlu1 %v7063_v20, %s7294_s3 }
0x12f0   :  { %v7065_v24 = vpop.eup %7064 }
0x12f1   :  { %3521 = vrot.lane.b32.xlu0 %v7065_v24, %s7294_s3 }
0x1353   :  { %v3175_v7 = vpop.permute.xlu0 %3174 }
0x1354   :  { %v3177_v25 = vmul.f32 %v7051_v37, %v3175_v7 }
0x1356   :  { %v5292_v15 = vcombine.low %v7887_v12, %v3177_v25  ;;  %3621 = vrot.lane.b32.xlu0 %v3177_v25, %s7302_s12 }
0x1358   :  { %v7994_v51 = vrot.slane %v5292_v15, %v7422_v17 }
0x135a   :  { %v5307_v32 = vcombine.low %v7991_v28, %v7994_v51 }
0x135b   :  { %v3345_v33 = vpop.permute.xlu1 %3344 }
0x135c   :  { %v3347_v21 = vmul.f32 %v7053_v41, %v3345_v33 }
0x135e   :  { %3696 = vrot.lane.b32.xlu1 %v3347_v21, %s7302_s12 }
0x1361   :  { %v3617_v34 = vpop.permute.xlu1 %3616 }
0x1362   :  { %v3619_v29 = vmul.f32 %v7055_v44, %v3617_v34 }
0x1363   :  { %v3522_v26 = vpop.permute.xlu0 %3521 }
0x1364   :  { %v4042_v12 = vrot.slane %v3619_v29, %v7422_v17  ;;  %v3524_v35 = vmul.f32 %v7057_v52, %v3522_v26 }
0x1366   :  { %3866 = vrot.lane.b32.xlu0 %v3524_v35, %s7302_s12  ;;  %4043 = vrot.lane.b32.xlu1 %v4042_v12, %s7302_s12 }
0x13c8   :  { %v3622_v37 = vpop.permute.xlu0 %3621 }
0x13c9   :  { %6308 = vmatmul.mubr.msk.f32.vlgmr.msra.gmra.mrb[38].mxu1 %vm326_vm3, %v3622_v37 }
0x13ca   :  { %6767 = vmatpush3.bf16.msra.mxu1 %v7512_v55  ;;  %6329 = vmatprep.mubr.msk.f32.mxu1 %vm7300_vm0, %v7301_v4 }
0x13cb   :  { %6768 = vmatprep.subr.bf16.mxu1 %v7298_v0 }
0x13ce   :  { %6770 = vmatpush3.bf16.msra.mxu1 %v7517_v62 }
0x13cf   :  { %6777 = vmatprep.subr.bf16.mxu1 %v7298_v0 }
0x13d0   :  { %v3697_v48 = vpop.permute.xlu1 %3696 }
0x13d1   :  { %6319 = vmatmul.mubr.msk.f32.vlgmr.msra.gmra.mrb[38].mxu0 %vm326_vm3, %v3697_v48  ;;  %6330 = vmatmul.mubr.msk.f32.vlgmr.msra.gmra.mrb[40].mxu1 %vm326_vm3, %v3697_v48 }
0x13d2   :  { %6773 = vmatpush3.bf16.msra.mxu0 %v7514_v59  ;;  %6779 = vmatpush3.bf16.msra.mxu1 %v7461_v1 }
0x13d3   :  { %6774 = vmatprep.subr.bf16.mxu0 %v7298_v0  ;;  %6780 = vmatprep.subr.bf16.mxu1 %v7298_v0 }
0x13d4   :  { %6340 = vmatprep.mubr.msk.f32.mxu0 %vm7300_vm0, %v7301_v4  ;;  %6351 = vmatprep.mubr.msk.f32.mxu1 %vm7300_vm0, %v7301_v4 }
0x13d6   :  { %6776 = vmatpush3.bf16.msra.mxu0 %v7521_v63  ;;  %6782 = vmatpush3.bf16.msra.mxu1 %v7466_v9 }
0x13d7   :  { %6783 = vmatprep.subr.bf16.mxu0 %v7298_v0  ;;  %6789 = vmatprep.subr.bf16.mxu1 %v7298_v0 }
0x13d8   :  { %v3867_v38 = vpop.permute.xlu0 %3866  ;;  %v4044_v39 = vpop.permute.xlu1 %4043 }
0x13d9   :  { %6341 = vmatmul.mubr.msk.f32.vlgmr.msra.gmra.mrb[40].mxu0 %vm326_vm3, %v3867_v38  ;;  %6352 = vmatmul.mubr.msk.f32.vlgmr.msra.gmra.mrb[42].mxu1 %vm326_vm3, %v3867_v38 }
0x13da   :  { %6785 = vmatpush3.bf16.msra.mxu0 %v7463_v6  ;;  %6791 = vmatpush3.bf16.msra.mxu1 %v7424_v18 }
0x13db   :  { %6786 = vmatprep.subr.bf16.mxu0 %v7298_v0  ;;  %6792 = vmatprep.subr.bf16.mxu1 %v7298_v0 }
0x13dc   :  { %6362 = vmatprep.mubr.msk.f32.mxu0 %vm7300_vm0, %v7301_v4  ;;  %6373 = vmatprep.mubr.msk.f32.mxu1 %vm7300_vm0, %v7301_v4 }
0x13de   :  { %6788 = vmatpush3.bf16.msra.mxu0 %v7470_v10  ;;  %6794 = vmatpush3.bf16.msra.mxu1 %v7430_v36 }
0x13df   :  { %6795 = vmatprep.subr.bf16.mxu0 %v7298_v0  ;;  %6801 = vmatprep.subr.bf16.mxu1 %v7298_v0 }
0x13e1   :  { %6363 = vmatmul.mubr.msk.f32.vlgmr.msra.gmra.mrb[42].mxu0 %vm326_vm3, %v4044_v39  ;;  %6374 = vmatmul.mubr.msk.f32.vlgmr.msra.gmra.mrb[44].mxu1 %vm326_vm3, %v4044_v39 }
0x13e2   :  { %6797 = vmatpush3.bf16.msra.mxu0 %v7590_v23  ;;  %6384 = vmatprep.mubr.msk.f32.mxu0 %vm7300_vm0, %v7301_v4 }
0x13e3   :  { %6798 = vmatprep.subr.bf16.mxu0 %v7298_v0  ;;  %6803 = vmatpush3.bf16.msra.mxu1 %v7592_v27 }
0x13e4   :  { %6804 = vmatprep.subr.bf16.mxu1 %v7298_v0  ;;  %6395 = vmatprep.mubr.msk.f32.mxu1 %vm7300_vm0, %v7301_v4 }
0x13e6   :  { %6800 = vmatpush3.bf16.msra.mxu0 %v7596_v30 }
0x13e7   :  { %6807 = vmatprep.subr.bf16.mxu0 %v7298_v0  ;;  %6806 = vmatpush3.bf16.msra.mxu1 %v7600_v31 }
0x13e8   :  { %6813 = vmatprep.subr.bf16.mxu1 %v7298_v0 }
0x149c   :  { %v3691_v18 = vpop.f32.mrb[38].mxu1 }
0x149d   :  { %v6309_v36 = vpop.f32.mrb[39].mxu1 }
0x14a4   :  { %v3766_v40 = vpop.f32.mrb[38].mxu0  ;;  %v3861_v41 = vpop.f32.mrb[40].mxu1 }
0x14a5   :  { %v3767_v42 = vadd.f32 %v3766_v40, %v3691_v18  ;;  %v6320_v43 = vpop.f32.mrb[39].mxu0  ;;  %v6331_v44 = vpop.f32.mrb[41].mxu1 }
0x14a7   :  { %v3770_v50 = vadd.f32 %v8054_v45, %v3767_v42 }
0x14a9   :  { %7066 = vtanh.f32 %v3770_v50  ;;  %v5546_v49 = vmul.f32 -1.442695, %v3770_v50 }
0x14ac   :  { %v3936_v52 = vpop.f32.mrb[40].mxu0  ;;  %v4031_v53 = vpop.f32.mrb[42].mxu1 }
0x14ad   :  { %v3937_v54 = vadd.f32 %v3936_v52, %v3861_v41  ;;  %v6342_v56 = vpop.f32.mrb[41].mxu0  ;;  %v6353_v61 = vpop.f32.mrb[43].mxu1 }
0x14af   :  { %v3940_v14 = vadd.f32 %v7950_v57, %v3937_v54 }
0x14b1   :  { %7068 = vtanh.f32 %v3940_v14  ;;  %v5549_v15 = vmul.f32 -1.442695, %v3940_v14 }
0x14b3   :  { %v7067_v16 = vpop.eup %7066 }
0x14b4   :  { %v4113_v46 = vpop.f32.mrb[42].mxu0  ;;  %v4208_v19 = vpop.f32.mrb[44].mxu1  ;;  %3780 = vrot.lane.b32.xlu0 %v7067_v16, %s7294_s3 }
0x14b5   :  { %v4114_v58 = vadd.f32 %v4113_v46, %v4031_v53  ;;  %v4212_v2 = vadd.f32 %v4208_v19, %v278_v60  ;;  %v6364_v13 = vpop.f32.mrb[43].mxu0  ;;  %v6375_v20 = vpop.f32.mrb[45].mxu1 }
0x14b7   :  { %v4117_v24 = vadd.f32 %v7857_v11, %v4114_v58  ;;  %7070 = vtanh.f32 %v4212_v2  ;;  %v5554_v21 = vmul.f32 -1.442695, %v4212_v2 }
0x14b9   :  { %7072 = vtanh.f32 %v4117_v24  ;;  %v5552_v34 = vmul.f32 -1.442695, %v4117_v24 }
0x14ba   :  { %7074 = vpow2.f32 %v5546_v49 }
0x14bb   :  { %v7069_v7 = vpop.eup %7068  ;;  %7076 = vpow2.f32 %v5549_v15 }
0x14bc   :  { %3950 = vrot.lane.b32.xlu1 %v7069_v7, %s7294_s3  ;;  %7078 = vpow2.f32 %v5554_v21 }
0x14bd   :  { %7080 = vpow2.f32 %v5552_v34 }
0x14c1   :  { %v7071_v47 = vpop.eup %7070 }
0x14c2   :  { %4222 = vrot.lane.b32.xlu1 %v7071_v47, %s7294_s3 }
0x14c3   :  { %v7073_v25 = vpop.eup %7072 }
0x14c4   :  { %4127 = vrot.lane.b32.xlu0 %v7073_v25, %s7294_s3  ;;  %v7075_v33 = vpop.eup %7074 }
0x14c5   :  { %v3774_v29 = vadd.f32 1.0, %v7075_v33  ;;  %v7077_v26 = vpop.eup %7076 }
0x14c6   :  { %v3944_v12 = vadd.f32 1.0, %v7077_v26  ;;  %v7079_v35 = vpop.eup %7078 }
0x14c7   :  { %7082 = vrcp.f32 %v3774_v29  ;;  %v7081_v37 = vpop.eup %7080  ;;  %v4216_v38 = vadd.f32 1.0, %v7079_v35 }
0x14c8   :  { %7084 = vrcp.f32 %v3944_v12  ;;  %v4121_v36 = vadd.f32 1.0, %v7081_v37 }
0x14c9   :  { %7086 = vrcp.f32 %v4216_v38 }
0x14ca   :  { %7088 = vrcp.f32 %v4121_v36 }
0x14d1   :  { %v7083_v48 = vpop.eup %7082 }
0x14d2   :  { %v7085_v40 = vpop.eup %7084  ;;  %v3778_v56 = vmul.f32 %v7083_v48, %v7967_v5 }
0x14d3   :  { %v7087_v43 = vpop.eup %7086  ;;  %v3948_v16 = vmul.f32 %v7085_v40, %v7971_v3 }
0x14d4   :  { %v7089_v52 = vpop.eup %7088  ;;  %v4220_v58 = vmul.f32 %v7087_v43, %v7976_v8 }
0x14d5   :  { %v4125_v5 = vmul.f32 %v7089_v52, %v7980_v22 }
0x1526   :  { %v3781_v39 = vpop.permute.xlu0 %3780 }
0x1527   :  { %v3783_v18 = vmul.f32 %v7083_v48, %v3781_v39 }
0x1529   :  { %3785 = vrot.lane.b32.xlu0 %v3783_v18, %s7294_s3 }
0x152e   :  { %v3951_v41 = vpop.permute.xlu1 %3950 }
0x152f   :  { %v3953_v42 = vmul.f32 %v7085_v40, %v3951_v41 }
0x1531   :  { %3955 = vrot.lane.b32.xlu1 %v3953_v42, %s7294_s3 }
0x1534   :  { %v4223_v44 = vpop.permute.xlu1 %4222 }
0x1535   :  { %v4225_v50 = vmul.f32 %v7087_v43, %v4223_v44 }
0x1536   :  { %v4128_v53 = vpop.permute.xlu0 %4127 }
0x1537   :  { %v4130_v54 = vmul.f32 %v7089_v52, %v4128_v53  ;;  %4227 = vrot.lane.b32.xlu1 %v4225_v50, %s7294_s3 }
0x1539   :  { %4132 = vrot.lane.b32.xlu0 %v4130_v54, %s7294_s3 }
0x159b   :  { %v3786_v61 = vpop.permute.xlu0 %3785 }
0x159c   :  { %v8070_v14 = vadd.f32 %v3786_v61, %v3778_v56 }
0x159e   :  { %7090 = vtanh.f32 %v8070_v14 }
0x15a3   :  { %v3956_v60 = vpop.permute.xlu1 %3955 }
0x15a4   :  { %v8074_v46 = vadd.f32 %v3956_v60, %v3948_v16 }
0x15a6   :  { %7092 = vtanh.f32 %v8074_v46 }
0x15a8   :  { %v7091_v19 = vpop.eup %7090 }
0x15a9   :  { %v4228_v2 = vpop.permute.xlu1 %4227  ;;  %3791 = vrot.lane.b32.xlu0 %v7091_v19, %s7294_s3 }
0x15aa   :  { %v4230_v13 = vadd.f32 %v4228_v2, %v4220_v58 }
0x15ab   :  { %v4133_v20 = vpop.permute.xlu0 %4132 }
0x15ac   :  { %7094 = vtanh.f32 %v4230_v13  ;;  %v8080_v24 = vadd.f32 %v4133_v20, %v4125_v5 }
0x15ae   :  { %7096 = vtanh.f32 %v8080_v24 }
0x15b0   :  { %v7093_v3 = vpop.eup %7092 }
0x15b1   :  { %3961 = vrot.lane.b32.xlu1 %v7093_v3, %s7294_s3 }
0x15b6   :  { %v7095_v7 = vpop.eup %7094 }
0x15b7   :  { %4233 = vrot.lane.b32.xlu1 %v7095_v7, %s7294_s3 }
0x15b8   :  { %v7097_v47 = vpop.eup %7096 }
0x15b9   :  { %4138 = vrot.lane.b32.xlu0 %v7097_v47, %s7294_s3 }
0x161b   :  { %v3792_v8 = vpop.permute.xlu0 %3791 }
0x161c   :  { %v8086_v25 = vmul.f32 %v7083_v48, %v3792_v8 }
0x161e   :  { %4238 = vrot.lane.b32.xlu0 %v8086_v25, %s7302_s12 }
0x1623   :  { %v3962_v22 = vpop.permute.xlu1 %3961 }
0x1624   :  { %v3964_v49 = vmul.f32 %v7085_v40, %v3962_v22 }
0x1626   :  { %4313 = vrot.lane.b32.xlu1 %v3964_v49, %s7302_s12 }
0x1629   :  { %v4234_v15 = vpop.permute.xlu1 %4233 }
0x162a   :  { %v4236_v33 = vmul.f32 %v7087_v43, %v4234_v15 }
0x162b   :  { %v4139_v21 = vpop.permute.xlu0 %4138 }
0x162c   :  { %v4659_v34 = vrot.slane %v4236_v33, %v7422_v17  ;;  %v4141_v29 = vmul.f32 %v7089_v52, %v4139_v21 }
0x162e   :  { %4483 = vrot.lane.b32.xlu0 %v4141_v29, %s7302_s12  ;;  %4660 = vrot.lane.b32.xlu1 %v4659_v34, %s7302_s12 }
0x1690   :  { %v4239_v26 = vpop.permute.xlu0 %4238 }
0x1691   :  { %6385 = vmatmul.mubr.msk.f32.vlgmr.msra.gmra.mrb[44].mxu0 %vm326_vm3, %v4239_v26 }
0x1692   :  { %6809 = vmatpush3.bf16.msra.mxu0 %v7512_v55  ;;  %6406 = vmatprep.mubr.msk.f32.mxu0 %vm7300_vm0, %v7301_v4 }
0x1693   :  { %6810 = vmatprep.subr.bf16.mxu0 %v7298_v0 }
0x1696   :  { %6812 = vmatpush3.bf16.msra.mxu0 %v7517_v62 }
0x1697   :  { %6819 = vmatprep.subr.bf16.mxu0 %v7298_v0 }
0x1698   :  { %v4314_v12 = vpop.permute.xlu1 %4313 }
0x1699   :  { %6396 = vmatmul.mubr.msk.f32.vlgmr.msra.gmra.mrb[46].mxu1 %vm326_vm3, %v4314_v12  ;;  %6407 = vmatmul.mubr.msk.f32.vlgmr.msra.gmra.mrb[46].mxu0 %vm326_vm3, %v4314_v12 }
0x169a   :  { %6815 = vmatpush3.bf16.msra.mxu1 %v7514_v59  ;;  %6821 = vmatpush3.bf16.msra.mxu0 %v7461_v1 }
0x169b   :  { %6816 = vmatprep.subr.bf16.mxu1 %v7298_v0  ;;  %6822 = vmatprep.subr.bf16.mxu0 %v7298_v0 }
0x169c   :  { %6417 = vmatprep.mubr.msk.f32.mxu1 %vm7300_vm0, %v7301_v4  ;;  %6428 = vmatprep.mubr.msk.f32.mxu0 %vm7300_vm0, %v7301_v4 }
0x169e   :  { %6818 = vmatpush3.bf16.msra.mxu1 %v7521_v63  ;;  %6824 = vmatpush3.bf16.msra.mxu0 %v7466_v9 }
0x169f   :  { %6825 = vmatprep.subr.bf16.mxu1 %v7298_v0  ;;  %6831 = vmatprep.subr.bf16.mxu0 %v7298_v0 }
0x16a0   :  { %v4484_v35 = vpop.permute.xlu0 %4483  ;;  %v4661_v1 = vpop.permute.xlu1 %4660 }
0x16a1   :  { %6418 = vmatmul.mubr.msk.f32.vlgmr.msra.gmra.mrb[48].mxu1 %vm326_vm3, %v4484_v35  ;;  %6429 = vmatmul.mubr.msk.f32.vlgmr.msra.gmra.mrb[48].mxu0 %vm326_vm3, %v4484_v35 }
0x16a2   :  { %6827 = vmatpush3.bf16.msra.mxu1 %v7463_v6  ;;  %6439 = vmatprep.mubr.msk.f32.mxu1 %vm7300_vm0, %v7301_v4 }
0x16a3   :  { %6828 = vmatprep.subr.bf16.mxu1 %v7298_v0  ;;  %6833 = vmatpush3.bf16.msra.mxu0 %v7590_v23 }
0x16a4   :  { %6834 = vmatprep.subr.bf16.mxu0 %v7298_v0  ;;  %6450 = vmatprep.mubr.msk.f32.mxu0 %vm7300_vm0, %v7301_v4 }
0x16a6   :  { %6830 = vmatpush3.bf16.msra.mxu1 %v7470_v10 }
0x16a7   :  { %6836 = vmatpush3.bf16.msra.mxu0 %v7596_v30  ;;  %6837 = vmatprep.subr.bf16.mxu1 %v7298_v0 }
0x16a8   :  { %6843 = vmatprep.subr.bf16.mxu0 %v7298_v0 }
0x16a9   :  { %6440 = vmatmul.mubr.msk.f32.vlgmr.msra.gmra.mrb[50].mxu1 %vm326_vm3, %v4661_v1 }
0x16aa   :  { %6839 = vmatpush3.bf16.msra.mxu1 %v7592_v27  ;;  %6461 = vmatprep.mubr.msk.f32.mxu1 %vm7300_vm0, %v7301_v4 }
0x16ab   :  { %6840 = vmatprep.subr.bf16.mxu1 %v7298_v0 }
0x16ae   :  { %6842 = vmatpush3.bf16.msra.mxu1 %v7600_v31 }
0x16af   :  { %6849 = vmatprep.subr.bf16.mxu1 %v7298_v0 }
0x1764   :  { %v4308_v6 = vpop.f32.mrb[44].mxu0 }
0x1765   :  { %v6386_v9 = vpop.f32.mrb[45].mxu0 }
0x176c   :  { %v4383_v10 = vpop.f32.mrb[46].mxu1  ;;  %v4478_v37 = vpop.f32.mrb[46].mxu0 }
0x176d   :  { %v4384_v48 = vadd.f32 %v4383_v10, %v4308_v6  ;;  %v6397_v38 = vpop.f32.mrb[47].mxu1  ;;  %v6408_v39 = vpop.f32.mrb[47].mxu0 }
0x176f   :  { %v4387_v18 = vadd.f32 %v8054_v45, %v4384_v48 }
0x1771   :  { %7098 = vtanh.f32 %v4387_v18  ;;  %v5557_v60 = vmul.f32 -1.442695, %v4387_v18 }
0x1774   :  { %v4553_v36 = vpop.f32.mrb[48].mxu1  ;;  %v4648_v40 = vpop.f32.mrb[48].mxu0 }
0x1775   :  { %v4554_v41 = vadd.f32 %v4553_v36, %v4478_v37  ;;  %v6419_v42 = vpop.f32.mrb[49].mxu1  ;;  %v6430_v43 = vpop.f32.mrb[49].mxu0 }
0x1777   :  { %v4557_v44 = vadd.f32 %v7950_v57, %v4554_v41 }
0x1779   :  { %7100 = vtanh.f32 %v4557_v44  ;;  %v5560_v19 = vmul.f32 -1.442695, %v4557_v44 }
0x177b   :  { %v7099_v50 = vpop.eup %7098 }
0x177c   :  { %v4730_v52 = vpop.f32.mrb[50].mxu1  ;;  %4397 = vrot.lane.b32.xlu0 %v7099_v50, %s7294_s3 }
0x177d   :  { %v4731_v53 = vadd.f32 %v4730_v52, %v4648_v40  ;;  %v6441_v54 = vpop.f32.mrb[51].mxu1 }
0x177f   :  { %v4734_v56 = vadd.f32 %v7857_v11, %v4731_v53 }
0x1781   :  { %7102 = vtanh.f32 %v4734_v56  ;;  %v5563_v2 = vmul.f32 -1.442695, %v4734_v56 }
0x1782   :  { %7104 = vpow2.f32 %v5557_v60 }
0x1783   :  { %v7101_v61 = vpop.eup %7100  ;;  %7106 = vpow2.f32 %v5560_v19 }
0x1784   :  { %4567 = vrot.lane.b32.xlu1 %v7101_v61, %s7294_s3  ;;  %7108 = vpow2.f32 %v5563_v2 }
0x178b   :  { %v7103_v16 = vpop.eup %7102 }
0x178c   :  { %4744 = vrot.lane.b32.xlu0 %v7103_v16, %s7294_s3  ;;  %v7105_v58 = vpop.eup %7104 }
0x178d   :  { %v4391_v13 = vadd.f32 1.0, %v7105_v58  ;;  %v7107_v5 = vpop.eup %7106 }
0x178e   :  { %v4561_v20 = vadd.f32 1.0, %v7107_v5  ;;  %v7109_v11 = vpop.eup %7108 }
0x178f   :  { %7110 = vrcp.f32 %v4391_v13  ;;  %v4738_v8 = vadd.f32 1.0, %v7109_v11 }
0x1790   :  { %7112 = vrcp.f32 %v4561_v20 }
0x1791   :  { %7114 = vrcp.f32 %v4738_v8 }
0x1799   :  { %v7111_v3 = vpop.eup %7110 }
0x179a   :  { %v7113_v22 = vpop.eup %7112  ;;  %v4395_v29 = vmul.f32 %v7111_v3, %v8070_v14 }
0x179b   :  { %v7115_v33 = vpop.eup %7114  ;;  %v4565_v35 = vmul.f32 %v7113_v22, %v8074_v46 }
0x179c   :  { %v4742_v10 = vmul.f32 %v7115_v33, %v8080_v24 }
0x17ee   :  { %v4398_v7 = vpop.permute.xlu0 %4397 }
0x17ef   :  { %v4400_v47 = vmul.f32 %v7111_v3, %v4398_v7 }
0x17f1   :  { %4402 = vrot.lane.b32.xlu1 %v4400_v47, %s7294_s3 }
0x17f6   :  { %v4568_v49 = vpop.permute.xlu1 %4567 }
0x17f7   :  { %v4570_v15 = vmul.f32 %v7113_v22, %v4568_v49 }
0x17f9   :  { %4572 = vrot.lane.b32.xlu0 %v4570_v15, %s7294_s3 }
0x17fe   :  { %v4745_v21 = vpop.permute.xlu0 %4744 }
0x17ff   :  { %v4747_v34 = vmul.f32 %v7115_v33, %v4745_v21 }
0x1801   :  { %4749 = vrot.lane.b32.xlu1 %v4747_v34, %s7294_s3 }
0x1863   :  { %v4403_v26 = vpop.permute.xlu1 %4402 }
0x1864   :  { %v8146_v12 = vadd.f32 %v4403_v26, %v4395_v29 }
0x1866   :  { %7116 = vtanh.f32 %v8146_v12 }
0x186b   :  { %v4573_v1 = vpop.permute.xlu0 %4572 }
0x186c   :  { %v8150_v6 = vadd.f32 %v4573_v1, %v4565_v35 }
0x186e   :  { %7118 = vtanh.f32 %v8150_v6 }
0x1870   :  { %v7117_v9 = vpop.eup %7116 }
0x1871   :  { %4408 = vrot.lane.b32.xlu0 %v7117_v9, %s7294_s3 }
0x1873   :  { %v4750_v37 = vpop.permute.xlu1 %4749 }
0x1874   :  { %v4752_v48 = vadd.f32 %v4750_v37, %v4742_v10 }
0x1876   :  { %7120 = vtanh.f32 %v4752_v48 }
0x1878   :  { %v7119_v14 = vpop.eup %7118 }
0x1879   :  { %4578 = vrot.lane.b32.xlu1 %v7119_v14, %s7294_s3 }
0x1880   :  { %v7121_v38 = vpop.eup %7120 }
0x1881   :  { %4755 = vrot.lane.b32.xlu0 %v7121_v38, %s7294_s3 }
0x18e3   :  { %v4409_v46 = vpop.permute.xlu0 %4408 }
0x18e4   :  { %v8157_v39 = vmul.f32 %v7111_v3, %v4409_v46 }
0x18e6   :  { %4760 = vrot.lane.b32.xlu1 %v8157_v39, %s7302_s12  ;;  %v5308_v51 = vcombine.low %v8086_v25, %v8157_v39 }
0x18eb   :  { %v4579_v18 = vpop.permute.xlu1 %4578 }
0x18ec   :  { %v4581_v36 = vmul.f32 %v7113_v22, %v4579_v18 }
0x18ee   :  { %4835 = vrot.lane.b32.xlu0 %v4581_v36, %s7302_s12 }
0x18f3   :  { %v4756_v24 = vpop.permute.xlu0 %4755 }
0x18f4   :  { %v4758_v40 = vmul.f32 %v7115_v33, %v4756_v24 }
0x18f6   :  { %5005 = vrot.lane.b32.xlu1 %v4758_v40, %s7302_s12 }
0x1958   :  { %v4761_v41 = vpop.permute.xlu1 %4760 }
0x1959   :  { %6451 = vmatmul.mubr.msk.f32.vlgmr.msra.gmra.mrb[50].mxu0 %vm326_vm3, %v4761_v41 }
0x195a   :  { %6845 = vmatpush3.bf16.msra.mxu0 %v7512_v55  ;;  %6472 = vmatprep.mubr.msk.f32.mxu0 %vm7300_vm0, %v7301_v4 }
0x195b   :  { %6846 = vmatprep.subr.bf16.mxu0 %v7298_v0 }
0x195e   :  { %6848 = vmatpush3.bf16.msra.mxu0 %v7517_v62 }
0x195f   :  { %6855 = vmatprep.subr.bf16.mxu0 %v7298_v0 }
0x1960   :  { %v4836_v42 = vpop.permute.xlu0 %4835 }
0x1961   :  { %6462 = vmatmul.mubr.msk.f32.vlgmr.msra.gmra.mrb[52].mxu1 %vm326_vm3, %v4836_v42  ;;  %6473 = vmatmul.mubr.msk.f32.vlgmr.msra.gmra.mrb[52].mxu0 %vm326_vm3, %v4836_v42 }
0x1962   :  { %6851 = vmatpush3.bf16.msra.mxu1 %v7514_v59  ;;  %6483 = vmatprep.mubr.msk.f32.mxu1 %vm7300_vm0, %v7301_v4 }
0x1963   :  { %6852 = vmatprep.subr.bf16.mxu1 %v7298_v0  ;;  %6857 = vmatpush3.bf16.msra.mxu0 %v7590_v23 }
0x1964   :  { %6858 = vmatprep.subr.bf16.mxu0 %v7298_v0  ;;  %6494 = vmatprep.mubr.msk.f32.mxu0 %vm7300_vm0, %v7301_v4 }
0x1966   :  { %6854 = vmatpush3.bf16.msra.mxu1 %v7521_v63 }
0x1967   :  { %6860 = vmatpush3.bf16.msra.mxu0 %v7596_v30  ;;  %6861 = vmatprep.subr.bf16.mxu1 %v7298_v0 }
0x1968   :  { %v5006_v55 = vpop.permute.xlu1 %5005 }
0x1969   :  { %6484 = vmatmul.mubr.msk.f32.vlgmr.msra.gmra.mrb[54].mxu1 %vm326_vm3, %v5006_v55  ;;  %v5279_v55 = vld [vmem:[#allocation10] sm:$0xff] }
0x196a   :  { %6863 = vmatpush3.bf16.msra.mxu1 %v7592_v27  ;;  %6505 = vmatprep.mubr.msk.f32.mxu1 %vm7300_vm0, %v7301_v4 }
0x196b   :  { %6864 = vmatprep.subr.bf16.mxu1 %v7298_v0 }
0x196e   :  { %6866 = vmatpush3.bf16.msra.mxu1 %v7600_v31 }
0x1a2c   :  { %v4830_v59 = vpop.f32.mrb[50].mxu0 }
0x1a2d   :  { %v6452_v62 = vpop.f32.mrb[51].mxu0 }
0x1a2e   :  { %v5281_v62 = vld [vmem:[#allocation10 + $0x10] sm:$0xff] }
0x1a34   :  { %v4905_v23 = vpop.f32.mrb[52].mxu1  ;;  %v5000_v63 = vpop.f32.mrb[52].mxu0 }
0x1a35   :  { %v4906_v43 = vadd.f32 %v4905_v23, %v4830_v59  ;;  %v6463_v30 = vpop.f32.mrb[53].mxu1  ;;  %v6474_v44 = vpop.f32.mrb[53].mxu0  ;;  %v5280_v59 = vld [vmem:[#allocation10 + $0x8] sm:$0xff] }
0x1a36   :  { %v6867_v23 = vpack.c.bf16 %v5280_v59, %v5279_v55 }
0x1a37   :  { %v4909_v50 = vadd.f32 %v8054_v45, %v4906_v43 }
0x1a38   :  { %6868 = vmatprep.subr.bf16.mxu0 %v6867_v23 }
0x1a39   :  { %7122 = vtanh.f32 %v4909_v50  ;;  %v5566_v31 = vmul.f32 -1.442695, %v4909_v50  ;;  %v5316_v50 = vrot.slane %v5308_v51, %v7422_v17 }
0x1a3c   :  { %v5075_v52 = vpop.f32.mrb[54].mxu1 }
0x1a3d   :  { %v5076_v53 = vadd.f32 %v5075_v52, %v5000_v63  ;;  %v6485_v27 = vpop.f32.mrb[55].mxu1  ;;  %v5282_v63 = vld [vmem:[#allocation10 + $0x18] sm:$0xff] }
0x1a3e   :  { %v6871_v43 = vpack.c.bf16 %v5282_v63, %v5281_v62 }
0x1a3f   :  { %v5079_v54 = vadd.f32 %v7950_v57, %v5076_v53 }
0x1a41   :  { %7124 = vtanh.f32 %v5079_v54  ;;  %v5569_v56 = vmul.f32 -1.442695, %v5079_v54  ;;  %v5573_v54 = vld [vmem:[%s8246_s6] ss:$0 sm:$0xff]  ;;  %s7259_s6 = scalar_lea.vmem %s5466_s8, 256 }
0x1a42   :  { %7126 = vpow2.f32 %v5566_v31  ;;  %p7260_p12 = scmp.ne.s32.totalorder %s5466_s8, %s7259_s6  ;;  %p7265_p0 = scmp.lt.s32.totalorder %s7259_s6, %s7259_s6 }
0x1a43   :  { %v7123_v4 = vpop.eup %7122  ;;  %7128 = vpow2.f32 %v5569_v56 }
0x1a44   :  { %4919 = vrot.lane.b32.xlu0 %v7123_v4, %s7294_s3  ;;  %p7266_p1 = por %p7265_p0, %p7264_p13 }
0x1a46   :  { %p7267_p2 = pnand %p7266_p1, %p7260_p12 }
0x1a4b   :  { %v7125_v0 = vpop.eup %7124 }
0x1a4c   :  { %5089 = vrot.lane.b32.xlu1 %v7125_v0, %s7294_s3  ;;  %v7127_v61 = vpop.eup %7126 }
0x1a4d   :  { %v4913_v16 = vadd.f32 1.0, %v7127_v61  ;;  %v7129_v60 = vpop.eup %7128 }
0x1a4e   :  { %v5083_v19 = vadd.f32 1.0, %v7129_v60 }
0x1a4f   :  { %7130 = vrcp.f32 %v4913_v16 }
0x1a50   :  { %7132 = vrcp.f32 %v5083_v19 }
0x1a59   :  { %v7131_v58 = vpop.eup %7130 }
0x1a5a   :  { %v7133_v13 = vpop.eup %7132  ;;  %v4917_v11 = vmul.f32 %v7131_v58, %v8146_v12 }
0x1a5b   :  { %v5087_v47 = vmul.f32 %v7133_v13, %v8150_v6 }
0x1ab6   :  { %v4920_v2 = vpop.permute.xlu0 %4919 }
0x1ab7   :  { %v4922_v57 = vmul.f32 %v7131_v58, %v4920_v2 }
0x1ab9   :  { %4924 = vrot.lane.b32.xlu0 %v4922_v57, %s7294_s3 }
0x1abe   :  { %v5090_v5 = vpop.permute.xlu1 %5089 }
0x1abf   :  { %v5092_v20 = vmul.f32 %v7133_v13, %v5090_v5 }
0x1ac1   :  { %5094 = vrot.lane.b32.xlu1 %v5092_v20, %s7294_s3 }
0x1b2b   :  { %v4925_v3 = vpop.permute.xlu0 %4924 }
0x1b2c   :  { %v4927_v7 = vadd.f32 %v4925_v3, %v4917_v11 }
0x1b2e   :  { %7134 = vtanh.f32 %v4927_v7 }
0x1b33   :  { %v5095_v8 = vpop.permute.xlu1 %5094 }
0x1b34   :  { %v5097_v22 = vadd.f32 %v5095_v8, %v5087_v47 }
0x1b36   :  { %7136 = vtanh.f32 %v5097_v22 }
0x1b38   :  { %v7135_v49 = vpop.eup %7134 }
0x1b39   :  { %4930 = vrot.lane.b32.xlu0 %v7135_v49, %s7294_s3 }
0x1b40   :  { %v7137_v15 = vpop.eup %7136 }
0x1b41   :  { %5100 = vrot.lane.b32.xlu1 %v7137_v15, %s7294_s3 }
0x1bab   :  { %v4931_v33 = vpop.permute.xlu0 %4930 }
0x1bac   :  { %v4933_v21 = vmul.f32 %v7131_v58, %v4931_v33 }
0x1bae   :  { %5105 = vrot.lane.b32.xlu0 %v4933_v21, %s7302_s12 }
0x1bb3   :  { %v5101_v34 = vpop.permute.xlu1 %5100 }
0x1bb4   :  { %v5103_v29 = vmul.f32 %v7133_v13, %v5101_v34 }
0x1bb6   :  { %5180 = vrot.lane.b32.xlu1 %v5103_v29, %s7302_s12 }
0x1c20   :  { %v5106_v26 = vpop.permute.xlu0 %5105 }
0x1c21   :  { %6495 = vmatmul.mubr.msk.f32.vlgmr.msra.gmra.mrb[54].mxu0 %vm326_vm3, %v5106_v26 }
0x1c22   :  { %6870 = vmatpush3.bf16.msra.mxu0 %v6867_v23 }
0x1c23   :  { %6872 = vmatprep.subr.bf16.mxu0 %v6871_v43 }
0x1c26   :  { %6874 = vmatpush3.bf16.msra.mxu0 %v6871_v43 }
0x1c28   :  { %v5181_v12 = vpop.permute.xlu1 %5180 }
0x1c29   :  { %6506 = vmatmul.mubr.msk.f32.vlgmr.msra.gmra.mrb[56].mxu1 %vm326_vm3, %v5181_v12 }
0x1cf4   :  { %v5175_v35 = vpop.f32.mrb[54].mxu0 }
0x1cf5   :  { %v6496_v1 = vpop.f32.mrb[55].mxu0 }
0x1cfc   :  { %v5250_v6 = vpop.f32.mrb[56].mxu1 }
0x1cfd   :  { %v5251_v9 = vadd.f32 %v5250_v6, %v5175_v35  ;;  %v6507_v10 = vpop.f32.mrb[57].mxu1 }
0x1cff   :  { %v5254_v37 = vadd.f32 %v8054_v45, %v5251_v9 }
0x1d01   :  { %7138 = vtanh.f32 %v5254_v37  ;;  %v5572_v14 = vmul.f32 -1.442695, %v5254_v37 }
0x1d03   :  { %7140 = vpow2.f32 %v5572_v14 }
0x1d0b   :  { %v7139_v48 = vpop.eup %7138 }
0x1d0c   :  { %5264 = vrot.lane.b32.xlu0 %v7139_v48, %s7294_s3 }
0x1d0d   :  { %v7141_v38 = vpop.eup %7140 }
0x1d0e   :  { %v5258_v46 = vadd.f32 1.0, %v7141_v38 }
0x1d10   :  { %7142 = vrcp.f32 %v5258_v46 }
0x1d1a   :  { %v7143_v18 = vpop.eup %7142 }
0x1d1b   :  { %v5262_v45 = vmul.f32 %v7143_v18, %v4927_v7 }
0x1d7e   :  { %v5265_v36 = vpop.permute.xlu0 %5264 }
0x1d7f   :  { %v5267_v24 = vmul.f32 %v7143_v18, %v5265_v36 }
0x1d81   :  { %5269 = vrot.lane.b32.xlu1 %v5267_v24, %s7294_s3 }
0x1d85   :  { %5325 = vrot.lane.b32.xlu1 %v5307_v32, %s7302_s12 }
0x1df3   :  { %v5270_v40 = vpop.permute.xlu1 %5269 }
0x1df4   :  { %v5272_v41 = vadd.f32 %v5270_v40, %v5262_v45 }
0x1df6   :  { %7144 = vtanh.f32 %v5272_v41 }
0x1df7   :  { %v5326_v42 = vpop.permute.xlu1 %5325 }
0x1df8   :  { %6516 = vmatprep.mubr.msk.f32.mxu0 %vm326_vm3, %v5326_v42 }
0x1e00   :  { %v7145_v30 = vpop.eup %7144 }
0x1e01   :  { %5275 = vrot.lane.b32.xlu0 %v7145_v30, %s7294_s3 }
0x1e73   :  { %v5276_v28 = vpop.permute.xlu0 %5275 }
0x1e74   :  { %v5278_v32 = vmul.f32 %v7143_v18, %v5276_v28 }
0x1e76   :  { %v5309_v44 = vcombine.low %v4933_v21, %v5278_v32 }
0x1e78   :  { %v5323_v52 = vrot.slane %v5309_v44, %v7422_v17 }
0x1e7a   :  { %v5324_v53 = vcombine.low %v5316_v50, %v5323_v52 }
0x1e7c   :  { %5327 = vrot.lane.b32.xlu0 %v5324_v53, %s7302_s12 }
0x1eee   :  { %v5328_v27 = vpop.permute.xlu0 %5327 }
0x1eef   :  { %6517 = vmatmul.mubr.msk.f32.vlgmr.msra.gmra.mrb[56].mxu0 %vm326_vm3, %v5328_v27 }
0x1fc2   :  { %v6518_v4 = vpop.f32.mrb[56].mxu0 }
0x1fc3   :  { %v5405_v0 = vadd.f32 %v6518_v4, %v5573_v54  ;;  %v5399_v31 = vpop.f32.mrb[57].mxu0 }
0x1fc4   :  { %v5400_v25 = vadd.f32 %v5573_v54, %v5399_v31 }
0x1fc5   :  { %v5427_v39 = vcombine.high %v5405_v0, %v5405_v0  ;;  %v5434_v56 = vrot.slane %v5405_v0, %v7422_v17  ;;  %5578 = vst.sshfl [vmem:[#allocation11 + $0x8] sm:$0x3 pattern:$0x76325410] %v5405_v0 }
0x1fc6   :  { %v5410_v61 = vcombine.high %v5400_v25, %v5400_v25  ;;  %v5417_v16 = vrot.slane %v5400_v25, %v7422_v17  ;;  %5576 = vst.sshfl [vmem:[#allocation11] sm:$0x3 pattern:$0x76325410] %v5400_v25 }
0x1fc7   :  { %v5441_v60 = vrot.slane %v5427_v39, %v7422_v17  ;;  %v5442_v19 = vcombine.high %v5434_v56, %v5434_v56  ;;  %5579 = vst.sshfl [vmem:[#allocation11 + $0xc] sm:$0x3 pattern:$0x76325410] %v5427_v39 }
0x1fc8   :  { %v5424_v58 = vrot.slane %v5410_v61, %v7422_v17  ;;  %v5425_v2 = vcombine.high %v5417_v16, %v5417_v16  ;;  %5577 = vst.sshfl [vmem:[#allocation11 + $0x4] sm:$0x3 pattern:$0x76325410] %v5410_v61 }
0x1fc9   :  { %v5443_v57 = vcombine.high %v5441_v60, %v5441_v60  ;;  %5457 = vst [vmem:[#allocation11 + $0xa] sm:$0x3] %v5442_v19 }
0x1fca   :  { %v5426_v13 = vcombine.high %v5424_v58, %v5424_v58  ;;  %5453 = vst [vmem:[#allocation11 + $0x2] sm:$0x3] %v5425_v2 }
0x1fcb   :  { %5459 = vst [vmem:[#allocation11 + $0xe] sm:$0x3] %v5443_v57 }
0x1fcc   :  { %5455 = vst [vmem:[#allocation11 + $0x6] sm:$0x3] %v5426_v13 }
0x1fcd   :  { %7270 = shalt.err (!%p7267_p2)
}
0x1fce   :  { %s7271_s13 = scalar_lea.hbm %s8247_s7, 256 }
0x1fcf   :  { %p7272_p3 = scmp.ne.s32.totalorder %s8247_s7, %s7271_s13  ;;  %p7275_p4 = scmp.lt.u32.totalorder %s7271_s13, %s8247_s7 }
0x1fd1   :  { %p7277_p5 = pnand %p7275_p4, %p7272_p3 }
0x1fd3   :  { %7280 = shalt.err (!%p7277_p5)
}
0x1fd4   :  { %5471 = dma.vmem_to_hbm [thread:$0]  %s5466_s8, 256, %s8247_s7, [#allocation4], %s7294_s3, %s7294_s3, %s7295_s15  }
0x1fd5   :  { %7287 = dma.done.wait [#allocation4], 256  }
0x1fd6   :  { %7288 = vsyncadd [#allocation4], 4294967040 }
0x1fd7   :  { %5475 = vsyncpa [#allocation3], 1 }
0x1fd8   :  { %5476 = vsyncpa [#allocation6], 1 }
0x1fd9   :  { %5477 = vsyncpa [#allocation9], 1 }
0x1fda   :  { %5478 = vsyncpa [#allocation4], 1 }

</bundles_post_ra>
